<compile_context>
chip_gen: v7x
topology: tpu7x:2x2x1
jax: 0.10.0
libtpu: 0.0.40
codegen_flags: <defaults>
</compile_context>

<pallas_src>
import jax
import jax.numpy as jnp
from jax.experimental import pallas as pl
from jax.experimental.pallas import tpu as pltpu


def ffn_kernel(x_ref, ca_ref, gamma_ref, beta_ref,
               w1_ref, b1_ref, w2_ref, b2_ref, o_ref, s1_ref):
    # Residual sum (f32), parked in VMEM scratch so it is not held in vregs
    # across the two matmuls + GELU.
    s1 = x_ref[...].astype(jnp.float32) + ca_ref[...].astype(jnp.float32)
    s1_ref[...] = s1

    # LayerNorm over the feature dim (eps = 1e-5, affine), stats in f32.
    mean = jnp.mean(s1, axis=-1, keepdims=True)
    d = s1 - mean                                   # reused for var and z
    var = jnp.mean(d * d, axis=-1, keepdims=True)
    z = d * jax.lax.rsqrt(var + 1e-5)
    z = z * gamma_ref[...] + beta_ref[...]          # broadcast (1, D)

    # BasicMLP: Linear -> GELU -> Linear (dropout omitted: eval mode).
    # MXU operands in the weight dtype (bf16 on v6e/v7x), f32 accumulation.
    mxu_dtype = w1_ref.dtype
    h = jnp.dot(z.astype(mxu_dtype), w1_ref[...],
                preferred_element_type=jnp.float32) + b1_ref[...]
    h = jax.nn.gelu(h, approximate=True)            # tanh GELU -> EUP slot
    mlp_out = jnp.dot(h.astype(mxu_dtype), w2_ref[...],
                      preferred_element_type=jnp.float32) + b2_ref[...]

    # Second residual (re-read s1 from VMEM scratch).
    o_ref[...] = (s1_ref[...] + mlp_out).astype(o_ref.dtype)


def _pick_tile_rows(n_rows, requested):
    """Largest row tile <= requested that divides n_rows, is a multiple of 8
    sublanes, and (when possible) leaves >= 2 grid steps (pipelining + v7x
    dual-TC sharding)."""
    t = min(requested, max(8, n_rows // 2))
    t = max(8, (t // 8) * 8)
    while n_rows % t:
        t -= 8
    return t


def ffn_forward(x, cross_attn, gamma, beta, w1, b1, w2, b2,
                *, tile_rows=256, mxu_dtype=jnp.bfloat16):
    """Fused residual + LayerNorm + MLP + residual.  (B, S, D) -> (B, S, D)."""
    B, S, D = x.shape
    H = w1.shape[1]
    N = B * S
    assert N % 8 == 0, "B*S must be a multiple of 8 (f32 sublane tiling)"
    tr = _pick_tile_rows(N, tile_rows)

    x2 = x.reshape(N, D)
    ca2 = cross_attn.reshape(N, D)
    gamma2 = gamma.reshape(1, D).astype(jnp.float32)
    beta2 = beta.reshape(1, D).astype(jnp.float32)
    # MXU operands cast once here; biases stay f32 (added post-accumulation).
    w1c = w1.astype(mxu_dtype)
    w2c = w2.astype(mxu_dtype)
    b1_2 = b1.reshape(1, H).astype(jnp.float32)
    b2_2 = b2.reshape(1, D).astype(jnp.float32)

    # Grid-invariant operands (constant index_map): a single buffer suffices,
    # halving their VMEM footprint (matters under v7x's 64 MiB VMEM).
    single = pl.Buffered(1)

    out = pl.pallas_call(
        ffn_kernel,
        out_shape=jax.ShapeDtypeStruct((N, D), x.dtype),
        grid_spec=pltpu.PrefetchScalarGridSpec(
            num_scalar_prefetch=0,
            grid=(N // tr,),
            in_specs=[
                pl.BlockSpec((tr, D), lambda i: (i, 0)),                       # x
                pl.BlockSpec((tr, D), lambda i: (i, 0)),                       # attn out
                pl.BlockSpec((1, D), lambda i: (0, 0), pipeline_mode=single),  # LN gamma
                pl.BlockSpec((1, D), lambda i: (0, 0), pipeline_mode=single),  # LN beta
                pl.BlockSpec((D, H), lambda i: (0, 0), pipeline_mode=single),  # W1
                pl.BlockSpec((1, H), lambda i: (0, 0), pipeline_mode=single),  # b1
                pl.BlockSpec((H, D), lambda i: (0, 0), pipeline_mode=single),  # W2
                pl.BlockSpec((1, D), lambda i: (0, 0), pipeline_mode=single),  # b2
            ],
            out_specs=pl.BlockSpec((tr, D), lambda i: (i, 0)),
            scratch_shapes=[pltpu.VMEM((tr, D), jnp.float32)],                 # s1
        ),
        compiler_params=pltpu.CompilerParams(
            dimension_semantics=("parallel",)),
    )(x2, ca2, gamma2, beta2, w1c, b1_2, w2c, b2_2)
    return out.reshape(B, S, D)


def hierarchical_attention_block(x_1, attn_1, params_1, x_2, attn_2, params_2,
                                 *, tile_rows=256, mxu_dtype=jnp.bfloat16):
    """HierarchicalAttentionBlock.forward: per-modality TransformerBlock tail,
    then concat along the feature dim (dim=2)."""
    # TODO(synk): the MSA sub-module (MSAConfig) is not shown in the spec; its
    # output is consumed here as the precomputed inputs attn_1 / attn_2.
    z_1 = ffn_forward(x_1, attn_1, *params_1,
                      tile_rows=tile_rows, mxu_dtype=mxu_dtype)
    z_2 = ffn_forward(x_2, attn_2, *params_2,
                      tile_rows=tile_rows, mxu_dtype=mxu_dtype)
    return jnp.concatenate((z_1, z_2), axis=2)


def reference_block(x, cross_attn, gamma, beta, w1, b1, w2, b2):
    s1 = x + cross_attn
    mean = jnp.mean(s1, axis=-1, keepdims=True)
    var = jnp.mean((s1 - mean) ** 2, axis=-1, keepdims=True)
    z = (s1 - mean) / jnp.sqrt(var + 1e-5) * gamma + beta
    h = jax.nn.gelu(z @ w1 + b1, approximate=True)
    return s1 + (h @ w2 + b2)


if __name__ == "__main__":
    # Small shapes consistent with the module: 2 modalities, (B, S, D_m) each.
    B, S = 2, 256
    D1, D2, H = 128, 128, 256        # input_dim_1, input_dim_2, MLP hidden

    key = jax.random.PRNGKey(0)
    (kx1, ka1, kw11, kb11, kw12, kb12,
     kx2, ka2, kw21, kb21, kw22, kb22) = jax.random.split(key, 12)

    def make_params(kw_a, kb_a, kw_b, kb_b, D):
        gamma = jnp.ones((D,), jnp.float32)          # nn.LayerNorm defaults
        beta = jnp.zeros((D,), jnp.float32)
        w1 = jax.random.normal(kw_a, (D, H), jnp.float32) * 0.05
        b1 = jax.random.normal(kb_a, (H,), jnp.float32) * 0.01
        w2 = jax.random.normal(kw_b, (H, D), jnp.float32) * 0.05
        b2 = jax.random.normal(kb_b, (D,), jnp.float32) * 0.01
        return (gamma, beta, w1, b1, w2, b2)

    x_1 = jax.random.normal(kx1, (B, S, D1), jnp.float32)
    attn_1 = jax.random.normal(ka1, (B, S, D1), jnp.float32)
    params_1 = make_params(kw11, kb11, kw12, kb12, D1)

    x_2 = jax.random.normal(kx2, (B, S, D2), jnp.float32)
    attn_2 = jax.random.normal(ka2, (B, S, D2), jnp.float32)
    params_2 = make_params(kw21, kb21, kw22, kb22, D2)

    ref = jnp.concatenate(
        (reference_block(x_1, attn_1, *params_1),
         reference_block(x_2, attn_2, *params_2)), axis=2)

    # f32-MXU path: tight numerical check against the reference.
    out_f32 = hierarchical_attention_block(
        x_1, attn_1, params_1, x_2, attn_2, params_2, mxu_dtype=jnp.float32)
    out_f32 = jax.block_until_ready(out_f32)
    assert out_f32.shape == (B, S, D1 + D2)
    assert jnp.allclose(out_f32, ref, atol=1e-4, rtol=1e-4), "f32 mismatch vs reference"

    # bf16-MXU path (the fast path on v6e/v7x): looser tolerance.
    out_bf16 = hierarchical_attention_block(
        x_1, attn_1, params_1, x_2, attn_2, params_2, mxu_dtype=jnp.bfloat16)
    out_bf16 = jax.block_until_ready(out_bf16)
    assert out_bf16.shape == (B, S, D1 + D2)
    assert jnp.allclose(out_bf16, ref, atol=5e-2, rtol=5e-2), "bf16 mismatch vs reference"

    print("KERNEL_OK")
</pallas_src>

<mosaic_0001>
module attributes {stable_mosaic.version = 11 : i64} {
  func.func @ffn_kernel(%arg0: i32, %arg1: memref<256x128xf32, #tpu.memory_space<vmem>>, %arg2: memref<256x128xf32, #tpu.memory_space<vmem>>, %arg3: memref<1x128xf32, #tpu.memory_space<vmem>>, %arg4: memref<1x128xf32, #tpu.memory_space<vmem>>, %arg5: memref<128x256xf32, #tpu.memory_space<vmem>>, %arg6: memref<1x256xf32, #tpu.memory_space<vmem>>, %arg7: memref<256x128xf32, #tpu.memory_space<vmem>>, %arg8: memref<1x128xf32, #tpu.memory_space<vmem>>, %arg9: memref<256x128xf32, #tpu.memory_space<vmem>>, %arg10: memref<256x128xf32, #tpu.memory_space<vmem>>) attributes {dimension_semantics = [#tpu.dimension_semantics<parallel>], iteration_bounds = array<i64: 2>, scalar_prefetch = 0 : i64, scratch_operands = 1 : i64, tpu.core_type = #tpu.core_type<tc>, window_params = [{transform_indices = @transform_0, window_bounds = array<i64: 256, 128>}, {transform_indices = @transform_1, window_bounds = array<i64: 256, 128>}, {pipeline_mode = #tpu.pipeline_mode<synchronous>, transform_indices = @transform_2, window_bounds = array<i64: 1, 128>}, {pipeline_mode = #tpu.pipeline_mode<synchronous>, transform_indices = @transform_3, window_bounds = array<i64: 1, 128>}, {pipeline_mode = #tpu.pipeline_mode<synchronous>, transform_indices = @transform_4, window_bounds = array<i64: 128, 256>}, {pipeline_mode = #tpu.pipeline_mode<synchronous>, transform_indices = @transform_5, window_bounds = array<i64: 1, 256>}, {pipeline_mode = #tpu.pipeline_mode<synchronous>, transform_indices = @transform_6, window_bounds = array<i64: 256, 128>}, {pipeline_mode = #tpu.pipeline_mode<synchronous>, transform_indices = @transform_7, window_bounds = array<i64: 1, 128>}, {transform_indices = @transform_8, window_bounds = array<i64: 256, 128>}]} {
    %c0 = arith.constant 0 : index
    %c0_0 = arith.constant 0 : index
    %0 = vector.load %arg1[%c0, %c0_0] : memref<256x128xf32, #tpu.memory_space<vmem>>, vector<256x128xf32>
    %c0_1 = arith.constant 0 : index
    %c0_2 = arith.constant 0 : index
    %1 = vector.load %arg2[%c0_1, %c0_2] : memref<256x128xf32, #tpu.memory_space<vmem>>, vector<256x128xf32>
    %2 = arith.addf %0, %1 : vector<256x128xf32>
    %c0_3 = arith.constant 0 : index
    %c0_4 = arith.constant 0 : index
    %3 = vector.load %arg10[%c0_3, %c0_4] : memref<256x128xf32, #tpu.memory_space<vmem>>, vector<256x128xf32>
    tpu.vector_store %arg10[%c0_3, %c0_4], %2 {strides = array<i32>} : memref<256x128xf32, #tpu.memory_space<vmem>>, vector<256x128xf32>,
    %cst = arith.constant dense<0.000000e+00> : vector<256xf32>
    %4 = vector.multi_reduction <add>, %2, %cst [1] : vector<256x128xf32> to vector<256xf32>
    %5 = vector.shape_cast %4 : vector<256xf32> to vector<256x1xf32>
    %cst_5 = arith.constant 1.280000e+02 : f32
    %6 = vector.broadcast %cst_5 : f32 to vector<256x1xf32>
    %7 = arith.divf %5, %6 : vector<256x1xf32>
    %8 = vector.broadcast %7 : vector<256x1xf32> to vector<256x128xf32>
    %9 = arith.subf %2, %8 : vector<256x128xf32>
    %10 = arith.mulf %9, %9 : vector<256x128xf32>
    %cst_6 = arith.constant dense<0.000000e+00> : vector<256xf32>
    %11 = vector.multi_reduction <add>, %10, %cst_6 [1] : vector<256x128xf32> to vector<256xf32>
    %12 = vector.shape_cast %11 : vector<256xf32> to vector<256x1xf32>
    %cst_7 = arith.constant 1.280000e+02 : f32
    %13 = vector.broadcast %cst_7 : f32 to vector<256x1xf32>
    %14 = arith.divf %12, %13 : vector<256x1xf32>
    %cst_8 = arith.constant 9.99999974E-6 : f32
    %15 = vector.broadcast %cst_8 : f32 to vector<256x1xf32>
    %16 = arith.addf %14, %15 : vector<256x1xf32>
    %17 = math.rsqrt %16 : vector<256x1xf32>
    %18 = vector.broadcast %17 : vector<256x1xf32> to vector<256x128xf32>
    %19 = arith.mulf %9, %18 : vector<256x128xf32>
    %c0_9 = arith.constant 0 : index
    %c0_10 = arith.constant 0 : index
    %20 = vector.load %arg3[%c0_9, %c0_10] : memref<1x128xf32, #tpu.memory_space<vmem>>, vector<1x128xf32>
    %21 = vector.broadcast %20 : vector<1x128xf32> to vector<256x128xf32>
    %22 = arith.mulf %19, %21 : vector<256x128xf32>
    %c0_11 = arith.constant 0 : index
    %c0_12 = arith.constant 0 : index
    %23 = vector.load %arg4[%c0_11, %c0_12] : memref<1x128xf32, #tpu.memory_space<vmem>>, vector<1x128xf32>
    %24 = vector.broadcast %23 : vector<1x128xf32> to vector<256x128xf32>
    %25 = arith.addf %22, %24 : vector<256x128xf32>
    %c0_13 = arith.constant 0 : index
    %c0_14 = arith.constant 0 : index
    %26 = vector.load %arg5[%c0_13, %c0_14] : memref<128x256xf32, #tpu.memory_space<vmem>>, vector<128x256xf32>
    %cst_15 = arith.constant dense<0.000000e+00> : vector<256x256xf32>
    %27 = tpu.matmul %25, %26, %cst_15 {dimension_numbers = #tpu.dot_dimension_numbers<[1], [0], [0], [1], [0, 0, 1, 1], [], []>} : vector<256x128xf32>, vector<128x256xf32>, vector<256x256xf32> -> vector<256x256xf32>
    %c0_16 = arith.constant 0 : index
    %c0_17 = arith.constant 0 : index
    %28 = vector.load %arg6[%c0_16, %c0_17] : memref<1x256xf32, #tpu.memory_space<vmem>>, vector<1x256xf32>
    %29 = vector.broadcast %28 : vector<1x256xf32> to vector<256x256xf32>
    %30 = arith.addf %27, %29 : vector<256x256xf32>
    %31 = arith.mulf %30, %30 : vector<256x256xf32>
    %32 = arith.mulf %30, %31 : vector<256x256xf32>
    %cst_18 = arith.constant 4.471500e-02 : f32
    %33 = vector.broadcast %cst_18 : f32 to vector<256x256xf32>
    %34 = arith.mulf %33, %32 : vector<256x256xf32>
    %35 = arith.addf %30, %34 : vector<256x256xf32>
    %cst_19 = arith.constant 0.797884583 : f32
    %36 = vector.broadcast %cst_19 : f32 to vector<256x256xf32>
    %37 = arith.mulf %36, %35 : vector<256x256xf32>
    %38 = math.tanh %37 : vector<256x256xf32>
    %cst_20 = arith.constant 1.000000e+00 : f32
    %39 = vector.broadcast %cst_20 : f32 to vector<256x256xf32>
    %40 = arith.addf %39, %38 : vector<256x256xf32>
    %cst_21 = arith.constant 5.000000e-01 : f32
    %41 = vector.broadcast %cst_21 : f32 to vector<256x256xf32>
    %42 = arith.mulf %41, %40 : vector<256x256xf32>
    %43 = arith.mulf %30, %42 : vector<256x256xf32>
    %c0_22 = arith.constant 0 : index
    %c0_23 = arith.constant 0 : index
    %44 = vector.load %arg7[%c0_22, %c0_23] : memref<256x128xf32, #tpu.memory_space<vmem>>, vector<256x128xf32>
    %cst_24 = arith.constant dense<0.000000e+00> : vector<256x128xf32>
    %45 = tpu.matmul %43, %44, %cst_24 {dimension_numbers = #tpu.dot_dimension_numbers<[1], [0], [0], [1], [0, 0, 1, 1], [], []>} : vector<256x256xf32>, vector<256x128xf32>, vector<256x128xf32> -> vector<256x128xf32>
    %c0_25 = arith.constant 0 : index
    %c0_26 = arith.constant 0 : index
    %46 = vector.load %arg8[%c0_25, %c0_26] : memref<1x128xf32, #tpu.memory_space<vmem>>, vector<1x128xf32>
    %47 = vector.broadcast %46 : vector<1x128xf32> to vector<256x128xf32>
    %48 = arith.addf %45, %47 : vector<256x128xf32>
    %c0_27 = arith.constant 0 : index
    %c0_28 = arith.constant 0 : index
    %49 = vector.load %arg10[%c0_27, %c0_28] : memref<256x128xf32, #tpu.memory_space<vmem>>, vector<256x128xf32>
    %50 = arith.addf %49, %48 : vector<256x128xf32>
    %c0_29 = arith.constant 0 : index
    %c0_30 = arith.constant 0 : index
    %51 = vector.load %arg9[%c0_29, %c0_30] : memref<256x128xf32, #tpu.memory_space<vmem>>, vector<256x128xf32>
    tpu.vector_store %arg9[%c0_29, %c0_30], %50 {strides = array<i32>} : memref<256x128xf32, #tpu.memory_space<vmem>>, vector<256x128xf32>,
    return
  }
  func.func @transform_0(%arg0: i32) -> (i32, i32) {
    %c0_i32 = arith.constant 0 : i32
    %c0_i32_0 = arith.constant 0 : i32
    return %arg0, %c0_i32 : i32, i32
  }
  func.func @transform_1(%arg0: i32) -> (i32, i32) {
    %c0_i32 = arith.constant 0 : i32
    %c0_i32_0 = arith.constant 0 : i32
    return %arg0, %c0_i32 : i32, i32
  }
  func.func @transform_2(%arg0: i32) -> (i32, i32) {
    %c0_i32 = arith.constant 0 : i32
    %c0_i32_0 = arith.constant 0 : i32
    %c0_i32_1 = arith.constant 0 : i32
    return %c0_i32, %c0_i32_0 : i32, i32
  }
  func.func @transform_3(%arg0: i32) -> (i32, i32) {
    %c0_i32 = arith.constant 0 : i32
    %c0_i32_0 = arith.constant 0 : i32
    %c0_i32_1 = arith.constant 0 : i32
    return %c0_i32, %c0_i32_0 : i32, i32
  }
  func.func @transform_4(%arg0: i32) -> (i32, i32) {
    %c0_i32 = arith.constant 0 : i32
    %c0_i32_0 = arith.constant 0 : i32
    %c0_i32_1 = arith.constant 0 : i32
    return %c0_i32, %c0_i32_0 : i32, i32
  }
  func.func @transform_5(%arg0: i32) -> (i32, i32) {
    %c0_i32 = arith.constant 0 : i32
    %c0_i32_0 = arith.constant 0 : i32
    %c0_i32_1 = arith.constant 0 : i32
    return %c0_i32, %c0_i32_0 : i32, i32
  }
  func.func @transform_6(%arg0: i32) -> (i32, i32) {
    %c0_i32 = arith.constant 0 : i32
    %c0_i32_0 = arith.constant 0 : i32
    %c0_i32_1 = arith.constant 0 : i32
    return %c0_i32, %c0_i32_0 : i32, i32
  }
  func.func @transform_7(%arg0: i32) -> (i32, i32) {
    %c0_i32 = arith.constant 0 : i32
    %c0_i32_0 = arith.constant 0 : i32
    %c0_i32_1 = arith.constant 0 : i32
    return %c0_i32, %c0_i32_0 : i32, i32
  }
  func.func @transform_8(%arg0: i32) -> (i32, i32) {
    %c0_i32 = arith.constant 0 : i32
    %c0_i32_0 = arith.constant 0 : i32
    return %arg0, %c0_i32 : i32, i32
  }
}

</mosaic_0001>

<bundles_post_ra>
// kernel: tpu_custom_call.1
= control target key start
LH: loop header
LB: loop body
LE: loop exit
PB: predicated region body
PF: predicated region fallthrough
CT: control target
= control target key end

     0   :  { %s4563_s0 = inlined_call_operand.hbm [shape: f32[512,128], index: 0, kind: input, shape index: {}]   ;;  %s4564_s1 = inlined_call_operand.hbm [shape: f32[512,128], index: 1, kind: input, shape index: {}]   ;;  %s4565_s2 = inlined_call_operand.vmem [shape: f32[1,128], index: 2, kind: input, shape index: {}]   ;;  %s4566_s3 = inlined_call_operand.vmem [shape: f32[1,128], index: 3, kind: input, shape index: {}]   ;;  %s4567_s4 = inlined_call_operand.hbm [shape: f32[128,256], index: 4, kind: input, shape index: {}]   ;;  %s4568_s5 = inlined_call_operand.vmem [shape: f32[1,256], index: 5, kind: input, shape index: {}]   ;;  %s4569_s6 = inlined_call_operand.hbm [shape: f32[256,128], index: 6, kind: input, shape index: {}]   ;;  %s4570_s7 = inlined_call_operand.vmem [shape: f32[1,128], index: 7, kind: input, shape index: {}]   ;;  %s4571_s8 = inlined_call_operand.hbm [shape: f32[512,128], index: 8, kind: output, shape index: {}]  }
   0x1   :  { %4612 = sst [smem:[#allocation49_spill]] %s4563_s0 }
   0x2   :  { %4613 = sst [smem:[#allocation50_spill]] %s4567_s4 }
   0x3   :  { %4614 = sst [smem:[#allocation51_spill]] %s4569_s6 }
   0x4   :  { %13 = vsyncpa [#allocation4], 0 }
   0x5   :  { %15 = vsyncpa [#allocation4 + $0x1], 0 }
   0x6   :  { %16 = vsyncpa [#allocation7], 0 }
   0x7   :  { %18 = vsyncpa [#allocation7 + $0x1], 0 }
   0x8   :  { %19 = vsyncpa [#allocation10], 0 }
   0x9   :  { %20 = vsyncpa [#allocation5], 0 }
   0xa   :  { %22 = vsyncpa [#allocation5 + $0x1], 0  ;;  %s2987_s27 = smov 0   ;;  %s2989_s28 = smov 0  }
   0xb   :  { %s2991_s29 = smov 0   ;;  %s2993_s30 = smov 0  }
   0xc LB: > { %4615 = sst [smem:[#allocation17_spill]] %s2923_s29  ;;  %s3008_s9 = sadd.s32 4294967295, %s2927_s30   ;;  %s2927_s30 = sphi %s2993_s30, %s4702_s30   ;;  %s2923_s29 = sphi %s2991_s29, %s4699_s29   ;;  %s2919_s28 = sphi %s2989_s28, %s4701_s28   ;;  %s2915_s27 = sphi %s2987_s27, %s4700_s27  }
   0xd   : > { %s2321_s10 = sadd.s32 4294967294, %s2927_s30   ;;  %p48_p0 = scmp.ne.s32.totalorder %s2919_s28, %s2915_s27 }
   0xe   : > { %p4572_p1 = scmp.eq.s32.totalorder %s3008_s9, 0  ;;  %p230_p3 = scmp.eq.s32.totalorder %s2321_s10, 1 }
   0xf   : > { %p2322_p5 = scmp.ge.s32.totalorder %s2927_s30, 1  ;;  %p237_p7 = scmp.lt.s32.totalorder %s2927_s30, 3 }
  0x10   : > { %p3017_p4 = por %p4572_p1, %p48_p0  ;;  %p3022_p6 = por %p230_p3, %p48_p0 }
  0x11   : > { %p3027_p8 = pnand %p2322_p5, %p237_p7  ;;  %s2929_s14 = smov [#allocation8]  }
  0x12   : > { %s4616_s11 = scalar_select %p3017_p4, 1, 0 }
  0x13   : > { %s4617_s12 = scalar_select %p3022_p6, 1, 0 }
  0x14   : > { %s255_s15 = sshll.u32 %s2929_s14, 4  ;;  %p2475_p9 = pneg %p3027_p8  ;;  %s3031_s15 = int_to_ptr.vmem [resolvable:$true] %s255_s15 }
  0x15   : > { %s2930_s17 = smov [#allocation9]   ;;  %s4620_s4 = sld [smem:[#allocation50_spill]] }
  0x16   : > { %p3038_p11 = pnand %p2475_p9, %p4572_p1  ;;  %s271_s18 = sshll.u32 %s2930_s17, 4  ;;  %s3042_s18 = int_to_ptr.vmem [resolvable:$true] %s271_s18 }
  0x18   : > { %p2735_p13 = pneg %p3038_p11 }
  0x1b   : > { %s2733_s21 = scalar_lea.hbm %s4620_s4, 4096 }
  0x1c   : > { %p2734_p12 = scmp.ne.s32.totalorder %s4620_s4, %s2733_s21  ;;  %p2740_p5 = scmp.lt.u32.totalorder %s2733_s21, %s4620_s4 }
  0x1e   : > { %p2736_p0 = pnand %p2735_p13, %p2734_p12 }
  0x20   : > { %p2737_p3 = pneg %p2736_p0 }
  0x22   : > { %p2742_p7 = pnand %p2740_p5, %p2737_p3 }
  0x24   : > { %2745 = shalt.err (!%p2742_p7)
}
  0x25   : > { %s2746_s26 = scalar_lea.vmem %s3031_s15, 4096  ;;  %p2754_p2 = scmp.lt.s32.totalorder %s3031_s15, %s3031_s15 }
  0x26   : > { %p2747_p9 = scmp.ne.s32.totalorder %s3031_s15, %s2746_s26  ;;  %p2755_p12 = scmp.lt.s32.totalorder %s2746_s26, %s2746_s26 }
  0x28   : > { %p2749_p10 = pnand %p2747_p9, %p2735_p13  ;;  %p2756_p0 = por %p2755_p12, %p2754_p2 }
  0x2a   : > { %p2750_p1 = pneg %p2749_p10 }
  0x2c   : > { %p2757_p6 = pnand %p2756_p0, %p2750_p1 }
  0x2e   : > { %2760 = shalt.err (!%p2757_p6)
}
  0x2f   : > { %s2931_s10 = smov 256   ;;  %s2932_s14 = smov 16  }
  0x30   : > { %2478 = dma.hbm_to_vmem [thread:$0]  (!%p3038_p11), %s4620_s4, 4096, %s3031_s15, [#allocation7], %s2931_s10, %s2931_s10, %s2932_s14  }
  0x31   : > { %s4621_s6 = sld [smem:[#allocation51_spill]] }
  0x37   : > { %s2761_s22 = scalar_lea.hbm %s4621_s6, 4096 }
  0x38   : > { %p2762_p2 = scmp.ne.s32.totalorder %s4621_s6, %s2761_s22  ;;  %p2768_p10 = scmp.lt.u32.totalorder %s2761_s22, %s4621_s6 }
  0x3a   : > { %p2764_p1 = pnand %p2762_p2, %p2735_p13 }
  0x3c   : > { %p2765_p6 = pneg %p2764_p1 }
  0x3e   : > { %p2770_p3 = pnand %p2768_p10, %p2765_p6 }
  0x40   : > { %2773 = shalt.err (!%p2770_p3)
}
  0x41   : > { %s2774_s15 = scalar_lea.vmem %s3042_s18, 4096  ;;  %p2782_p12 = scmp.lt.s32.totalorder %s3042_s18, %s3042_s18 }
  0x42   : > { %p2775_p5 = scmp.ne.s32.totalorder %s3042_s18, %s2774_s15  ;;  %p2783_p0 = scmp.lt.s32.totalorder %s2774_s15, %s2774_s15 }
  0x44   : > { %p2777_p7 = pnand %p2775_p5, %p2735_p13  ;;  %p2784_p2 = por %p2783_p0, %p2782_p12 }
  0x46   : > { %p2778_p9 = pneg %p2777_p7 }
  0x48   : > { %p2785_p1 = pnand %p2784_p2, %p2778_p9 }
  0x4a   : > { %2788 = shalt.err (!%p2785_p1)
}
  0x4b   : > { %s4573_s10 = smov 128   ;;  %s4575_s14 = smov 8  }
  0x4c   : > { %2481 = dma.hbm_to_vmem [thread:$0]  (!%p3038_p11), %s4621_s6, 4096, %s3042_s18, [#allocation10], %s4573_s10, %s4573_s10, %s4575_s14  }
  0x4d   : > { %s3100_s20 = sadd.s32 1, %s2927_s30   ;;  %s35_s22 = sadd.s32 1, %s2923_s29 }
  0x4e   : > { %s32_s21 = ssub.s32 %s2927_s30, %s3100_s20  ;;  %p42_p6 = scmp.ne.s32.totalorder %s2923_s29, %s2919_s28 }
  0x4f   : > { %p33_p13 = scmp.eq.s32.totalorder %s32_s21, 0  ;;  %p43_p10 = scmp.eq.s32.totalorder %s2927_s30, 0 }
  0x50   : > { %p4623_p5 = scmp.eq.s32.totalorder %s3008_s9, 1  ;;  %p2495_p9 = scmp.lt.s32.totalorder %s2927_s30, 2 }
  0x51   : > { %s3109_s23 = scalar_select %p33_p13, %s2923_s29, %s35_s22  }
  0x52   : > { %p44_p3 = por %p43_p10, %p42_p6  ;;  %p3113_p7 = por %p4623_p5, %p42_p6 }
  0x53   : > { %4622 = sst [smem:[#allocation18_spill]] %s3109_s23  ;;  %s288_s24 = sand.u32 1, %s2923_s29  }
  0x54   : > { %s4624_s16 = scalar_select %p3113_p7, 1, 0 }
  0x55   : > { %s2326_s25 = sshll.u32 %s288_s24, 8  ;;  %s2346_s18 = sshll.u32 %s2927_s30, 12 }
  0x56   : > { %s4625_s0 = sld [smem:[#allocation49_spill]]  ;;  %s292_s19 = scalar_lea.vmem [#allocation3], %s2326_s25 }
  0x57   : > { %s299_s21 = sshll.u32 %s292_s19, 4  ;;  %p3127_p11 = pnand %p2495_p9, %p44_p3  ;;  %s3125_s21 = int_to_ptr.vmem [resolvable:$true] %s299_s21 }
  0x58   : > { %s3134_s26 = scalar_lea.hbm %s4564_s1, %s2346_s18  ;;  %s313_s15 = scalar_lea.vmem [#allocation6], %s2326_s25 }
  0x59   : > { %s3136_s4 = sshll.u32 %s313_s15, 4  ;;  %s3138_s6 = scalar_lea.sflag [#allocation4], %s288_s24  ;;  %s3170_s4 = int_to_ptr.vmem [resolvable:$true] %s3136_s4 }
  0x5a   : > { %p2791_p0 = pneg %p3127_p11 }
  0x5c   : > { %s3123_s17 = scalar_lea.hbm %s4625_s0, %s2346_s18  ;;  %s2794_s10 = scalar_lea.hbm %s4625_s0, 8192 }
  0x5d   : > { %s2789_s19 = scalar_lea.hbm %s3123_s17, 4096  ;;  %p2795_p13 = scmp.lt.u32.totalorder %s3123_s17, %s4625_s0 }
  0x5e   : > { %p2790_p12 = scmp.ne.s32.totalorder %s3123_s17, %s2789_s19  ;;  %p2796_p6 = scmp.lt.u32.totalorder %s2794_s10, %s2789_s19 }
  0x5f   : > { %p2798_p3 = scmp.lt.u32.totalorder %s2789_s19, %s3123_s17 }
  0x60   : > { %p2792_p2 = pnand %p2791_p0, %p2790_p12  ;;  %p2797_p10 = por %p2796_p6, %p2795_p13 }
  0x62   : > { %p2793_p1 = pneg %p2792_p2  ;;  %p2799_p5 = por %p2798_p3, %p2797_p10 }
  0x64   : > { %p2800_p9 = pnand %p2799_p5, %p2793_p1 }
  0x66   : > { %2803 = shalt.err (!%p2800_p9)
}
  0x67   : > { %s2804_s24 = scalar_lea.vmem %s3125_s21, 4096  ;;  %s2935_s29 = smov [#allocation3]  }
  0x68   : > { %p2805_p12 = scmp.ne.s32.totalorder %s3125_s21, %s2804_s24  ;;  %s2809_s23 = sshll.u32 %s2935_s29, 4  ;;  %s2810_s23 = int_to_ptr.vmem [resolvable:$false] %s2809_s23 }
  0x69   : > { %s2811_s25 = scalar_lea.vmem %s2810_s23, 8192  ;;  %p2812_p4 = scmp.lt.s32.totalorder %s3125_s21, %s2810_s23 }
  0x6a   : > { %p2807_p2 = pnand %p2805_p12, %p2791_p0  ;;  %p2813_p13 = scmp.lt.s32.totalorder %s2811_s25, %s2804_s24 }
  0x6c   : > { %p2808_p7 = pneg %p2807_p2  ;;  %p2814_p6 = por %p2813_p13, %p2812_p4 }
  0x6e   : > { %p2815_p10 = pnand %p2814_p6, %p2808_p7 }
  0x70   : > { %2818 = shalt.err (!%p2815_p10)
}
  0x71   : > { %s4627_s15 = smov 8   ;;  %s4628_s19 = smov 128  }
  0x72   : > { %2485 = dma.hbm_to_vmem [thread:$0]  (!%p3127_p11), %s3123_s17, 4096, %s3125_s21, %s3138_s6, %s4628_s19, %s4628_s19, %s4627_s15  }
  0x73   : > { %s309_s10 = sand.u32 1, %s2927_s30   ;;  %s2819_s18 = scalar_lea.hbm %s3134_s26, 4096 }
  0x74   : > { %s3173_s14 = scalar_lea.sflag [#allocation7], %s309_s10  ;;  %p2820_p4 = scmp.ne.s32.totalorder %s3134_s26, %s2819_s18 }
  0x75   : > { %s2824_s23 = scalar_lea.hbm %s4564_s1, 8192  ;;  %p2825_p3 = scmp.lt.u32.totalorder %s3134_s26, %s4564_s1 }
  0x76   : > { %p2822_p7 = pnand %p2820_p4, %p2791_p0  ;;  %p2826_p5 = scmp.lt.u32.totalorder %s2824_s23, %s2819_s18 }
  0x77   : > { %p2828_p12 = scmp.lt.u32.totalorder %s2819_s18, %s3134_s26 }
  0x78   : > { %p2823_p1 = pneg %p2822_p7  ;;  %p2827_p9 = por %p2826_p5, %p2825_p3 }
  0x7a   : > { %p2829_p2 = por %p2828_p12, %p2827_p9 }
  0x7c   : > { %p2830_p13 = pnand %p2829_p2, %p2823_p1 }
  0x7e   : > { %2833 = shalt.err (!%p2830_p13)
}
  0x7f   : > { %s2834_s6 = scalar_lea.vmem %s3170_s4, 4096  ;;  %s2936_s17 = smov [#allocation6]  }
  0x80   : > { %p2835_p6 = scmp.ne.s32.totalorder %s3170_s4, %s2834_s6  ;;  %s2839_s21 = sshll.u32 %s2936_s17, 4  ;;  %s2840_s21 = int_to_ptr.vmem [resolvable:$false] %s2839_s21 }
  0x81   : > { %s2841_s0 = scalar_lea.vmem %s2840_s21, 8192  ;;  %p2842_p7 = scmp.lt.s32.totalorder %s3170_s4, %s2840_s21 }
  0x82   : > { %p2837_p10 = pnand %p2835_p6, %p2791_p0  ;;  %p2843_p3 = scmp.lt.s32.totalorder %s2841_s0, %s2834_s6 }
  0x84   : > { %p2838_p4 = pneg %p2837_p10  ;;  %p2844_p5 = por %p2843_p3, %p2842_p7 }
  0x86   : > { %p2845_p9 = pnand %p2844_p5, %p2838_p4 }
  0x88   : > { %2848 = shalt.err (!%p2845_p9)
}
  0x89   : > { %2488 = dma.hbm_to_vmem [thread:$0]  (!%p3127_p11), %s3134_s26, 4096, %s3170_s4, %s3173_s14, %s4628_s19, %s4628_s19, %s4627_s15  }
  0x8a   : > { %332 = sbr.rel (%p3027_p8) target bundleno = 1106 (0x452), region = 52 }
  0x91   : > { %s3205_s10 = sand.u32 1, %s2919_s28   ;;  %p4629_p0 = scmp.ne.s32.totalorder %s4616_s11, 0 }
  0x92   : > { %s3208_s18 = sshll.u32 %s3205_s10, 8  ;;  %s335_s22 = scalar_lea.sflag [#allocation4], %s3205_s10 }
  0x93   : > { %s3212_s24 = scalar_lea.vmem [#allocation3], %s3208_s18 }
  0x94   : > { %2894 = dma.done.wait (%p4629_p0), %s335_s22, 4096  }
  0x95   : > { %2896 = vsyncadd (%p4629_p0), %s335_s22, 4294963200  ;;  %s343_s4 = sand.u32 1, %s3008_s9   ;;  %s3220_s26 = scalar_lea.vmem [#allocation6], %s3208_s18 }
  0x96   : > { %s344_s13 = scalar_lea.sflag [#allocation7], %s343_s4 }
  0x97   : > { %2898 = dma.done.wait (%p4629_p0), %s344_s13, 4096  }
  0x98   : > { %2900 = vsyncadd (%p4629_p0), %s344_s13, 4294963200  ;;  %p4630_p8 = scmp.eq.s32.totalorder %s3008_s9, 0 }
  0x9a   : > { %2902 = dma.done.wait (%p4630_p8), [#allocation7], 4096   ;;  %p4631_p11 = pmov %p4630_p8 }
  0x9b   : > { %p4632_p1 = pmov %p4630_p8 }
  0x9c   : > { %2904 = vsyncadd (%p4631_p11), [#allocation7], 4294963200 }
  0x9d   : > { %2906 = dma.done.wait (%p4632_p1), [#allocation10], 4096   ;;  %p4633_p12 = pmov %p4632_p1 }
  0x9e   : > { %v398_v0 = vld [vmem:[%s3212_s24 + $0x10] sm:$0xff]  ;;  %v396_v2 = vld [vmem:[%s3212_s24] sm:$0xff]  ;;  %v399_v5 = vld [vmem:[%s3212_s24 + $0x18] sm:$0xff]  ;;  %s4416_s17 = scalar_lea.vmem [#allocation11], %s3208_s18  ;;  %s2348_s21 = sshll.u32 %s3008_s9, 12 }
  0x9f   : > { %2908 = vsyncadd (%p4633_p12), [#allocation10], 4294963200  ;;  %v430_v1 = vld [vmem:[%s3220_s26 + $0x10] sm:$0xff]  ;;  %v428_v4 = vld [vmem:[%s3220_s26] sm:$0xff]  ;;  %s2206_s0 = sshll.u32 %s4416_s17, 4  ;;  %s2193_s9 = scalar_lea.sflag [#allocation5], %s3205_s10  ;;  %s4517_s0 = int_to_ptr.vmem [resolvable:$true] %s2206_s0 }
  0xa0   : > { %v3237_v3 = vadd.f32 %v430_v1, %v398_v0  ;;  %v431_v6 = vld [vmem:[%s3220_s26 + $0x18] sm:$0xff]  ;;  %v3242_v7 = vadd.f32 %v428_v4, %v396_v2  ;;  %v397_v8 = vld [vmem:[%s3212_s24 + $0x8] sm:$0xff]  ;;  %v400_v14 = vld [vmem:[%s3212_s24 + $0x20] sm:$0xff]  ;;  %s2849_s4 = scalar_lea.vmem %s4517_s0, 4096  ;;  %p4695_p13 = scmp.ne.s32.totalorder %s4624_s16, 0 }
  0xa1   : > { %v429_v9 = vld [vmem:[%s3220_s26 + $0x8] sm:$0xff]  ;;  %v3247_v10 = vadd.f32 %v431_v6, %v399_v5  ;;  %v432_v15 = vld [vmem:[%s3220_s26 + $0x20] sm:$0xff]  ;;  %v403_v17 = vld [vmem:[%s3212_s24 + $0x38] sm:$0xff]  ;;  %p2850_p2 = scmp.ne.s32.totalorder %s4517_s0, %s2849_s4  ;;  %s2939_s13 = smov [#allocation11]  }
  0xa2   : > { %4634 = vst [vmem:[#allocation19_spill] sm:$0xff] %v3237_v3  ;;  %528 = vadd.xlane.f32.xlu1 %v3237_v3  ;;  %524 = vadd.xlane.f32.xlu0 %v3242_v7  ;;  %v3250_v11 = vadd.f32 %v429_v9, %v397_v8  ;;  %v401_v12 = vld [vmem:[%s3212_s24 + $0x28] sm:$0xff]  ;;  %v435_v18 = vld [vmem:[%s3220_s26 + $0x38] sm:$0xff]  ;;  %v3262_v19 = vadd.f32 %v432_v15, %v400_v14  ;;  %v402_v20 = vld [vmem:[%s3212_s24 + $0x30] sm:$0xff] }
  0xa3   : > { %4635 = vst [vmem:[#allocation20_spill] sm:$0xff] %v3247_v10  ;;  %v433_v13 = vld [vmem:[%s3220_s26 + $0x28] sm:$0xff]  ;;  %v434_v21 = vld [vmem:[%s3220_s26 + $0x30] sm:$0xff]  ;;  %v3267_v22 = vadd.f32 %v435_v18, %v403_v17  ;;  %v404_v26 = vld [vmem:[%s3212_s24 + $0x40] sm:$0xff]  ;;  %p2851_p6 = pnand %p2850_p2, %p4695_p13 }
  0xa4   : > { %v3257_v16 = vadd.f32 %v433_v13, %v401_v12  ;;  %4637 = vst [vmem:[#allocation22_spill] sm:$0xff] %v3262_v19  ;;  %v405_v23 = vld [vmem:[%s3212_s24 + $0x48] sm:$0xff]  ;;  %v3272_v25 = vadd.f32 %v434_v21, %v402_v20  ;;  %v436_v27 = vld [vmem:[%s3220_s26 + $0x40] sm:$0xff]  ;;  %v407_v29 = vld [vmem:[%s3212_s24 + $0x58] sm:$0xff] }
  0xa5   : > { %4638 = vst [vmem:[#allocation23_spill] sm:$0xff] %v3267_v22  ;;  %v437_v24 = vld [vmem:[%s3220_s26 + $0x48] sm:$0xff]  ;;  %v439_v30 = vld [vmem:[%s3220_s26 + $0x58] sm:$0xff]  ;;  %v3282_v31 = vadd.f32 %v436_v27, %v404_v26  ;;  %v406_v32 = vld [vmem:[%s3212_s24 + $0x50] sm:$0xff]  ;;  %p2852_p10 = pneg %p2851_p6 }
  0xa6   : > { %530 = vadd.xlane.f32.xlu1 %v3247_v10  ;;  %4636 = vst [vmem:[#allocation21_spill] sm:$0xff] %v3257_v16  ;;  %526 = vadd.xlane.f32.xlu0 %v3250_v11  ;;  %4639 = vst [vmem:[#allocation24_spill] sm:$0xff] %v3272_v25  ;;  %v3277_v28 = vadd.f32 %v437_v24, %v405_v23  ;;  %v438_v33 = vld [vmem:[%s3220_s26 + $0x50] sm:$0xff]  ;;  %v3287_v34 = vadd.f32 %v439_v30, %v407_v29  ;;  %v409_v35 = vld [vmem:[%s3212_s24 + $0x68] sm:$0xff] }
  0xa7   : > { %4641 = vst [vmem:[#allocation26_spill] sm:$0xff] %v3282_v31  ;;  %v441_v36 = vld [vmem:[%s3220_s26 + $0x68] sm:$0xff]  ;;  %v3292_v37 = vadd.f32 %v438_v33, %v406_v32  ;;  %v408_v38 = vld [vmem:[%s3212_s24 + $0x60] sm:$0xff]  ;;  %v411_v41 = vld [vmem:[%s3212_s24 + $0x78] sm:$0xff] }
  0xa8   : > { %4640 = vst [vmem:[#allocation25_spill] sm:$0xff] %v3277_v28  ;;  %4642 = vst [vmem:[#allocation27_spill] sm:$0xff] %v3287_v34  ;;  %v440_v39 = vld [vmem:[%s3220_s26 + $0x60] sm:$0xff]  ;;  %v3297_v40 = vadd.f32 %v441_v36, %v409_v35  ;;  %v443_v42 = vld [vmem:[%s3220_s26 + $0x78] sm:$0xff] }
  0xa9   : > { %4643 = vst [vmem:[#allocation28_spill] sm:$0xff] %v3292_v37  ;;  %v3302_v43 = vadd.f32 %v440_v39, %v408_v38  ;;  %v410_v44 = vld [vmem:[%s3212_s24 + $0x70] sm:$0xff]  ;;  %v3307_v46 = vadd.f32 %v443_v42, %v411_v41  ;;  %v413_v47 = vld [vmem:[%s3212_s24 + $0x88] sm:$0xff]  ;;  %v412_v50 = vld [vmem:[%s3212_s24 + $0x80] sm:$0xff] }
  0xaa   : > { %534 = vadd.xlane.f32.xlu1 %v3257_v16  ;;  %532 = vadd.xlane.f32.xlu0 %v3262_v19  ;;  %4644 = vst [vmem:[#allocation29_spill] sm:$0xff] %v3297_v40  ;;  %v442_v45 = vld [vmem:[%s3220_s26 + $0x70] sm:$0xff]  ;;  %v445_v48 = vld [vmem:[%s3220_s26 + $0x88] sm:$0xff]  ;;  %v444_v51 = vld [vmem:[%s3220_s26 + $0x80] sm:$0xff] }
  0xab   : > { %4645 = vst [vmem:[#allocation30_spill] sm:$0xff] %v3302_v43  ;;  %4646 = vst [vmem:[#allocation31_spill] sm:$0xff] %v3307_v46  ;;  %v3312_v49 = vadd.f32 %v442_v45, %v410_v44  ;;  %v3317_v52 = vadd.f32 %v445_v48, %v413_v47  ;;  %v415_v53 = vld [vmem:[%s3212_s24 + $0x98] sm:$0xff]  ;;  %v3322_v55 = vadd.f32 %v444_v51, %v412_v50  ;;  %v414_v56 = vld [vmem:[%s3212_s24 + $0x90] sm:$0xff] }
  0xac   : > { %v447_v54 = vld [vmem:[%s3220_s26 + $0x98] sm:$0xff]  ;;  %v446_v57 = vld [vmem:[%s3220_s26 + $0x90] sm:$0xff]  ;;  %v416_v59 = vld [vmem:[%s3212_s24 + $0xa0] sm:$0xff] }
  0xad   : > { %4647 = vst [vmem:[#allocation32_spill] sm:$0xff] %v3312_v49  ;;  %4648 = vst [vmem:[#allocation33_spill] sm:$0xff] %v3317_v52  ;;  %v3327_v58 = vadd.f32 %v447_v54, %v415_v53  ;;  %v448_v60 = vld [vmem:[%s3220_s26 + $0xa0] sm:$0xff]  ;;  %v3332_v61 = vadd.f32 %v446_v57, %v414_v56  ;;  %v417_v63 = vld [vmem:[%s3212_s24 + $0xa8] sm:$0xff] }
  0xae   : > { %538 = vadd.xlane.f32.xlu1 %v3267_v22  ;;  %536 = vadd.xlane.f32.xlu0 %v3272_v25  ;;  %4649 = vst [vmem:[#allocation34_spill] sm:$0xff] %v3322_v55  ;;  %v3335_v62 = vadd.f32 %v448_v60, %v416_v59  ;;  %v449_v0 = vld [vmem:[%s3220_s26 + $0xa8] sm:$0xff]  ;;  %v418_v2 = vld [vmem:[%s3212_s24 + $0xb0] sm:$0xff]  ;;  %v419_v6 = vld [vmem:[%s3212_s24 + $0xb8] sm:$0xff] }
  0xaf   : > { %4650 = vst [vmem:[#allocation35_spill] sm:$0xff] %v3327_v58  ;;  %4651 = vst [vmem:[#allocation36_spill] sm:$0xff] %v3332_v61  ;;  %v3341_v1 = vadd.f32 %v449_v0, %v417_v63  ;;  %v450_v4 = vld [vmem:[%s3220_s26 + $0xb0] sm:$0xff]  ;;  %v451_v8 = vld [vmem:[%s3220_s26 + $0xb8] sm:$0xff] }
  0xb0   : > { %4652 = vst [vmem:[#allocation37_spill] sm:$0xff] %v3335_v62  ;;  %v3346_v5 = vadd.f32 %v450_v4, %v418_v2  ;;  %v3351_v9 = vadd.f32 %v451_v8, %v419_v6  ;;  %v420_v12 = vld [vmem:[%s3212_s24 + $0xc0] sm:$0xff]  ;;  %v421_v15 = vld [vmem:[%s3212_s24 + $0xc8] sm:$0xff]  ;;  %v422_v20 = vld [vmem:[%s3212_s24 + $0xd0] sm:$0xff] }
  0xb1   : > { %4653 = vst [vmem:[#allocation38_spill] sm:$0xff] %v3341_v1  ;;  %v452_v13 = vld [vmem:[%s3220_s26 + $0xc0] sm:$0xff]  ;;  %v453_v17 = vld [vmem:[%s3220_s26 + $0xc8] sm:$0xff]  ;;  %v454_v21 = vld [vmem:[%s3220_s26 + $0xd0] sm:$0xff] }
  0xb2   : > { %542 = vadd.xlane.f32.xlu1 %v3277_v28  ;;  %540 = vadd.xlane.f32.xlu0 %v3282_v31  ;;  %4654 = vst [vmem:[#allocation39_spill] sm:$0xff] %v3346_v5  ;;  %4655 = vst [vmem:[#allocation40_spill] sm:$0xff] %v3351_v9  ;;  %v3356_v14 = vadd.f32 %v452_v13, %v420_v12  ;;  %v3361_v18 = vadd.f32 %v453_v17, %v421_v15  ;;  %v423_v24 = vld [vmem:[%s3212_s24 + $0xd8] sm:$0xff]  ;;  %v424_v29 = vld [vmem:[%s3212_s24 + $0xe0] sm:$0xff] }
  0xb3   : > { %v3366_v23 = vadd.f32 %v454_v21, %v422_v20  ;;  %v455_v26 = vld [vmem:[%s3220_s26 + $0xd8] sm:$0xff]  ;;  %v456_v30 = vld [vmem:[%s3220_s26 + $0xe0] sm:$0xff]  ;;  %v425_v33 = vld [vmem:[%s3212_s24 + $0xe8] sm:$0xff] }
  0xb4   : > { %4656 = vst [vmem:[#allocation41_spill] sm:$0xff] %v3356_v14  ;;  %4657 = vst [vmem:[#allocation42_spill] sm:$0xff] %v3361_v18  ;;  %v3371_v27 = vadd.f32 %v455_v26, %v423_v24  ;;  %v3376_v32 = vadd.f32 %v456_v30, %v424_v29  ;;  %v457_v35 = vld [vmem:[%s3220_s26 + $0xe8] sm:$0xff]  ;;  %v426_v38 = vld [vmem:[%s3212_s24 + $0xf0] sm:$0xff] }
  0xb5   : > { %4658 = vst [vmem:[#allocation43_spill] sm:$0xff] %v3366_v23  ;;  %v3381_v36 = vadd.f32 %v457_v35, %v425_v33  ;;  %v458_v39 = vld [vmem:[%s3220_s26 + $0xf0] sm:$0xff]  ;;  %v427_v42 = vld [vmem:[%s3212_s24 + $0xf8] sm:$0xff]  ;;  %v956_v47 = vld [vmem:[#allocation8 + $0x8] sm:$0xff]  ;;  %s4515_s24 = scalar_lea.hbm %s4571_s8, %s2348_s21 }
  0xb6   : > { %546 = vadd.xlane.f32.xlu1 %v3287_v34  ;;  %544 = vadd.xlane.f32.xlu0 %v3292_v37  ;;  %4659 = vst [vmem:[#allocation44_spill] sm:$0xff] %v3371_v27  ;;  %4660 = vst [vmem:[#allocation45_spill] sm:$0xff] %v3376_v32  ;;  %v3386_v41 = vadd.f32 %v458_v39, %v426_v38  ;;  %v459_v44 = vld [vmem:[%s3220_s26 + $0xf8] sm:$0xff]  ;;  %v955_v50 = vld [vmem:[#allocation8] sm:$0xff]  ;;  %s2853_s26 = sshll.u32 %s2939_s13, 4  ;;  %s2854_s26 = int_to_ptr.vmem [resolvable:$false] %s2853_s26 }
  0xb7   : > { %4661 = vst [vmem:[#allocation46_spill] sm:$0xff] %v3381_v36  ;;  %v3391_v45 = vadd.f32 %v459_v44, %v427_v42  ;;  %v958_v48 = vld [vmem:[#allocation8 + $0x18] sm:$0xff]  ;;  %v957_v53 = vld [vmem:[#allocation8 + $0x10] sm:$0xff]  ;;  %v960_v54 = vld [vmem:[#allocation8 + $0x28] sm:$0xff]  ;;  %s2855_s11 = scalar_lea.vmem %s2854_s26, 8192  ;;  %p2856_p4 = scmp.lt.s32.totalorder %s4517_s0, %s2854_s26 }
  0xb8   : > { %4662 = vst [vmem:[#allocation47_spill] sm:$0xff] %v3386_v41  ;;  %v2349_v51 = vpack.c.bf16 %v958_v48, %v956_v47  ;;  %v962_v56 = vld [vmem:[#allocation8 + $0x38] sm:$0xff]  ;;  %v2351_v57 = vpack.c.bf16 %v957_v53, %v955_v50  ;;  %v959_v60 = vld [vmem:[#allocation8 + $0x20] sm:$0xff]  ;;  %v961_v63 = vld [vmem:[#allocation8 + $0x30] sm:$0xff]  ;;  %p2857_p7 = scmp.lt.s32.totalorder %s2855_s11, %s2849_s4 }
  0xb9   : > { %4663 = vst [vmem:[#allocation48_spill] sm:$0xff] %v3391_v45  ;;  %v2353_v59 = vpack.c.bf16 %v962_v56, %v960_v54  ;;  %v964_v0 = vld [vmem:[#allocation8 + $0x48] sm:$0xff]  ;;  %v966_v2 = vld [vmem:[#allocation8 + $0x58] sm:$0xff]  ;;  %v2355_v4 = vpack.c.bf16 %v961_v63, %v959_v60  ;;  %v963_v8 = vld [vmem:[#allocation8 + $0x40] sm:$0xff] }
  0xba   : > { %550 = vadd.xlane.f32.xlu1 %v3297_v40  ;;  %548 = vadd.xlane.f32.xlu0 %v3302_v43  ;;  %v2357_v6 = vpack.c.bf16 %v966_v2, %v964_v0  ;;  %v965_v12 = vld [vmem:[#allocation8 + $0x50] sm:$0xff]  ;;  %p2858_p3 = por %p2857_p7, %p2856_p4 }
  0xbb   : > { %2350 = vmatprep.subr.bf16.mxu0 %v2349_v51  ;;  %v2359_v13 = vpack.c.bf16 %v965_v12, %v963_v8  ;;  %v970_v8 = vld [vmem:[#allocation8 + $0x78] sm:$0xff] }
  0xbc   : > { %2352 = vmatpush1.bf16.msra.mxu0 %v2351_v57  ;;  %p2859_p5 = pnand %p2858_p3, %p2852_p10 }
  0xbd   : > { %2354 = vmatprep.subr.bf16.mxu0 %v2353_v59 }
  0xbe   : > { %554 = vadd.xlane.f32.xlu1 %v3307_v46  ;;  %552 = vadd.xlane.f32.xlu0 %v3312_v49 }
  0xc0   : > { %2356 = vmatpush1.bf16.msra.mxu0 %v2355_v4 }
  0xc1   : > { %2358 = vmatprep.subr.bf16.mxu0 %v2357_v6  ;;  %v968_v6 = vld [vmem:[#allocation8 + $0x68] sm:$0xff] }
  0xc2   : > { %558 = vadd.xlane.f32.xlu1 %v3317_v52  ;;  %556 = vadd.xlane.f32.xlu0 %v3322_v55  ;;  %v2361_v12 = vpack.c.bf16 %v970_v8, %v968_v6  ;;  %v978_v6 = vld [vmem:[#allocation8 + $0xb8] sm:$0xff] }
  0xc4   : > { %2360 = vmatpush1.bf16.msra.mxu0 %v2359_v13  ;;  %v967_v13 = vld [vmem:[#allocation8 + $0x60] sm:$0xff] }
  0xc5   : > { %2362 = vmatprep.subr.bf16.mxu0 %v2361_v12 }
  0xc6   : > { %562 = vadd.xlane.f32.xlu1 %v3327_v58  ;;  %560 = vadd.xlane.f32.xlu0 %v3332_v61 }
  0xca   : > { %564 = vadd.xlane.f32.xlu1 %v3335_v62 }
  0xce   : > { %566 = vadd.xlane.f32.xlu1 %v3341_v1 }
  0xd2   : > { %568 = vadd.xlane.f32.xlu1 %v3346_v5 }
  0xd6   : > { %570 = vadd.xlane.f32.xlu1 %v3351_v9 }
  0xda   : > { %572 = vadd.xlane.f32.xlu1 %v3356_v14 }
  0xde   : > { %574 = vadd.xlane.f32.xlu1 %v3361_v18 }
  0xe2   : > { %576 = vadd.xlane.f32.xlu1 %v3366_v23 }
  0xe6   : > { %578 = vadd.xlane.f32.xlu1 %v3371_v27 }
  0xea   : > { %580 = vadd.xlane.f32.xlu1 %v3376_v32 }
  0xee   : > { %582 = vadd.xlane.f32.xlu1 %v3381_v36 }
  0xf2   : > { %584 = vadd.xlane.f32.xlu1 %v3386_v41 }
  0xf6   : > { %586 = vadd.xlane.f32.xlu1 %v3391_v45 }
 0x12f   : > { %v529_v15 = vpop.xlane.xlu1 %528  ;;  %v525_v17 = vpop.xlane.xlu0 %524 }
 0x130   : > { %v589_v20 = vmul.f32 0.0078125, %v525_v17  ;;  %v591_v21 = vmul.f32 0.0078125, %v529_v15  ;;  %v969_v15 = vld [vmem:[#allocation8 + $0x70] sm:$0xff] }
 0x131   : > { %v2363_v17 = vpack.c.bf16 %v969_v15, %v967_v13  ;;  %v975_v15 = vld [vmem:[#allocation8 + $0xa0] sm:$0xff] }
 0x132   : > { %v3395_v24 = vsub.f32 %v3242_v7, %v589_v20  ;;  %v3400_v35 = vsub.f32 %v3237_v3, %v591_v21 }
 0x133   : > { %v531_v26 = vpop.xlane.xlu1 %530  ;;  %v527_v29 = vpop.xlane.xlu0 %526  ;;  %2364 = vmatpush1.bf16.msra.mxu0 %v2363_v17  ;;  %v977_v17 = vld [vmem:[#allocation8 + $0xb0] sm:$0xff] }
 0x134   : > { %v590_v30 = vmul.f32 0.0078125, %v527_v29  ;;  %v653_v33 = vmul.f32 %v3395_v24, %v3395_v24  ;;  %v592_v38 = vmul.f32 0.0078125, %v531_v26  ;;  %v655_v51 = vmul.f32 %v3400_v35, %v3400_v35 }
 0x136   : > { %v3403_v39 = vsub.f32 %v3250_v11, %v590_v30  ;;  %685 = vadd.xlane.f32.xlu0 %v653_v33  ;;  %v3408_v48 = vsub.f32 %v3247_v10, %v592_v38  ;;  %v972_v30 = vld [vmem:[#allocation8 + $0x88] sm:$0xff]  ;;  %v974_v33 = vld [vmem:[#allocation8 + $0x98] sm:$0xff] }
 0x137   : > { %v535_v42 = vpop.xlane.xlu1 %534  ;;  %v533_v44 = vpop.xlane.xlu0 %532 }
 0x138   : > { %v654_v47 = vmul.f32 %v3403_v39, %v3403_v39  ;;  %v593_v53 = vmul.f32 0.0078125, %v533_v44  ;;  %v594_v54 = vmul.f32 0.0078125, %v535_v42  ;;  %v656_v59 = vmul.f32 %v3408_v48, %v3408_v48 }
 0x139   : > { %v2365_v44 = vpack.c.bf16 %v974_v33, %v972_v30 }
 0x13a   : > { %687 = vadd.xlane.f32.xlu0 %v654_v47  ;;  %v3413_v57 = vsub.f32 %v3262_v19, %v593_v53  ;;  %v3418_v63 = vsub.f32 %v3257_v16, %v594_v54  ;;  %v971_v47 = vld [vmem:[#allocation8 + $0x80] sm:$0xff] }
 0x13b   : > { %v539_v50 = vpop.xlane.xlu1 %538  ;;  %v537_v60 = vpop.xlane.xlu0 %536  ;;  %2366 = vmatprep.subr.bf16.mxu0 %v2365_v44  ;;  %v980_v44 = vld [vmem:[#allocation8 + $0xc8] sm:$0xff] }
 0x13c   : > { %v657_v2 = vmul.f32 %v3413_v57, %v3413_v57  ;;  %v595_v4 = vmul.f32 0.0078125, %v537_v60  ;;  %v596_v20 = vmul.f32 0.0078125, %v539_v50  ;;  %v658_v29 = vmul.f32 %v3418_v63, %v3418_v63 }
 0x13e   : > { %689 = vadd.xlane.f32.xlu0 %v655_v51  ;;  %v3425_v26 = vsub.f32 %v3272_v25, %v595_v4  ;;  %v973_v51 = vld [vmem:[#allocation8 + $0x90] sm:$0xff]  ;;  %v3433_v50 = vsub.f32 %v3267_v22, %v596_v20  ;;  %v976_v4 = vld [vmem:[#allocation8 + $0xa8] sm:$0xff] }
 0x13f   : > { %v543_v56 = vpop.xlane.xlu1 %542  ;;  %v541_v42 = vpop.xlane.xlu0 %540  ;;  %v2367_v53 = vpack.c.bf16 %v973_v51, %v971_v47  ;;  %v2369_v13 = vpack.c.bf16 %v978_v6, %v976_v4  ;;  %v982_v47 = vld [vmem:[#allocation8 + $0xd8] sm:$0xff]  ;;  %v979_v4 = vld [vmem:[#allocation8 + $0xc0] sm:$0xff]  ;;  %v981_v6 = vld [vmem:[#allocation8 + $0xd0] sm:$0xff] }
 0x140   : > { %v659_v60 = vmul.f32 %v3425_v26, %v3425_v26  ;;  %v598_v30 = vmul.f32 0.0078125, %v543_v56 }
 0x141   : > { %2368 = vmatpush1.bf16.msra.mxu0 %v2367_v53 }
 0x142   : > { %691 = vadd.xlane.f32.xlu0 %v656_v59  ;;  %2370 = vmatprep.subr.bf16.mxu0 %v2369_v13 }
 0x143   : > { %v3420_v0 = vpop.xlane.xlu1 %546 }
 0x146   : > { %693 = vadd.xlane.f32.xlu0 %v657_v2  ;;  %v597_v2 = vmul.f32 0.0078125, %v541_v42  ;;  %v660_v42 = vmul.f32 %v3433_v50, %v3433_v50 }
 0x147   : > { %v551_v21 = vpop.xlane.xlu1 %550 }
 0x148   : > { %v602_v38 = vmul.f32 0.0078125, %v551_v21  ;;  %v2371_v21 = vpack.c.bf16 %v977_v17, %v975_v15  ;;  %v984_v17 = vld [vmem:[#allocation8 + $0xe8] sm:$0xff] }
 0x14a   : > { %v3430_v54 = vsub.f32 %v3297_v40, %v602_v38  ;;  %695 = vadd.xlane.f32.xlu0 %v658_v29  ;;  %v545_v29 = vpop.xlane.xlu0 %544  ;;  %v3443_v38 = vsub.f32 %v3282_v31, %v597_v2  ;;  %2372 = vmatpush1.bf16.msra.mxu0 %v2371_v21  ;;  %v3453_v2 = vsub.f32 %v3277_v28, %v598_v30  ;;  %v986_v21 = vld [vmem:[#allocation8 + $0xf8] sm:$0xff] }
 0x14b   : > { %v555_v59 = vpop.xlane.xlu1 %554  ;;  %v599_v15 = vmul.f32 0.0078125, %v545_v29 }
 0x14c   : > { %v604_v8 = vmul.f32 0.0078125, %v555_v59  ;;  %v666_v12 = vmul.f32 %v3430_v54, %v3430_v54  ;;  %v2373_v59 = vpack.c.bf16 %v982_v47, %v980_v44  ;;  %v661_v13 = vmul.f32 %v3443_v38, %v3443_v38 }
 0x14d   : > { %v2377_v47 = vpack.c.bf16 %v986_v21, %v984_v17  ;;  %v4580_v17 = vmov 0.0  }
 0x14e   : > { %v3440_v20 = vsub.f32 %v3307_v46, %v604_v8  ;;  %711 = vadd.xlane.f32.xlu1 %v666_v12  ;;  %697 = vadd.xlane.f32.xlu0 %v659_v60  ;;  %v2375_v8 = vpack.c.bf16 %v981_v6, %v979_v4  ;;  %v549_v60 = vpop.xlane.xlu0 %548  ;;  %v3464_v4 = vsub.f32 %v3292_v37, %v599_v15 }
 0x14f   : > { %v559_v33 = vpop.xlane.xlu1 %558  ;;  %2374 = vmatprep.subr.bf16.mxu0 %v2373_v59  ;;  %v662_v6 = vmul.f32 %v3453_v2, %v3453_v2  ;;  %1063 = vmatprep.mubr.f32.mxu0 %v4580_v17  ;;  %v601_v15 = vmul.f32 0.0078125, %v549_v60 }
 0x150   : > { %v606_v51 = vmul.f32 0.0078125, %v559_v33  ;;  %v668_v53 = vmul.f32 %v3440_v20, %v3440_v20  ;;  %2376 = vmatpush1.bf16.msra.mxu0 %v2375_v8 }
 0x151   : > { %2378 = vmatprep.subr.bf16.mxu0 %v2377_v47 }
 0x152   : > { %v3450_v56 = vsub.f32 %v3317_v52, %v606_v51  ;;  %715 = vadd.xlane.f32.xlu1 %v668_v53  ;;  %699 = vadd.xlane.f32.xlu0 %v660_v42  ;;  %v983_v51 = vld [vmem:[#allocation8 + $0xe0] sm:$0xff]  ;;  %v985_v53 = vld [vmem:[#allocation8 + $0xf0] sm:$0xff]  ;;  %v600_v42 = vmul.f32 0.0078125, %v3420_v0 }
 0x153   : > { %v563_v12 = vpop.xlane.xlu1 %562  ;;  %v2379_v59 = vpack.c.bf16 %v985_v53, %v983_v51  ;;  %v3480_v53 = vsub.f32 %v3302_v43, %v601_v15 }
 0x154   : > { %v608_v33 = vmul.f32 0.0078125, %v563_v12  ;;  %v670_v44 = vmul.f32 %v3450_v56, %v3450_v56  ;;  %v553_v12 = vpop.xlane.xlu0 %552  ;;  %v3472_v21 = vsub.f32 %v3287_v34, %v600_v42 }
 0x155   : > { %2380 = vmatpush1.bf16.msra.mxu0 %v2379_v59  ;;  %v603_v42 = vmul.f32 0.0078125, %v553_v12 }
 0x156   : > { %v3460_v30 = vsub.f32 %v3327_v58, %v608_v33  ;;  %719 = vadd.xlane.f32.xlu1 %v670_v44  ;;  %701 = vadd.xlane.f32.xlu0 %v661_v13  ;;  %v663_v13 = vmul.f32 %v3464_v4, %v3464_v4  ;;  %v664_v59 = vmul.f32 %v3472_v21, %v3472_v21 }
 0x157   : > { %v565_v29 = vpop.xlane.xlu1 %564 }
 0x158   : > { %v672_v8 = vmul.f32 %v3460_v30, %v3460_v30  ;;  %v557_v47 = vpop.xlane.xlu0 %556  ;;  %v609_v58 = vmul.f32 0.0078125, %v565_v29 }
 0x15a   : > { %723 = vadd.xlane.f32.xlu1 %v672_v8  ;;  %703 = vadd.xlane.f32.xlu0 %v662_v6  ;;  %v3487_v8 = vsub.f32 %v3312_v49, %v603_v42 }
 0x15b   : > { %v567_v0 = vpop.xlane.xlu1 %566 }
 0x15c   : > { %v610_v33 = vmul.f32 0.0078125, %v567_v0  ;;  %v665_v0 = vmul.f32 %v3480_v53, %v3480_v53  ;;  %v561_v15 = vpop.xlane.xlu0 %560 }
 0x15e   : > { %v3477_v44 = vsub.f32 %v3341_v1, %v610_v33  ;;  %705 = vadd.xlane.f32.xlu0 %v663_v13  ;;  %v605_v13 = vmul.f32 0.0078125, %v557_v47 }
 0x15f   : > { %v569_v51 = vpop.xlane.xlu1 %568 }
 0x160   : > { %v674_v6 = vmul.f32 %v3477_v44, %v3477_v44  ;;  %v3495_v1 = vsub.f32 %v3322_v55, %v605_v13 }
 0x162   : > { %727 = vadd.xlane.f32.xlu1 %v674_v6  ;;  %707 = vadd.xlane.f32.xlu0 %v664_v59  ;;  %v667_v59 = vmul.f32 %v3487_v8, %v3487_v8  ;;  %v607_v6 = vmul.f32 0.0078125, %v561_v15  ;;  %v611_v15 = vmul.f32 0.0078125, %v569_v51 }
 0x163   : > { %v571_v60 = vpop.xlane.xlu1 %570 }
 0x164   : > { %v612_v33 = vmul.f32 0.0078125, %v571_v60  ;;  %v3502_v60 = vsub.f32 %v3332_v61, %v607_v6  ;;  %v3517_v6 = vsub.f32 %v3346_v5, %v611_v15 }
 0x166   : > { %v3492_v17 = vsub.f32 %v3351_v9, %v612_v33  ;;  %709 = vadd.xlane.f32.xlu0 %v665_v0  ;;  %v669_v0 = vmul.f32 %v3495_v1, %v3495_v1  ;;  %v3510_v9 = vsub.f32 %v3335_v62, %v609_v58  ;;  %v671_v29 = vmul.f32 %v3502_v60, %v3502_v60 }
 0x167   : > { %v573_v12 = vpop.xlane.xlu1 %572  ;;  %v675_v15 = vmul.f32 %v3517_v6, %v3517_v6 }
 0x168   : > { %v676_v42 = vmul.f32 %v3492_v17, %v3492_v17  ;;  %v673_v58 = vmul.f32 %v3510_v9, %v3510_v9 }
 0x16a   : > { %731 = vadd.xlane.f32.xlu1 %v676_v42  ;;  %713 = vadd.xlane.f32.xlu0 %v667_v59  ;;  %v613_v42 = vmul.f32 0.0078125, %v573_v12 }
 0x16b   : > { %v575_v47 = vpop.xlane.xlu1 %574 }
 0x16c   : > { %v614_v33 = vmul.f32 0.0078125, %v575_v47 }
 0x16e   : > { %v3507_v13 = vsub.f32 %v3361_v18, %v614_v33  ;;  %717 = vadd.xlane.f32.xlu0 %v669_v0  ;;  %v3525_v0 = vsub.f32 %v3356_v14, %v613_v42 }
 0x16f   : > { %v577_v52 = vpop.xlane.xlu1 %576 }
 0x170   : > { %v678_v59 = vmul.f32 %v3507_v13, %v3507_v13  ;;  %v615_v18 = vmul.f32 0.0078125, %v577_v52  ;;  %v677_v42 = vmul.f32 %v3525_v0, %v3525_v0 }
 0x172   : > { %735 = vadd.xlane.f32.xlu1 %v678_v59  ;;  %721 = vadd.xlane.f32.xlu0 %v671_v29  ;;  %v3532_v29 = vsub.f32 %v3366_v23, %v615_v18 }
 0x173   : > { %v579_v47 = vpop.xlane.xlu1 %578 }
 0x174   : > { %v616_v33 = vmul.f32 0.0078125, %v579_v47 }
 0x176   : > { %v3522_v51 = vsub.f32 %v3371_v27, %v616_v33  ;;  %725 = vadd.xlane.f32.xlu0 %v673_v58 }
 0x177   : > { %v581_v62 = vpop.xlane.xlu1 %580 }
 0x178   : > { %v680_v12 = vmul.f32 %v3522_v51, %v3522_v51  ;;  %v617_v59 = vmul.f32 0.0078125, %v581_v62 }
 0x17a   : > { %739 = vadd.xlane.f32.xlu1 %v680_v12  ;;  %729 = vadd.xlane.f32.xlu0 %v675_v15  ;;  %v3540_v58 = vsub.f32 %v3376_v32, %v617_v59  ;;  %v679_v12 = vmul.f32 %v3532_v29, %v3532_v29 }
 0x17b   : > { %v583_v47 = vpop.xlane.xlu1 %582 }
 0x17c   : > { %v618_v33 = vmul.f32 0.0078125, %v583_v47 }
 0x17e   : > { %v3537_v52 = vsub.f32 %v3381_v36, %v618_v33  ;;  %733 = vadd.xlane.f32.xlu0 %v677_v42  ;;  %v681_v33 = vmul.f32 %v3540_v58, %v3540_v58 }
 0x17f   : > { %v585_v27 = vpop.xlane.xlu1 %584 }
 0x180   : > { %v619_v18 = vmul.f32 0.0078125, %v585_v27  ;;  %v682_v62 = vmul.f32 %v3537_v52, %v3537_v52 }
 0x182   : > { %743 = vadd.xlane.f32.xlu1 %v682_v62  ;;  %v3547_v15 = vsub.f32 %v3386_v41, %v619_v18  ;;  %737 = vadd.xlane.f32.xlu0 %v679_v12 }
 0x183   : > { %v587_v47 = vpop.xlane.xlu1 %586 }
 0x184   : > { %v620_v59 = vmul.f32 0.0078125, %v587_v47  ;;  %v683_v27 = vmul.f32 %v3547_v15, %v3547_v15 }
 0x186   : > { %v3552_v42 = vsub.f32 %v3391_v45, %v620_v59  ;;  %741 = vadd.xlane.f32.xlu0 %v681_v33 }
 0x188   : > { %v684_v36 = vmul.f32 %v3552_v42, %v3552_v42 }
 0x18a   : > { %747 = vadd.xlane.f32.xlu1 %v684_v36  ;;  %745 = vadd.xlane.f32.xlu0 %v683_v27  ;;  %v3561_v36 = vld [vmem:[%s4565_s2] ss:$0 sm:$0xff] }
 0x1c3   : > { %v686_v18 = vpop.xlane.xlu0 %685 }
 0x1c4   : > { %v749_v62 = vmul.f32 0.0078125, %v686_v18 }
 0x1c6   : > { %v781_v12 = vadd.f32 1e-05, %v749_v62  ;;  %v1833_v62 = vld [vmem:[#allocation9 + $0x8] sm:$0xff] }
 0x1c7   : > { %v688_v41 = vpop.xlane.xlu0 %687 }
 0x1c8   : > { %2541 = vrsqrt.f32 %v781_v12  ;;  %v750_v32 = vmul.f32 0.0078125, %v688_v41 }
 0x1ca   : > { %v782_v23 = vadd.f32 1e-05, %v750_v32 }
 0x1cb   : > { %v690_v47 = vpop.xlane.xlu0 %689 }
 0x1cc   : > { %2543 = vrsqrt.f32 %v782_v23  ;;  %v751_v59 = vmul.f32 0.0078125, %v690_v47  ;;  %v3567_v23 = vld [vmem:[%s4566_s3] ss:$0 sm:$0xff]  ;;  %v2938_v47 = vmov 0.0|0.0  }
 0x1cd   : > { %2381 = vmatprep.subr.bf16.mxu0 %v2938_v47  ;;  %2429 = vmatprep.subr.bf16.mxu1 %v2938_v47 }
 0x1ce   : > { %v783_v45 = vadd.f32 1e-05, %v751_v59 }
 0x1cf   : > { %v692_v33 = vpop.xlane.xlu0 %691 }
 0x1d0   : > { %2545 = vrsqrt.f32 %v783_v45  ;;  %v752_v14 = vmul.f32 0.0078125, %v692_v33  ;;  %v1832_v45 = vld [vmem:[#allocation9] sm:$0xff]  ;;  %v1834_v33 = vld [vmem:[#allocation9 + $0x10] sm:$0xff] }
 0x1d1   : > { %v2382_v59 = vpack.c.bf16 %v1833_v62, %v1832_v45  ;;  %v4664_v45 = vmov 0.0  }
 0x1d2   : > { %v2542_v5 = vpop.eup %2541  ;;  %v784_v61 = vadd.f32 1e-05, %v752_v14 }
 0x1d3   : > { %v694_v27 = vpop.xlane.xlu0 %693  ;;  %v845_v18 = vmul.f32 %v2542_v5, %v3395_v24  ;;  %2445 = vmatpush1.bf16.msra.mxu1 %v2382_v59 }
 0x1d4   : > { %2547 = vrsqrt.f32 %v784_v61  ;;  %v753_v41 = vmul.f32 0.0078125, %v694_v27  ;;  %v1835_v27 = vld [vmem:[#allocation9 + $0x18] sm:$0xff]  ;;  %2430 = vmatprep.subr.bf16.mxu1 %v2938_v47 }
 0x1d5   : > { %v884_v32 = vmul.f32 %v3561_v36, %v845_v18  ;;  %v2385_v62 = vpack.c.bf16 %v1835_v27, %v1834_v33 }
 0x1d6   : > { %v2544_v14 = vpop.eup %2543  ;;  %v785_v12 = vadd.f32 1e-05, %v753_v41 }
 0x1d7   : > { %v696_v5 = vpop.xlane.xlu0 %695  ;;  %v923_v61 = vadd.f32 %v3567_v23, %v884_v32  ;;  %v846_v24 = vmul.f32 %v2544_v14, %v3403_v39  ;;  %v1836_v14 = vld [vmem:[#allocation9 + $0x20] sm:$0xff]  ;;  %2446 = vmatpush1.bf16.msra.mxu1 %v2385_v62 }
 0x1d8   : > { %2549 = vrsqrt.f32 %v785_v12  ;;  %v754_v55 = vmul.f32 0.0078125, %v696_v5  ;;  %v1837_v12 = vld [vmem:[#allocation9 + $0x28] sm:$0xff]  ;;  %2431 = vmatprep.subr.bf16.mxu1 %v2938_v47 }
 0x1d9   : > { %1064 = vmatmul.mubr.f32.vlgmr.msra.gmra.mrb[0].mxu0 %v923_v61  ;;  %v885_v18 = vmul.f32 %v3561_v36, %v846_v24  ;;  %v2388_v24 = vpack.c.bf16 %v1837_v12, %v1836_v14 }
 0x1da   : > { %v2546_v41 = vpop.eup %2545  ;;  %v786_v46 = vadd.f32 1e-05, %v754_v55  ;;  %1069 = vmatprep.mubr.f32.mxu0 %v4664_v45  ;;  %2383 = vmatpush1.bf16.msra.mxu0 %v2382_v59 }
 0x1db   : > { %v698_v49 = vpop.xlane.xlu0 %697  ;;  %v924_v32 = vadd.f32 %v3567_v23, %v885_v18  ;;  %v847_v39 = vmul.f32 %v2546_v41, %v3400_v35  ;;  %2384 = vmatprep.subr.bf16.mxu0 %v2938_v47  ;;  %2447 = vmatpush1.bf16.msra.mxu1 %v2388_v24 }
 0x1dc   : > { %2551 = vrsqrt.f32 %v786_v46  ;;  %v755_v5 = vmul.f32 0.0078125, %v698_v49  ;;  %v1838_v46 = vld [vmem:[#allocation9 + $0x30] sm:$0xff]  ;;  %v1839_v49 = vld [vmem:[#allocation9 + $0x38] sm:$0xff]  ;;  %2432 = vmatprep.subr.bf16.mxu1 %v2938_v47 }
 0x1dd   : > { %1070 = vmatmul.mubr.f32.gmra.mrb[2].mxu0 %v924_v32  ;;  %v886_v61 = vmul.f32 %v3561_v36, %v847_v39  ;;  %v2391_v39 = vpack.c.bf16 %v1839_v49, %v1838_v46  ;;  %v1842_v49 = vld [vmem:[#allocation9 + $0x50] sm:$0xff] }
 0x1de   : > { %v2548_v55 = vpop.eup %2547  ;;  %v787_v59 = vadd.f32 1e-05, %v755_v5  ;;  %1075 = vmatprep.mubr.f32.mxu0 %v4664_v45  ;;  %2386 = vmatpush1.bf16.msra.mxu0 %v2385_v62  ;;  %v1840_v5 = vld [vmem:[#allocation9 + $0x40] sm:$0xff] }
 0x1df   : > { %v700_v33 = vpop.xlane.xlu0 %699  ;;  %v925_v35 = vadd.f32 %v3567_v23, %v886_v61  ;;  %v848_v27 = vmul.f32 %v2548_v55, %v3408_v48  ;;  %2387 = vmatprep.subr.bf16.mxu0 %v2938_v47  ;;  %v1841_v61 = vld [vmem:[#allocation9 + $0x48] sm:$0xff]  ;;  %2448 = vmatpush1.bf16.msra.mxu1 %v2391_v39 }
 0x1e0   : > { %2553 = vrsqrt.f32 %v787_v59  ;;  %v756_v18 = vmul.f32 0.0078125, %v700_v33  ;;  %2433 = vmatprep.subr.bf16.mxu1 %v2938_v47 }
 0x1e1   : > { %1076 = vmatmul.mubr.f32.gmra.mrb[4].mxu0 %v925_v35  ;;  %v887_v41 = vmul.f32 %v3561_v36, %v848_v27  ;;  %v2394_v35 = vpack.c.bf16 %v1841_v61, %v1840_v5  ;;  %v1844_v61 = vld [vmem:[#allocation9 + $0x60] sm:$0xff] }
 0x1e2   : > { %v2550_v32 = vpop.eup %2549  ;;  %v788_v62 = vadd.f32 1e-05, %v756_v18  ;;  %1081 = vmatprep.mubr.f32.mxu0 %v4664_v45  ;;  %2389 = vmatpush1.bf16.msra.mxu0 %v2388_v24  ;;  %v1843_v18 = vld [vmem:[#allocation9 + $0x58] sm:$0xff] }
 0x1e3   : > { %v702_v14 = vpop.xlane.xlu0 %701  ;;  %v926_v48 = vadd.f32 %v3567_v23, %v887_v41  ;;  %v849_v12 = vmul.f32 %v2550_v32, %v3413_v57  ;;  %2390 = vmatprep.subr.bf16.mxu0 %v2938_v47  ;;  %2449 = vmatpush1.bf16.msra.mxu1 %v2394_v35 }
 0x1e4   : > { %2555 = vrsqrt.f32 %v788_v62  ;;  %v757_v55 = vmul.f32 0.0078125, %v702_v14  ;;  %2434 = vmatprep.subr.bf16.mxu1 %v2938_v47  ;;  %v2397_v14 = vpack.c.bf16 %v1843_v18, %v1842_v49  ;;  %v1846_v18 = vld [vmem:[#allocation9 + $0x70] sm:$0xff] }
 0x1e5   : > { %1082 = vmatmul.mubr.f32.gmra.mrb[6].mxu0 %v926_v48  ;;  %v888_v59 = vmul.f32 %v3561_v36, %v849_v12  ;;  %v712_v48 = vpop.xlane.xlu1 %711 }
 0x1e6   : > { %v2552_v33 = vpop.eup %2551  ;;  %v789_v24 = vadd.f32 1e-05, %v757_v55  ;;  %1087 = vmatprep.mubr.f32.mxu0 %v4664_v45  ;;  %2392 = vmatpush1.bf16.msra.mxu0 %v2391_v39  ;;  %v1845_v55 = vld [vmem:[#allocation9 + $0x68] sm:$0xff] }
 0x1e7   : > { %v704_v27 = vpop.xlane.xlu0 %703  ;;  %v927_v57 = vadd.f32 %v3567_v23, %v888_v59  ;;  %v850_v46 = vmul.f32 %v2552_v33, %v3418_v63  ;;  %2393 = vmatprep.subr.bf16.mxu0 %v2938_v47  ;;  %2450 = vmatpush1.bf16.msra.mxu1 %v2397_v14 }
 0x1e8   : > { %2557 = vrsqrt.f32 %v789_v24  ;;  %v758_v41 = vmul.f32 0.0078125, %v704_v27  ;;  %2435 = vmatprep.subr.bf16.mxu1 %v2938_v47 }
 0x1e9   : > { %1088 = vmatmul.mubr.f32.gmra.mrb[8].mxu0 %v927_v57  ;;  %v889_v32 = vmul.f32 %v3561_v36, %v850_v46  ;;  %v2400_v57 = vpack.c.bf16 %v1845_v55, %v1844_v61 }
 0x1ea   : > { %v2554_v62 = vpop.eup %2553  ;;  %v790_v39 = vadd.f32 1e-05, %v758_v41  ;;  %1093 = vmatprep.mubr.f32.mxu0 %v4664_v45  ;;  %2395 = vmatpush1.bf16.msra.mxu0 %v2394_v35  ;;  %v762_v35 = vmul.f32 0.0078125, %v712_v48  ;;  %v1847_v41 = vld [vmem:[#allocation9 + $0x78] sm:$0xff] }
 0x1eb   : > { %v706_v63 = vpop.xlane.xlu0 %705  ;;  %v928_v12 = vadd.f32 %v3567_v23, %v889_v32  ;;  %v851_v5 = vmul.f32 %v2554_v62, %v3425_v26  ;;  %2396 = vmatprep.subr.bf16.mxu0 %v2938_v47  ;;  %2451 = vmatpush1.bf16.msra.mxu1 %v2400_v57 }
 0x1ec   : > { %2559 = vrsqrt.f32 %v790_v39  ;;  %v759_v59 = vmul.f32 0.0078125, %v706_v63  ;;  %2436 = vmatprep.subr.bf16.mxu1 %v2938_v47  ;;  %v2403_v63 = vpack.c.bf16 %v1847_v41, %v1846_v18 }
 0x1ed   : > { %1094 = vmatmul.mubr.f32.gmra.mrb[10].mxu0 %v928_v12  ;;  %v890_v33 = vmul.f32 %v3561_v36, %v851_v5 }
 0x1ee   : > { %v2556_v24 = vpop.eup %2555  ;;  %v791_v27 = vadd.f32 1e-05, %v759_v59  ;;  %1099 = vmatprep.mubr.f32.mxu0 %v4664_v45  ;;  %2398 = vmatpush1.bf16.msra.mxu0 %v2397_v14  ;;  %v794_v14 = vadd.f32 1e-05, %v762_v35 }
 0x1ef   : > { %v708_v26 = vpop.xlane.xlu0 %707  ;;  %v929_v46 = vadd.f32 %v3567_v23, %v890_v33  ;;  %v852_v49 = vmul.f32 %v2556_v24, %v3433_v50  ;;  %2399 = vmatprep.subr.bf16.mxu0 %v2938_v47  ;;  %v716_v50 = vpop.xlane.xlu1 %715  ;;  %2452 = vmatpush1.bf16.msra.mxu1 %v2403_v63 }
 0x1f0   : > { %2561 = vrsqrt.f32 %v791_v27  ;;  %v760_v32 = vmul.f32 0.0078125, %v708_v26  ;;  %2437 = vmatprep.subr.bf16.mxu1 %v2938_v47  ;;  %v764_v24 = vmul.f32 0.0078125, %v716_v50 }
 0x1f1   : > { %1100 = vmatmul.mubr.f32.gmra.mrb[12].mxu0 %v929_v46  ;;  %v891_v62 = vmul.f32 %v3561_v36, %v852_v49 }
 0x1f2   : > { %v2558_v39 = vpop.eup %2557  ;;  %v792_v48 = vadd.f32 1e-05, %v760_v32  ;;  %1105 = vmatprep.mubr.f32.mxu0 %v4664_v45  ;;  %2401 = vmatpush1.bf16.msra.mxu0 %v2400_v57  ;;  %v796_v18 = vadd.f32 1e-05, %v764_v24 }
 0x1f3   : > { %v710_v12 = vpop.xlane.xlu0 %709  ;;  %v930_v5 = vadd.f32 %v3567_v23, %v891_v62  ;;  %v853_v61 = vmul.f32 %v2558_v39, %v3443_v38  ;;  %2402 = vmatprep.subr.bf16.mxu0 %v2938_v47  ;;  %v720_v32 = vpop.xlane.xlu1 %719 }
 0x1f4   : > { %2563 = vrsqrt.f32 %v792_v48  ;;  %v761_v55 = vmul.f32 0.0078125, %v710_v12  ;;  %v766_v50 = vmul.f32 0.0078125, %v720_v32 }
 0x1f5   : > { %1106 = vmatmul.mubr.f32.gmra.mrb[14].mxu0 %v930_v5  ;;  %v892_v59 = vmul.f32 %v3561_v36, %v853_v61  ;;  %2565 = vrsqrt.f32 %v794_v14 }
 0x1f6   : > { %v2560_v33 = vpop.eup %2559  ;;  %v793_v35 = vadd.f32 1e-05, %v761_v55  ;;  %1111 = vmatprep.mubr.f32.mxu0 %v4664_v45  ;;  %2404 = vmatpush1.bf16.msra.mxu0 %v2403_v63  ;;  %v798_v24 = vadd.f32 1e-05, %v766_v50 }
 0x1f7   : > { %v714_v27 = vpop.xlane.xlu0 %713  ;;  %v931_v38 = vadd.f32 %v3567_v23, %v892_v59  ;;  %v854_v57 = vmul.f32 %v2560_v33, %v3453_v2  ;;  %2405 = vmatprep.subr.bf16.mxu0 %v2938_v47 }
 0x1f8   : > { %2567 = vrsqrt.f32 %v793_v35  ;;  %v763_v26 = vmul.f32 0.0078125, %v714_v27  ;;  %v724_v27 = vpop.xlane.xlu1 %723 }
 0x1f9   : > { %1112 = vmatmul.mubr.f32.gmra.mrb[16].mxu0 %v931_v38  ;;  %v893_v46 = vmul.f32 %v3561_v36, %v854_v57 }
 0x1fa   : > { %v2562_v49 = vpop.eup %2561  ;;  %v795_v41 = vadd.f32 1e-05, %v763_v26  ;;  %1117 = vmatprep.mubr.f32.mxu0 %v4664_v45 }
 0x1fb   : > { %v718_v62 = vpop.xlane.xlu0 %717  ;;  %v932_v39 = vadd.f32 %v3567_v23, %v893_v46  ;;  %v855_v14 = vmul.f32 %v2562_v49, %v3464_v4  ;;  %v768_v49 = vmul.f32 0.0078125, %v724_v27 }
 0x1fc   : > { %2569 = vrsqrt.f32 %v795_v41  ;;  %v765_v2 = vmul.f32 0.0078125, %v718_v62 }
 0x1fd   : > { %1118 = vmatmul.mubr.f32.gmra.mrb[18].mxu0 %v932_v39  ;;  %v894_v48 = vmul.f32 %v3561_v36, %v855_v14  ;;  %2571 = vrsqrt.f32 %v796_v18 }
 0x1fe   : > { %v2564_v63 = vpop.eup %2563  ;;  %v797_v12 = vadd.f32 1e-05, %v765_v2  ;;  %1123 = vmatprep.mubr.f32.mxu0 %v4664_v45  ;;  %v728_v2 = vpop.xlane.xlu1 %727 }
 0x1ff   : > { %v722_v5 = vpop.xlane.xlu0 %721  ;;  %v933_v61 = vadd.f32 %v3567_v23, %v894_v48  ;;  %v856_v55 = vmul.f32 %v2564_v63, %v3472_v21  ;;  %v2566_v59 = vpop.eup %2565 }
 0x200   : > { %2573 = vrsqrt.f32 %v797_v12  ;;  %v767_v35 = vmul.f32 0.0078125, %v722_v5  ;;  %v858_v26 = vmul.f32 %v2566_v59, %v3430_v54  ;;  %v770_v5 = vmul.f32 0.0078125, %v728_v2 }
 0x201   : > { %1124 = vmatmul.mubr.f32.gmra.mrb[20].mxu0 %v933_v61  ;;  %v895_v4 = vmul.f32 %v3561_v36, %v856_v55  ;;  %2575 = vrsqrt.f32 %v798_v24 }
 0x202   : > { %v2568_v33 = vpop.eup %2567  ;;  %1129 = vmatprep.mubr.f32.mxu0 %v4664_v45  ;;  %v799_v18 = vadd.f32 1e-05, %v767_v35  ;;  %v897_v62 = vmul.f32 %v3561_v36, %v858_v26  ;;  %v802_v24 = vadd.f32 1e-05, %v770_v5  ;;  %v732_v35 = vpop.xlane.xlu1 %731 }
 0x203   : > { %v934_v38 = vadd.f32 %v3567_v23, %v895_v4  ;;  %v857_v57 = vmul.f32 %v2568_v33, %v3480_v53  ;;  %v726_v41 = vpop.xlane.xlu0 %725  ;;  %v800_v53 = vadd.f32 1e-05, %v768_v49 }
 0x204   : > { %2577 = vrsqrt.f32 %v799_v18  ;;  %v769_v54 = vmul.f32 0.0078125, %v726_v41  ;;  %v936_v48 = vadd.f32 %v3567_v23, %v897_v62 }
 0x205   : > { %1130 = vmatmul.mubr.f32.gmra.mrb[22].mxu0 %v934_v38  ;;  %v896_v21 = vmul.f32 %v3561_v36, %v857_v57  ;;  %2579 = vrsqrt.f32 %v800_v53 }
 0x206   : > { %v2570_v46 = vpop.eup %2569  ;;  %1135 = vmatprep.mubr.f32.mxu0 %v4664_v45  ;;  %v801_v61 = vadd.f32 1e-05, %v769_v54 }
 0x207   : > { %v935_v32 = vadd.f32 %v3567_v23, %v896_v21  ;;  %v859_v39 = vmul.f32 %v2570_v46, %v3487_v8  ;;  %v2572_v14 = vpop.eup %2571  ;;  %v730_v8 = vpop.xlane.xlu0 %729  ;;  %v772_v21 = vmul.f32 0.0078125, %v732_v35 }
 0x208   : > { %v860_v50 = vmul.f32 %v2572_v14, %v3440_v20  ;;  %2581 = vrsqrt.f32 %v801_v61  ;;  %v771_v20 = vmul.f32 0.0078125, %v730_v8 }
 0x209   : > { %1136 = vmatmul.mubr.f32.gmra.mrb[24].mxu0 %v935_v32  ;;  %v898_v63 = vmul.f32 %v3561_v36, %v859_v39  ;;  %2583 = vrsqrt.f32 %v802_v24  ;;  %v804_v62 = vadd.f32 1e-05, %v772_v21  ;;  %v736_v39 = vpop.xlane.xlu1 %735 }
 0x20a   : > { %1141 = vmatprep.mubr.f32.mxu0 %v4664_v45  ;;  %v2574_v12 = vpop.eup %2573  ;;  %v899_v59 = vmul.f32 %v3561_v36, %v860_v50  ;;  %v803_v46 = vadd.f32 1e-05, %v771_v20 }
 0x20b   : > { %v937_v55 = vadd.f32 %v3567_v23, %v898_v63  ;;  %v861_v4 = vmul.f32 %v2574_v12, %v3495_v1  ;;  %v2576_v33 = vpop.eup %2575  ;;  %v734_v1 = vpop.xlane.xlu0 %733 }
 0x20c   : > { %v938_v27 = vadd.f32 %v3567_v23, %v899_v59  ;;  %v862_v57 = vmul.f32 %v2576_v33, %v3450_v56  ;;  %2585 = vrsqrt.f32 %v803_v46  ;;  %v773_v56 = vmul.f32 0.0078125, %v734_v1 }
 0x20d   : > { %1142 = vmatmul.mubr.f32.gmra.mrb[26].mxu0 %v936_v48  ;;  %v900_v38 = vmul.f32 %v3561_v36, %v861_v4  ;;  %2587 = vrsqrt.f32 %v804_v62  ;;  %v774_v48 = vmul.f32 0.0078125, %v736_v39 }
 0x20e   : > { %1147 = vmatprep.mubr.f32.mxu0 %v4664_v45  ;;  %v2578_v26 = vpop.eup %2577  ;;  %v901_v18 = vmul.f32 %v3561_v36, %v862_v57  ;;  %v805_v63 = vadd.f32 1e-05, %v773_v56 }
 0x20f   : > { %v939_v49 = vadd.f32 %v3567_v23, %v900_v38  ;;  %v863_v41 = vmul.f32 %v2578_v26, %v3502_v60  ;;  %v2580_v32 = vpop.eup %2579  ;;  %v738_v60 = vpop.xlane.xlu0 %737  ;;  %v806_v8 = vadd.f32 1e-05, %v774_v48 }
 0x210   : > { %v940_v14 = vadd.f32 %v3567_v23, %v901_v18  ;;  %v864_v54 = vmul.f32 %v2580_v32, %v3460_v30  ;;  %2589 = vrsqrt.f32 %v805_v63  ;;  %v775_v30 = vmul.f32 0.0078125, %v738_v60  ;;  %v1849_v18 = vld [vmem:[#allocation9 + $0x88] sm:$0xff] }
 0x211   : > { %1148 = vmatmul.mubr.f32.gmra.mrb[28].mxu0 %v937_v55  ;;  %v902_v53 = vmul.f32 %v3561_v36, %v863_v41  ;;  %v740_v55 = vpop.xlane.xlu1 %739  ;;  %2591 = vrsqrt.f32 %v806_v8  ;;  %v1853_v8 = vld [vmem:[#allocation9 + $0xa8] sm:$0xff] }
 0x212   : > { %1153 = vmatprep.mubr.f32.mxu0 %v4664_v45  ;;  %v2582_v2 = vpop.eup %2581  ;;  %v903_v12 = vmul.f32 %v3561_v36, %v864_v54  ;;  %v776_v35 = vmul.f32 0.0078125, %v740_v55  ;;  %v807_v20 = vadd.f32 1e-05, %v775_v30 }
 0x213   : > { %v941_v50 = vadd.f32 %v3567_v23, %v902_v53  ;;  %v865_v5 = vmul.f32 %v2582_v2, %v3510_v9  ;;  %v2584_v61 = vpop.eup %2583  ;;  %v1850_v53 = vld [vmem:[#allocation9 + $0x90] sm:$0xff] }
 0x214   : > { %v942_v59 = vadd.f32 %v3567_v23, %v903_v12  ;;  %v866_v33 = vmul.f32 %v2584_v61, %v3477_v44  ;;  %v808_v21 = vadd.f32 1e-05, %v776_v35  ;;  %2593 = vrsqrt.f32 %v807_v20  ;;  %v1852_v61 = vld [vmem:[#allocation9 + $0xa0] sm:$0xff]  ;;  %v1854_v35 = vld [vmem:[#allocation9 + $0xb0] sm:$0xff]  ;;  %v1855_v20 = vld [vmem:[#allocation9 + $0xb8] sm:$0xff] }
 0x215   : > { %1154 = vmatmul.mubr.f32.gmra.mrb[30].mxu0 %v938_v27  ;;  %v904_v4 = vmul.f32 %v3561_v36, %v865_v5  ;;  %v742_v27 = vpop.xlane.xlu0 %741  ;;  %v744_v46 = vpop.xlane.xlu1 %743 }
 0x216   : > { %1159 = vmatprep.mubr.f32.mxu0 %v4664_v45  ;;  %v2586_v24 = vpop.eup %2585  ;;  %v905_v57 = vmul.f32 %v3561_v36, %v866_v33  ;;  %v777_v44 = vmul.f32 0.0078125, %v742_v27  ;;  %2595 = vrsqrt.f32 %v808_v21  ;;  %v778_v56 = vmul.f32 0.0078125, %v744_v46  ;;  %v1856_v46 = vld [vmem:[#allocation9 + $0xc0] sm:$0xff] }
 0x217   : > { %v2588_v9 = vpop.eup %2587  ;;  %v943_v38 = vadd.f32 %v3567_v23, %v904_v4  ;;  %v867_v26 = vmul.f32 %v2586_v24, %v3517_v6 }
 0x218   : > { %v868_v1 = vmul.f32 %v2588_v9, %v3492_v17  ;;  %v944_v41 = vadd.f32 %v3567_v23, %v905_v57  ;;  %v809_v6 = vadd.f32 1e-05, %v777_v44  ;;  %v1851_v17 = vld [vmem:[#allocation9 + $0x98] sm:$0xff]  ;;  %v2415_v57 = vpack.c.bf16 %v1855_v20, %v1854_v35  ;;  %v1857_v44 = vld [vmem:[#allocation9 + $0xc8] sm:$0xff] }
 0x219   : > { %1160 = vmatmul.mubr.f32.gmra.mrb[32].mxu0 %v939_v49  ;;  %v1848_v49 = vld [vmem:[#allocation9 + $0x80] sm:$0xff]  ;;  %v906_v32 = vmul.f32 %v3561_v36, %v867_v26  ;;  %v746_v2 = vpop.xlane.xlu0 %745  ;;  %v2409_v60 = vpack.c.bf16 %v1851_v17, %v1850_v53  ;;  %v748_v55 = vpop.xlane.xlu1 %747  ;;  %v1861_v17 = vld [vmem:[#allocation9 + $0xe8] sm:$0xff] }
 0x21a   : > { %1165 = vmatprep.mubr.f32.mxu0 %v4664_v45  ;;  %v2406_v62 = vpack.c.bf16 %v1849_v18, %v1848_v49  ;;  %v2590_v39 = vpop.eup %2589  ;;  %2597 = vrsqrt.f32 %v809_v6  ;;  %v779_v12 = vmul.f32 0.0078125, %v746_v2  ;;  %v780_v33 = vmul.f32 0.0078125, %v748_v55  ;;  %v1860_v53 = vld [vmem:[#allocation9 + $0xe0] sm:$0xff] }
 0x21b   : > { %v2592_v54 = vpop.eup %2591  ;;  %v945_v48 = vadd.f32 %v3567_v23, %v906_v32  ;;  %v869_v63 = vmul.f32 %v2590_v39, %v3525_v0  ;;  %v2418_v49 = vpack.c.bf16 %v1857_v44, %v1856_v46  ;;  %v1859_v32 = vld [vmem:[#allocation9 + $0xd8] sm:$0xff] }
 0x21c   : > { %2453 = vmatpush1.bf16.msra.mxu1 %v2406_v62  ;;  %2407 = vmatpush1.bf16.msra.mxu0 %v2406_v62  ;;  %v870_v5 = vmul.f32 %v2592_v54, %v3507_v13  ;;  %v811_v24 = vadd.f32 1e-05, %v779_v12  ;;  %v812_v26 = vadd.f32 1e-05, %v780_v33 }
 0x21d   : > { %1166 = vmatmul.mubr.f32.gmra.mrb[34].mxu0 %v940_v14  ;;  %v907_v14 = vmul.f32 %v3561_v36, %v868_v1  ;;  %2408 = vmatprep.subr.bf16.mxu0 %v2938_v47  ;;  %v908_v30 = vmul.f32 %v3561_v36, %v869_v63 }
 0x21e   : > { %1171 = vmatprep.mubr.f32.mxu0 %v4664_v45  ;;  %2438 = vmatprep.subr.bf16.mxu1 %v2938_v47  ;;  %v2594_v4 = vpop.eup %2593  ;;  %v909_v13 = vmul.f32 %v3561_v36, %v870_v5 }
 0x21f   : > { %v946_v0 = vadd.f32 %v3567_v23, %v907_v14  ;;  %v947_v27 = vadd.f32 %v3567_v23, %v908_v30 }
 0x220   : > { %2454 = vmatpush1.bf16.msra.mxu1 %v2409_v60  ;;  %2410 = vmatpush1.bf16.msra.mxu0 %v2409_v60  ;;  %v2596_v9 = vpop.eup %2595  ;;  %v948_v1 = vadd.f32 %v3567_v23, %v909_v13  ;;  %v1863_v60 = vld [vmem:[#allocation9 + $0xf8] sm:$0xff] }
 0x221   : > { %1172 = vmatmul.mubr.f32.gmra.mrb[36].mxu0 %v941_v50  ;;  %v810_v50 = vadd.f32 1e-05, %v778_v56  ;;  %2411 = vmatprep.subr.bf16.mxu0 %v2938_v47  ;;  %v872_v21 = vmul.f32 %v2596_v9, %v3522_v51 }
 0x222   : > { %1177 = vmatprep.mubr.f32.mxu0 %v4664_v45  ;;  %2439 = vmatprep.subr.bf16.mxu1 %v2938_v47 }
 0x223   : > { %2599 = vrsqrt.f32 %v810_v50  ;;  %v911_v51 = vmul.f32 %v3561_v36, %v872_v21 }
 0x224   : > { %2601 = vrsqrt.f32 %v811_v24  ;;  %v2598_v18 = vpop.eup %2597 }
 0x225   : > { %1178 = vmatmul.mubr.f32.gmra.mrb[38].mxu0 %v942_v59  ;;  %v2412_v59 = vpack.c.bf16 %v1853_v8, %v1852_v61  ;;  %2603 = vrsqrt.f32 %v812_v26  ;;  %v873_v56 = vmul.f32 %v2598_v18, %v3540_v58  ;;  %v950_v54 = vadd.f32 %v3567_v23, %v911_v51 }
 0x226   : > { %1183 = vmatprep.mubr.f32.mxu0 %v4664_v45  ;;  %v2424_v58 = vpack.c.bf16 %v1861_v17, %v1860_v53 }
 0x227   : > { %2455 = vmatpush1.bf16.msra.mxu1 %v2412_v59  ;;  %2413 = vmatpush1.bf16.msra.mxu0 %v2412_v59  ;;  %v912_v2 = vmul.f32 %v3561_v36, %v873_v56  ;;  %v989_v59 = vlaneseq }
 0x228   : > { %2414 = vmatprep.subr.bf16.mxu0 %v2938_v47  ;;  %2440 = vmatprep.subr.bf16.mxu1 %v2938_v47 }
 0x229   : > { %1184 = vmatmul.mubr.f32.gmra.mrb[40].mxu0 %v943_v38  ;;  %v871_v38 = vmul.f32 %v2594_v4, %v3532_v29  ;;  %v951_v50 = vadd.f32 %v3567_v23, %v912_v2  ;;  %v990_v4 = vshrl.u32 %v989_v59, 7 }
 0x22a   : > { %1189 = vmatprep.mubr.f32.mxu0 %v4664_v45 }
 0x22b   : > { %2456 = vmatpush1.bf16.msra.mxu1 %v2415_v57  ;;  %2416 = vmatpush1.bf16.msra.mxu0 %v2415_v57  ;;  %v910_v29 = vmul.f32 %v3561_v36, %v871_v38  ;;  %v991_v33 = vsub.s32 0, %v990_v4  ;;  %v995_v24 = vsub.s32 1, %v990_v4 }
 0x22c   : > { %2417 = vmatprep.subr.bf16.mxu0 %v2938_v47  ;;  %2441 = vmatprep.subr.bf16.mxu1 %v2938_v47 }
 0x22d   : > { %1190 = vmatmul.mubr.f32.gmra.mrb[42].mxu0 %v944_v41  ;;  %v1858_v41 = vld [vmem:[#allocation9 + $0xd0] sm:$0xff]  ;;  %v2600_v62 = vpop.eup %2599  ;;  %v949_v39 = vadd.f32 %v3567_v23, %v910_v29 }
 0x22e   : > { %1195 = vmatprep.mubr.f32.mxu0 %v4664_v45  ;;  %v2421_v6 = vpack.c.bf16 %v1859_v32, %v1858_v41  ;;  %v874_v14 = vmul.f32 %v2600_v62, %v3537_v52  ;;  %v1862_v52 = vld [vmem:[#allocation9 + $0xf0] sm:$0xff] }
 0x22f   : > { %2457 = vmatpush1.bf16.msra.mxu1 %v2418_v49  ;;  %2419 = vmatpush1.bf16.msra.mxu0 %v2418_v49  ;;  %v2427_v5 = vpack.c.bf16 %v1863_v60, %v1862_v52 }
 0x230   : > { %2420 = vmatprep.subr.bf16.mxu0 %v2938_v47  ;;  %2442 = vmatprep.subr.bf16.mxu1 %v2938_v47  ;;  %v913_v63 = vmul.f32 %v3561_v36, %v874_v14 }
 0x231   : > { %1196 = vmatmul.mubr.f32.gmra.mrb[44].mxu0 %v945_v48  ;;  %v2602_v48 = vpop.eup %2601 }
 0x232   : > { %1201 = vmatprep.mubr.f32.mxu0 %v4664_v45  ;;  %v875_v12 = vmul.f32 %v2602_v48, %v3547_v15  ;;  %v2604_v61 = vpop.eup %2603  ;;  %v952_v8 = vadd.f32 %v3567_v23, %v913_v63 }
 0x233   : > { %2458 = vmatpush1.bf16.msra.mxu1 %v2421_v6  ;;  %2422 = vmatpush1.bf16.msra.mxu0 %v2421_v6 }
 0x234   : > { %2423 = vmatprep.subr.bf16.mxu0 %v2938_v47  ;;  %2443 = vmatprep.subr.bf16.mxu1 %v2938_v47  ;;  %v914_v55 = vmul.f32 %v3561_v36, %v875_v12 }
 0x235   : > { %1202 = vmatmul.mubr.f32.gmra.mrb[46].mxu0 %v946_v0  ;;  %v876_v0 = vmul.f32 %v2604_v61, %v3552_v42  ;;  %v987_v42 = vld [vmem:[%s4568_s5] sm:$0x3] }
 0x236   : > { %1207 = vmatprep.mubr.f32.mxu0 %v4664_v45  ;;  %v953_v15 = vadd.f32 %v3567_v23, %v914_v55  ;;  %v3730_v13 = vrot.slane %v987_v42, %v991_v33  ;;  %v3732_v35 = vrot.slane %v987_v42, %v995_v24 }
 0x237   : > { %2459 = vmatpush1.bf16.msra.mxu1 %v2424_v58  ;;  %2425 = vmatpush1.bf16.msra.mxu0 %v2424_v58  ;;  %v915_v30 = vmul.f32 %v3561_v36, %v876_v0 }
 0x238   : > { %2426 = vmatprep.subr.bf16.mxu0 %v2938_v47  ;;  %2444 = vmatprep.subr.bf16.mxu1 %v2938_v47 }
 0x239   : > { %1208 = vmatmul.mubr.f32.gmra.mrb[48].mxu0 %v947_v27  ;;  %v954_v47 = vadd.f32 %v3567_v23, %v915_v30 }
 0x23a   : > { %1213 = vmatprep.mubr.f32.mxu0 %v4664_v45 }
 0x23b   : > { %2460 = vmatpush1.bf16.msra.mxu1 %v2427_v5  ;;  %2428 = vmatpush1.bf16.msra.mxu0 %v2427_v5 }
 0x23d   : > { %1214 = vmatmul.mubr.f32.gmra.mrb[50].mxu0 %v948_v1 }
 0x23e   : > { %1219 = vmatprep.mubr.f32.mxu0 %v4664_v45 }
 0x241   : > { %1220 = vmatmul.mubr.f32.gmra.mrb[52].mxu0 %v949_v39 }
 0x242   : > { %1225 = vmatprep.mubr.f32.mxu0 %v4664_v45 }
 0x245   : > { %1226 = vmatmul.mubr.f32.gmra.mrb[54].mxu0 %v950_v54 }
 0x246   : > { %1231 = vmatprep.mubr.f32.mxu0 %v4664_v45 }
 0x249   : > { %1232 = vmatmul.mubr.f32.gmra.mrb[56].mxu0 %v951_v50 }
 0x24a   : > { %1237 = vmatprep.mubr.f32.mxu0 %v4664_v45 }
 0x24d   : > { %1238 = vmatmul.mubr.f32.gmra.mrb[58].mxu0 %v952_v8 }
 0x24e   : > { %1243 = vmatprep.mubr.f32.mxu0 %v4664_v45 }
 0x251   : > { %1244 = vmatmul.mubr.f32.gmra.mrb[60].mxu0 %v953_v15 }
 0x252   : > { %1249 = vmatprep.mubr.f32.mxu0 %v4664_v45 }
 0x255   : > { %1250 = vmatmul.mubr.f32.gmra.mrb[62].mxu0 %v954_v47 }
 0x2ac   : > { %v1065_v20 = vpop.f32.mrb[0].mxu0 }
 0x2ad   : > { %v3735_v36 = vadd.f32 %v1065_v20, %v3730_v13  ;;  %v1067_v45 = vpop.f32.mrb[1].mxu0 }
 0x2ae   : > { %v3738_v23 = vadd.f32 %v1067_v45, %v3732_v35 }
 0x2af   : > { %v1256_v9 = vmul.f32 %v3735_v36, %v3735_v36 }
 0x2b0   : > { %v1257_v27 = vmul.f32 %v3738_v23, %v3738_v23  ;;  %v1071_v38 = vpop.f32.mrb[2].mxu0 }
 0x2b1   : > { %v1320_v57 = vmul.f32 %v1256_v9, %v3735_v36  ;;  %v3746_v26 = vadd.f32 %v1071_v38, %v3730_v13  ;;  %v1073_v21 = vpop.f32.mrb[3].mxu0 }
 0x2b2   : > { %v1321_v46 = vmul.f32 %v1257_v27, %v3738_v23  ;;  %v3750_v44 = vadd.f32 %v1073_v21, %v3732_v35 }
 0x2b3   : > { %v1384_v1 = vmul.f32 0.044715, %v1320_v57  ;;  %v1258_v29 = vmul.f32 %v3746_v26, %v3746_v26 }
 0x2b4   : > { %v1385_v49 = vmul.f32 0.044715, %v1321_v46  ;;  %v1259_v18 = vmul.f32 %v3750_v44, %v3750_v44  ;;  %v1077_v51 = vpop.f32.mrb[4].mxu0 }
 0x2b5   : > { %v1448_v41 = vadd.f32 %v1384_v1, %v3735_v36  ;;  %v1322_v32 = vmul.f32 %v1258_v29, %v3746_v26  ;;  %v3759_v62 = vadd.f32 %v1077_v51, %v3730_v13  ;;  %v1079_v39 = vpop.f32.mrb[5].mxu0 }
 0x2b6   : > { %v1449_v56 = vadd.f32 %v1385_v49, %v3738_v23  ;;  %v1323_v6 = vmul.f32 %v1259_v18, %v3750_v44  ;;  %v3764_v14 = vadd.f32 %v1079_v39, %v3732_v35 }
 0x2b7   : > { %v1512_v53 = vmul.f32 0.7978846, %v1448_v41  ;;  %v1386_v17 = vmul.f32 0.044715, %v1322_v32  ;;  %v1260_v54 = vmul.f32 %v3759_v62, %v3759_v62 }
 0x2b8   : > { %v1513_v2 = vmul.f32 0.7978846, %v1449_v56  ;;  %v1387_v58 = vmul.f32 0.044715, %v1323_v6  ;;  %v1261_v48 = vmul.f32 %v3764_v14, %v3764_v14  ;;  %v1083_v63 = vpop.f32.mrb[6].mxu0 }
 0x2b9   : > { %2605 = vtanh.f32 %v1512_v53  ;;  %v1450_v52 = vadd.f32 %v1386_v17, %v3746_v26  ;;  %v1324_v60 = vmul.f32 %v1260_v54, %v3759_v62  ;;  %v3773_v50 = vadd.f32 %v1083_v63, %v3730_v13  ;;  %v1085_v12 = vpop.f32.mrb[7].mxu0 }
 0x2ba   : > { %v1451_v5 = vadd.f32 %v1387_v58, %v3750_v44  ;;  %v1325_v61 = vmul.f32 %v1261_v48, %v3764_v14  ;;  %v3778_v8 = vadd.f32 %v1085_v12, %v3732_v35  ;;  %2607 = vtanh.f32 %v1513_v2 }
 0x2bb   : > { %v1514_v55 = vmul.f32 0.7978846, %v1450_v52  ;;  %v1388_v0 = vmul.f32 0.044715, %v1324_v60  ;;  %v1262_v33 = vmul.f32 %v3773_v50, %v3773_v50 }
 0x2bc   : > { %v1515_v15 = vmul.f32 0.7978846, %v1451_v5  ;;  %v1389_v30 = vmul.f32 0.044715, %v1325_v61  ;;  %v1263_v47 = vmul.f32 %v3778_v8, %v3778_v8  ;;  %v1089_v59 = vpop.f32.mrb[8].mxu0 }
 0x2bd   : > { %v1452_v4 = vadd.f32 %v1388_v0, %v3759_v62  ;;  %v3786_v42 = vadd.f32 %v1089_v59, %v3730_v13  ;;  %v1091_v24 = vpop.f32.mrb[9].mxu0  ;;  %2609 = vtanh.f32 %v1514_v55  ;;  %v1326_v21 = vmul.f32 %v1262_v33, %v3773_v50 }
 0x2be   : > { %v1453_v20 = vadd.f32 %v1389_v30, %v3764_v14  ;;  %v1327_v45 = vmul.f32 %v1263_v47, %v3778_v8  ;;  %2611 = vtanh.f32 %v1515_v15  ;;  %v3798_v51 = vadd.f32 %v1091_v24, %v3732_v35 }
 0x2bf   : > { %v1516_v9 = vmul.f32 0.7978846, %v1452_v4  ;;  %v1264_v46 = vmul.f32 %v3786_v42, %v3786_v42  ;;  %v1390_v53 = vmul.f32 0.044715, %v1326_v21 }
 0x2c0   : > { %v1517_v27 = vmul.f32 0.7978846, %v1453_v20  ;;  %v1391_v38 = vmul.f32 0.044715, %v1327_v45  ;;  %v1095_v57 = vpop.f32.mrb[10].mxu0  ;;  %v1265_v60 = vmul.f32 %v3798_v51, %v3798_v51 }
 0x2c1   : > { %v3794_v1 = vadd.f32 %v1095_v57, %v3730_v13  ;;  %v1097_v29 = vpop.f32.mrb[11].mxu0  ;;  %v1328_v17 = vmul.f32 %v1264_v46, %v3786_v42  ;;  %v1454_v47 = vadd.f32 %v1390_v53, %v3773_v50 }
 0x2c2   : > { %v1455_v49 = vadd.f32 %v1391_v38, %v3778_v8  ;;  %2613 = vtanh.f32 %v1517_v27  ;;  %v3801_v41 = vadd.f32 %v1097_v29, %v3732_v35 }
 0x2c3   : > { %v2606_v18 = vpop.eup %2605  ;;  %2615 = vtanh.f32 %v1516_v9  ;;  %v1266_v54 = vmul.f32 %v3794_v1, %v3794_v1  ;;  %v1392_v59 = vmul.f32 0.044715, %v1328_v17 }
 0x2c4   : > { %v2608_v32 = vpop.eup %2607  ;;  %v1640_v39 = vadd.f32 1.0, %v2606_v18  ;;  %v1519_v56 = vmul.f32 0.7978846, %v1455_v49  ;;  %v1101_v6 = vpop.f32.mrb[12].mxu0  ;;  %v1267_v12 = vmul.f32 %v3801_v41, %v3801_v41  ;;  %v1518_v18 = vmul.f32 0.7978846, %v1454_v47 }
 0x2c5   : > { %v1103_v2 = vpop.f32.mrb[13].mxu0  ;;  %v1641_v58 = vadd.f32 1.0, %v2608_v32  ;;  %v3814_v55 = vadd.f32 %v1101_v6, %v3730_v13  ;;  %v1330_v4 = vmul.f32 %v1266_v54, %v3794_v1  ;;  %v1456_v32 = vadd.f32 %v1392_v59, %v3786_v42 }
 0x2c6   : > { %v1704_v48 = vmul.f32 0.5, %v1640_v39  ;;  %v3807_v63 = vadd.f32 %v1103_v2, %v3732_v35  ;;  %2617 = vtanh.f32 %v1519_v56  ;;  %v1331_v38 = vmul.f32 %v1267_v12, %v3801_v41 }
 0x2c7   : > { %v2610_v52 = vpop.eup %2609  ;;  %v1705_v5 = vmul.f32 0.5, %v1641_v58  ;;  %v1268_v46 = vmul.f32 %v3814_v55, %v3814_v55  ;;  %v1329_v39 = vmul.f32 %v1265_v60, %v3798_v51  ;;  %v1394_v6 = vmul.f32 0.044715, %v1330_v4 }
 0x2c8   : > { %v2612_v61 = vpop.eup %2611  ;;  %v1269_v0 = vmul.f32 %v3807_v63, %v3807_v63  ;;  %v1107_v15 = vpop.f32.mrb[14].mxu0  ;;  %v1642_v30 = vadd.f32 1.0, %v2610_v52  ;;  %v1768_v20 = vmul.f32 %v1704_v48, %v3735_v36  ;;  %v1395_v2 = vmul.f32 0.044715, %v1331_v38 }
 0x2c9   : > { %v1109_v33 = vpop.f32.mrb[15].mxu0  ;;  %v1769_v24 = vmul.f32 %v1705_v5, %v3738_v23  ;;  %v3823_v45 = vadd.f32 %v1107_v15, %v3730_v13  ;;  %v1643_v27 = vadd.f32 1.0, %v2612_v61  ;;  %v1332_v12 = vmul.f32 %v1268_v46, %v3814_v55 }
 0x2ca   : > { %v3826_v9 = vadd.f32 %v1109_v33, %v3732_v35  ;;  %v1706_v57 = vmul.f32 0.5, %v1642_v30  ;;  %v1333_v29 = vmul.f32 %v1269_v0, %v3807_v63  ;;  %v1520_v15 = vmul.f32 0.7978846, %v1456_v32 }
 0x2cb   : > { %1935 = vmatprep.mubr.f32.mxu0 %v1769_v24  ;;  %v1707_v36 = vmul.f32 0.5, %v1643_v27  ;;  %v1270_v53 = vmul.f32 %v3823_v45, %v3823_v45  ;;  %v1393_v59 = vmul.f32 0.044715, %v1329_v39  ;;  %v1458_v27 = vadd.f32 %v1394_v6, %v3794_v1 }
 0x2cc   : > { %v2614_v21 = vpop.eup %2613  ;;  %v1113_v23 = vpop.f32.mrb[16].mxu0  ;;  %1936 = vmatmul.mubr.f32.vlgmr.msra.gmra.mrb[64].mxu0 %v1768_v20  ;;  %v1271_v17 = vmul.f32 %v3826_v9, %v3826_v9  ;;  %v1770_v48 = vmul.f32 %v1706_v57, %v3746_v26  ;;  %v1397_v60 = vmul.f32 0.044715, %v1333_v29  ;;  %v1459_v38 = vadd.f32 %v1395_v2, %v3801_v41 }
 0x2cd   : > { %v2616_v49 = vpop.eup %2615  ;;  %v1115_v56 = vpop.f32.mrb[17].mxu0  ;;  %v1771_v54 = vmul.f32 %v1707_v36, %v3750_v44  ;;  %v3840_v58 = vadd.f32 %v1113_v23, %v3730_v13  ;;  %v1645_v52 = vadd.f32 1.0, %v2614_v21  ;;  %v1334_v26 = vmul.f32 %v1270_v53, %v3823_v45 }
 0x2ce   : > { %v3845_v5 = vadd.f32 %v1115_v56, %v3732_v35  ;;  %v1644_v0 = vadd.f32 1.0, %v2616_v49  ;;  %v1335_v33 = vmul.f32 %v1271_v17, %v3826_v9  ;;  %v1396_v46 = vmul.f32 0.044715, %v1332_v12 }
 0x2cf   : > { %1940 = vmatprep.mubr.f32.mxu0 %v1771_v54  ;;  %v1709_v47 = vmul.f32 0.5, %v1645_v52  ;;  %v1272_v57 = vmul.f32 %v3840_v58, %v3840_v58  ;;  %v1461_v29 = vadd.f32 %v1397_v60, %v3807_v63  ;;  %v1398_v53 = vmul.f32 0.044715, %v1334_v26 }
 0x2d0   : > { %v1119_v61 = vpop.f32.mrb[18].mxu0  ;;  %1941 = vmatmul.mubr.f32.gmra.mrb[66].mxu0 %v1770_v48  ;;  %v2618_v4 = vpop.eup %2617  ;;  %v1708_v20 = vmul.f32 0.5, %v1644_v0  ;;  %v1273_v23 = vmul.f32 %v3845_v5, %v3845_v5  ;;  %v1399_v17 = vmul.f32 0.044715, %v1335_v33  ;;  %2619 = vtanh.f32 %v1518_v18 }
 0x2d1   : > { %v3848_v30 = vadd.f32 %v1119_v61, %v3730_v13  ;;  %v1121_v44 = vpop.f32.mrb[19].mxu0  ;;  %v1773_v21 = vmul.f32 %v1709_v47, %v3764_v14  ;;  %v1647_v6 = vadd.f32 1.0, %v2618_v4  ;;  %v1336_v2 = vmul.f32 %v1272_v57, %v3840_v58 }
 0x2d2   : > { %v3853_v24 = vadd.f32 %v1121_v44, %v3732_v35  ;;  %v1772_v49 = vmul.f32 %v1708_v20, %v3759_v62  ;;  %v1522_v62 = vmul.f32 0.7978846, %v1458_v27  ;;  %v1460_v12 = vadd.f32 %v1396_v46, %v3814_v55 }
 0x2d3   : > { %v1274_v32 = vmul.f32 %v3848_v30, %v3848_v30  ;;  %1945 = vmatprep.mubr.f32.mxu0 %v1773_v21  ;;  %v1711_v52 = vmul.f32 0.5, %v1647_v6  ;;  %v1337_v60 = vmul.f32 %v1273_v23, %v3845_v5  ;;  %v1457_v44 = vadd.f32 %v1393_v59, %v3798_v51 }
 0x2d4   : > { %v1125_v36 = vpop.f32.mrb[20].mxu0  ;;  %v1275_v39 = vmul.f32 %v3853_v24, %v3853_v24  ;;  %1946 = vmatmul.mubr.f32.gmra.mrb[68].mxu0 %v1772_v49  ;;  %v1523_v47 = vmul.f32 0.7978846, %v1459_v38  ;;  %v1525_v20 = vmul.f32 0.7978846, %v1461_v29  ;;  %v1462_v27 = vadd.f32 %v1398_v53, %v3823_v45 }
 0x2d5   : > { %v3869_v56 = vadd.f32 %v1125_v36, %v3730_v13  ;;  %v1127_v14 = vpop.f32.mrb[21].mxu0  ;;  %v1338_v18 = vmul.f32 %v1274_v32, %v3848_v30  ;;  %v1775_v26 = vmul.f32 %v1711_v52, %v3778_v8  ;;  %v1463_v57 = vadd.f32 %v1399_v17, %v3826_v9 }
 0x2d6   : > { %v3872_v54 = vadd.f32 %v1127_v14, %v3732_v35  ;;  %v1339_v4 = vmul.f32 %v1275_v39, %v3853_v24  ;;  %v1521_v21 = vmul.f32 0.7978846, %v1457_v44  ;;  %v1400_v46 = vmul.f32 0.044715, %v1336_v2 }
 0x2d7   : > { %v1276_v48 = vmul.f32 %v3869_v56, %v3869_v56  ;;  %1950 = vmatprep.mubr.f32.mxu0 %v1775_v26  ;;  %2621 = vtanh.f32 %v1520_v15  ;;  %v1524_v38 = vmul.f32 0.7978846, %v1460_v12  ;;  %v1401_v36 = vmul.f32 0.044715, %v1337_v60 }
 0x2d8   : > { %v1277_v61 = vmul.f32 %v3872_v54, %v3872_v54  ;;  %v1131_v0 = vpop.f32.mrb[22].mxu0  ;;  %2623 = vtanh.f32 %v1521_v21  ;;  %v1402_v29 = vmul.f32 0.044715, %v1338_v18  ;;  %v1403_v32 = vmul.f32 0.044715, %v1339_v4 }
 0x2d9   : > { %v1133_v33 = vpop.f32.mrb[23].mxu0  ;;  %v1340_v23 = vmul.f32 %v1276_v48, %v3869_v56  ;;  %v3889_v59 = vadd.f32 %v1131_v0, %v3730_v13  ;;  %2625 = vtanh.f32 %v1523_v47  ;;  %v1526_v14 = vmul.f32 0.7978846, %v1462_v27 }
 0x2da   : > { %v1341_v49 = vmul.f32 %v1277_v61, %v3872_v54  ;;  %v1527_v6 = vmul.f32 0.7978846, %v1463_v57  ;;  %v3893_v53 = vadd.f32 %v1133_v33, %v3732_v35  ;;  %2627 = vtanh.f32 %v1522_v62  ;;  %v2620_v48 = vpop.eup %2619 }
 0x2db   : > { %v1464_v17 = vadd.f32 %v1400_v46, %v3840_v58  ;;  %v1404_v2 = vmul.f32 0.044715, %v1340_v23  ;;  %v1278_v15 = vmul.f32 %v3889_v59, %v3889_v59  ;;  %2629 = vtanh.f32 %v1525_v20 }
 0x2dc   : > { %v1137_v8 = vpop.f32.mrb[24].mxu0  ;;  %v1465_v52 = vadd.f32 %v1401_v36, %v3845_v5  ;;  %v1405_v12 = vmul.f32 0.044715, %v1341_v49  ;;  %2631 = vtanh.f32 %v1524_v38  ;;  %v1466_v0 = vadd.f32 %v1402_v29, %v3848_v30 }
 0x2dd   : > { %v1139_v39 = vpop.f32.mrb[25].mxu0  ;;  %v3900_v60 = vadd.f32 %v1137_v8, %v3730_v13  ;;  %v1467_v62 = vadd.f32 %v1403_v32, %v3853_v24  ;;  %v1646_v44 = vadd.f32 1.0, %v2620_v48  ;;  %v1279_v4 = vmul.f32 %v3893_v53, %v3893_v53 }
 0x2de   : > { %v3905_v47 = vadd.f32 %v1139_v39, %v3732_v35  ;;  %2633 = vtanh.f32 %v1527_v6  ;;  %v3912_v33 = vmul.f32 0.7978846, %v1464_v17  ;;  %v1468_v20 = vadd.f32 %v1404_v2, %v3869_v56 }
 0x2df   : > { %v1342_v27 = vmul.f32 %v1278_v15, %v3889_v59  ;;  %v1710_v57 = vmul.f32 0.5, %v1646_v44  ;;  %v3916_v21 = vmul.f32 0.7978846, %v1465_v52  ;;  %v1469_v46 = vadd.f32 %v1405_v12, %v3872_v54 }
 0x2e0   : > { %v1143_v61 = vpop.f32.mrb[26].mxu0  ;;  %v1280_v23 = vmul.f32 %v3900_v60, %v3900_v60  ;;  %2635 = vtanh.f32 %v1526_v14  ;;  %v3921_v49 = vmul.f32 0.7978846, %v1466_v0  ;;  %v3923_v8 = vmul.f32 0.7978846, %v1467_v62 }
 0x2e1   : > { %v1145_v18 = vpop.f32.mrb[27].mxu0  ;;  %v3910_v26 = vadd.f32 %v1143_v61, %v3730_v13  ;;  %v2622_v36 = vpop.eup %2621  ;;  %v1774_v29 = vmul.f32 %v1710_v57, %v3773_v50  ;;  %v1281_v32 = vmul.f32 %v3905_v47, %v3905_v47  ;;  %v1343_v17 = vmul.f32 %v1279_v4, %v3893_v53 }
 0x2e2   : > { %v2624_v6 = vpop.eup %2623  ;;  %v1648_v2 = vadd.f32 1.0, %v2622_v36  ;;  %v3932_v14 = vadd.f32 %v1145_v18, %v3732_v35  ;;  %v3934_v52 = vmul.f32 0.7978846, %v1468_v20  ;;  %v1406_v12 = vmul.f32 0.044715, %v1342_v27 }
 0x2e3   : > { %v1282_v15 = vmul.f32 %v3910_v26, %v3910_v26  ;;  %v2626_v48 = vpop.eup %2625  ;;  %1951 = vmatmul.mubr.f32.gmra.mrb[70].mxu0 %v1774_v29  ;;  %v1649_v50 = vadd.f32 1.0, %v2624_v6  ;;  %v3939_v62 = vmul.f32 0.7978846, %v1469_v46  ;;  %v1344_v44 = vmul.f32 %v1280_v23, %v3900_v60 }
 0x2e4   : > { %v1149_v38 = vpop.f32.mrb[28].mxu0  ;;  %v2628_v0 = vpop.eup %2627  ;;  %v1712_v4 = vmul.f32 0.5, %v1648_v2  ;;  %v1651_v57 = vadd.f32 1.0, %v2626_v48  ;;  %v1345_v18 = vmul.f32 %v1281_v32, %v3905_v47  ;;  %v1283_v46 = vmul.f32 %v3932_v14, %v3932_v14 }
 0x2e5   : > { %v1151_v39 = vpop.f32.mrb[29].mxu0  ;;  %v3937_v61 = vadd.f32 %v1149_v38, %v3730_v13  ;;  %v2630_v36 = vpop.eup %2629  ;;  %v1713_v40 = vmul.f32 0.5, %v1649_v50  ;;  %v1650_v43 = vadd.f32 1.0, %v2628_v0  ;;  %v1346_v38 = vmul.f32 %v1282_v15, %v3910_v26 }
 0x2e6   : > { %v3944_v20 = vadd.f32 %v1151_v39, %v3732_v35  ;;  %v2632_v29 = vpop.eup %2631  ;;  %v1715_v6 = vmul.f32 0.5, %v1651_v57  ;;  %v1653_v34 = vadd.f32 1.0, %v2630_v36  ;;  %v1407_v2 = vmul.f32 0.044715, %v1343_v17 }
 0x2e7   : > { %v1777_v48 = vmul.f32 %v1713_v40, %v3798_v51  ;;  %v1714_v50 = vmul.f32 0.5, %v1650_v43  ;;  %v1284_v32 = vmul.f32 %v3937_v61, %v3937_v61  ;;  %v1776_v39 = vmul.f32 %v1712_v4, %v3786_v42 }
 0x2e8   : > { %v1155_v27 = vpop.f32.mrb[30].mxu0  ;;  %v2634_v0 = vpop.eup %2633  ;;  %v1779_v37 = vmul.f32 %v1715_v6, %v3801_v41  ;;  %v1717_v57 = vmul.f32 0.5, %v1653_v34  ;;  %v1652_v28 = vadd.f32 1.0, %v2632_v29  ;;  %v1408_v31 = vmul.f32 0.044715, %v1344_v44 }
 0x2e9   : > { %v1157_v23 = vpop.f32.mrb[31].mxu0  ;;  %1955 = vmatprep.mubr.f32.mxu1 %v1777_v48  ;;  %v1409_v22 = vmul.f32 0.044715, %v1345_v18  ;;  %v1285_v17 = vmul.f32 %v3944_v20, %v3944_v20  ;;  %v1655_v36 = vadd.f32 1.0, %v2634_v0  ;;  %v1410_v51 = vmul.f32 0.044715, %v1346_v38 }
 0x2ea   : > { %v2636_v43 = vpop.eup %2635  ;;  %1956 = vmatmul.mubr.f32.vlgmr.msra.gmra.mrb[0].mxu1 %v1776_v39  ;;  %v1347_v25 = vmul.f32 %v1283_v46, %v3932_v14  ;;  %v3958_v42 = vadd.f32 %v1155_v27, %v3730_v13  ;;  %v3961_v34 = vadd.f32 %v1157_v23, %v3732_v35  ;;  %v1778_v41 = vmul.f32 %v1714_v50, %v3794_v1 }
 0x2eb   : > { %1960 = vmatprep.mubr.f32.mxu1 %v1779_v37  ;;  %v1781_v44 = vmul.f32 %v1717_v57, %v3807_v63  ;;  %v1348_v4 = vmul.f32 %v1284_v32, %v3937_v61  ;;  %v1719_v18 = vmul.f32 0.5, %v1655_v36  ;;  %v1716_v29 = vmul.f32 0.5, %v1652_v28 }
 0x2ec   : > { %v1161_v15 = vpop.f32.mrb[32].mxu0  ;;  %v1349_v6 = vmul.f32 %v1285_v17, %v3944_v20  ;;  %v1654_v38 = vadd.f32 1.0, %v2636_v43  ;;  %2637 = vtanh.f32 %v3916_v21  ;;  %v1470_v27 = vadd.f32 %v1406_v12, %v3889_v59 }
 0x2ed   : > { %v1163_v40 = vpop.f32.mrb[33].mxu0  ;;  %v1471_v23 = vadd.f32 %v1407_v2, %v3893_v53  ;;  %v1286_v37 = vmul.f32 %v3958_v42, %v3958_v42  ;;  %v1287_v1 = vmul.f32 %v3961_v34, %v3961_v34  ;;  %v1472_v48 = vadd.f32 %v1408_v31, %v3900_v60 }
 0x2ee   : > { %v1473_v28 = vadd.f32 %v1409_v22, %v3905_v47  ;;  %1961 = vmatmul.mubr.f32.gmra.mrb[2].mxu1 %v1778_v41  ;;  %v3977_v50 = vadd.f32 %v1161_v15, %v3730_v13  ;;  %2639 = vtanh.f32 %v3912_v33  ;;  %v1474_v21 = vadd.f32 %v1410_v51, %v3910_v26 }
 0x2ef   : > { %v1411_v12 = vmul.f32 0.044715, %v1347_v25  ;;  %1965 = vmatprep.mubr.f32.mxu1 %v1781_v44  ;;  %v1783_v2 = vmul.f32 %v1719_v18, %v3826_v9  ;;  %2641 = vtanh.f32 %v3923_v8  ;;  %v1412_v32 = vmul.f32 0.044715, %v1348_v4 }
 0x2f0   : > { %v1167_v46 = vpop.f32.mrb[34].mxu0  ;;  %v1780_v0 = vmul.f32 %v1716_v29, %v3814_v55  ;;  %v1413_v31 = vmul.f32 0.044715, %v1349_v6  ;;  %v1718_v39 = vmul.f32 0.5, %v1654_v38  ;;  %v3984_v57 = vmul.f32 0.7978846, %v1470_v27 }
 0x2f1   : > { %v1169_v63 = vpop.f32.mrb[35].mxu0  ;;  %v1350_v15 = vmul.f32 %v1286_v37, %v3958_v42  ;;  %v1351_v33 = vmul.f32 %v1287_v1, %v3961_v34  ;;  %2643 = vtanh.f32 %v3921_v49  ;;  %v1535_v17 = vmul.f32 0.7978846, %v1471_v23 }
 0x2f2   : > { %v3989_v36 = vmul.f32 0.7978846, %v1472_v48  ;;  %1966 = vmatmul.mubr.f32.gmra.mrb[4].mxu1 %v1780_v0  ;;  %v1288_v9 = vmul.f32 %v3977_v50, %v3977_v50  ;;  %v3994_v55 = vadd.f32 %v1163_v40, %v3732_v35  ;;  %v3996_v8 = vmul.f32 0.7978846, %v1473_v28 }
 0x2f3   : > { %v1475_v43 = vadd.f32 %v1411_v12, %v3932_v14  ;;  %1970 = vmatprep.mubr.f32.mxu1 %v1783_v2  ;;  %v4000_v51 = vadd.f32 %v1167_v46, %v3730_v13  ;;  %2645 = vtanh.f32 %v3939_v62  ;;  %v4003_v49 = vmul.f32 0.7978846, %v1474_v21 }
 0x2f4   : > { %v1173_v22 = vpop.f32.mrb[36].mxu0  ;;  %v1476_v41 = vadd.f32 %v1412_v32, %v3937_v61  ;;  %v1477_v44 = vadd.f32 %v1413_v31, %v3944_v20  ;;  %v1782_v4 = vmul.f32 %v1718_v39, %v3823_v45  ;;  %v1414_v40 = vmul.f32 0.044715, %v1350_v15 }
 0x2f5   : > { %v1175_v25 = vpop.f32.mrb[37].mxu0  ;;  %v1415_v18 = vmul.f32 0.044715, %v1351_v33  ;;  %2647 = vtanh.f32 %v3934_v52  ;;  %v1352_v38 = vmul.f32 %v1288_v9, %v3977_v50  ;;  %v1289_v62 = vmul.f32 %v3994_v55, %v3994_v55 }
 0x2f6   : > { %v2638_v6 = vpop.eup %2637  ;;  %1971 = vmatmul.mubr.f32.gmra.mrb[6].mxu1 %v1782_v4  ;;  %v4013_v46 = vadd.f32 %v1169_v63, %v3732_v35  ;;  %2649 = vtanh.f32 %v1535_v17  ;;  %v4015_v23 = vmul.f32 0.7978846, %v1475_v43  ;;  %v1290_v37 = vmul.f32 %v4000_v51, %v4000_v51 }
 0x2f7   : > { %v1657_v45 = vadd.f32 1.0, %v2638_v6  ;;  %v4020_v52 = vadd.f32 %v1173_v22, %v3730_v13  ;;  %v4022_v48 = vmul.f32 0.7978846, %v1476_v41  ;;  %v4024_v28 = vmul.f32 0.7978846, %v1477_v44 }
 0x2f8   : > { %v1179_v29 = vpop.f32.mrb[38].mxu0  ;;  %v2640_v1 = vpop.eup %2639  ;;  %v4027_v21 = vadd.f32 %v1175_v25, %v3732_v35  ;;  %v4033_v32 = vadd.f32 %v1414_v40, %v3958_v42  ;;  %v1479_v0 = vadd.f32 %v1415_v18, %v3961_v34  ;;  %v1416_v15 = vmul.f32 0.044715, %v1352_v38 }
 0x2f9   : > { %v1181_v27 = vpop.f32.mrb[39].mxu0  ;;  %v4030_v63 = vadd.f32 %v1179_v29, %v3730_v13  ;;  %v2642_v2 = vpop.eup %2641  ;;  %v1721_v31 = vmul.f32 0.5, %v1657_v45  ;;  %v1656_v39 = vadd.f32 1.0, %v2640_v1  ;;  %v1353_v33 = vmul.f32 %v1289_v62, %v3994_v55 }
 0x2fa   : > { %v1659_v17 = vadd.f32 1.0, %v2642_v2  ;;  %v1291_v25 = vmul.f32 %v4013_v46, %v4013_v46  ;;  %v1354_v44 = vmul.f32 %v1290_v37, %v4000_v51  ;;  %v1292_v4 = vmul.f32 %v4020_v52, %v4020_v52 }
 0x2fb   : > { %v2644_v9 = vpop.eup %2643  ;;  %v1785_v43 = vmul.f32 %v1721_v31, %v3845_v5  ;;  %v1720_v41 = vmul.f32 0.5, %v1656_v39  ;;  %v1293_v29 = vmul.f32 %v4027_v21, %v4027_v21  ;;  %v1294_v6 = vmul.f32 %v4030_v63, %v4030_v63 }
 0x2fc   : > { %v1185_v12 = vpop.f32.mrb[40].mxu0  ;;  %v1723_v40 = vmul.f32 0.5, %v1659_v17  ;;  %v1658_v18 = vadd.f32 1.0, %v2644_v9  ;;  %v4051_v45 = vmul.f32 0.7978846, %v1479_v0  ;;  %2651 = vtanh.f32 %v3984_v57 }
 0x2fd   : > { %v4036_v22 = vpop.f32.mrb[41].mxu0  ;;  %v2646_v62 = vpop.eup %2645  ;;  %1975 = vmatprep.mubr.f32.mxu1 %v1785_v43  ;;  %v1784_v5 = vmul.f32 %v1720_v41, %v3840_v58  ;;  %v4056_v37 = vadd.f32 %v1181_v27, %v3732_v35  ;;  %v1417_v2 = vmul.f32 0.044715, %v1353_v33  ;;  %v1418_v16 = vmul.f32 0.044715, %v1354_v44 }
 0x2fe   : > { %v1787_v31 = vmul.f32 %v1723_v40, %v3853_v24  ;;  %v1722_v39 = vmul.f32 0.5, %v1658_v18  ;;  %v1661_v17 = vadd.f32 1.0, %v2646_v62  ;;  %v1355_v0 = vmul.f32 %v1291_v25, %v4013_v46 }
 0x2ff   : > { %v2648_v9 = vpop.eup %2647  ;;  %1976 = vmatmul.mubr.f32.gmra.mrb[8].mxu1 %v1784_v5  ;;  %v1356_v43 = vmul.f32 %v1292_v4, %v4020_v52  ;;  %2653 = vtanh.f32 %v3996_v8  ;;  %v1357_v41 = vmul.f32 %v1293_v29, %v4027_v21  ;;  %v1358_v33 = vmul.f32 %v1294_v6, %v4030_v63 }
 0x300   : > { %v4049_v38 = vpop.f32.mrb[42].mxu0  ;;  %v2650_v58 = vpop.eup %2649  ;;  %1980 = vmatprep.mubr.f32.mxu1 %v1787_v31  ;;  %v1725_v57 = vmul.f32 0.5, %v1661_v17  ;;  %v1660_v27 = vadd.f32 1.0, %v2648_v9  ;;  %v1480_v40 = vadd.f32 %v1416_v15, %v3977_v50  ;;  %v1786_v18 = vmul.f32 %v1722_v39, %v3848_v30 }
 0x301   : > { %v4058_v1 = vpop.f32.mrb[43].mxu0  ;;  %v1663_v44 = vadd.f32 1.0, %v2650_v58  ;;  %v1295_v25 = vmul.f32 %v4056_v37, %v4056_v37  ;;  %v4072_v5 = vadd.f32 %v1185_v12, %v3730_v13  ;;  %2655 = vtanh.f32 %v3989_v36 }
 0x302   : > { %v1789_v8 = vmul.f32 %v1725_v57, %v3872_v54  ;;  %v1724_v62 = vmul.f32 0.5, %v1660_v27  ;;  %v1481_v29 = vadd.f32 %v1417_v2, %v3994_v55  ;;  %v1419_v6 = vmul.f32 0.044715, %v1355_v0 }
 0x303   : > { %1981 = vmatmul.mubr.f32.gmra.mrb[10].mxu1 %v1786_v18  ;;  %v1420_v15 = vmul.f32 0.044715, %v1356_v43  ;;  %v1727_v31 = vmul.f32 0.5, %v1663_v44  ;;  %v1482_v30 = vadd.f32 %v1418_v16, %v4000_v51  ;;  %v1421_v39 = vmul.f32 0.044715, %v1357_v41 }
 0x304   : > { %v1197_v24 = vpop.f32.mrb[44].mxu0  ;;  %1985 = vmatprep.mubr.f32.mxu1 %v1789_v8  ;;  %v1422_v17 = vmul.f32 0.044715, %v1358_v33  ;;  %2657 = vtanh.f32 %v4015_v23  ;;  %v1788_v9 = vmul.f32 %v1724_v62, %v3869_v56  ;;  %v1359_v36 = vmul.f32 %v1295_v25, %v4056_v37 }
 0x305   : > { %v1199_v4 = vpop.f32.mrb[45].mxu0  ;;  %v1791_v12 = vmul.f32 %v1727_v31, %v3893_v53  ;;  %2659 = vtanh.f32 %v4003_v49  ;;  %v1542_v0 = vmul.f32 0.7978846, %v4033_v32  ;;  %v1296_v16 = vmul.f32 %v4072_v5, %v4072_v5 }
 0x306   : > { %2661 = vtanh.f32 %v4024_v28  ;;  %v2652_v43 = vpop.eup %2651  ;;  %v4086_v58 = vmul.f32 0.7978846, %v1480_v40  ;;  %v1483_v23 = vadd.f32 %v1419_v6, %v4013_v46  ;;  %v1484_v56 = vadd.f32 %v1420_v15, %v4020_v52 }
 0x307   : > { %1986 = vmatmul.mubr.f32.gmra.mrb[12].mxu1 %v1788_v9  ;;  %2663 = vtanh.f32 %v4022_v48  ;;  %v4091_v53 = vmul.f32 0.7978846, %v1481_v29  ;;  %v4093_v49 = vmul.f32 0.7978846, %v1482_v30  ;;  %v1485_v32 = vadd.f32 %v1421_v39, %v4027_v21 }
 0x308   : > { %v1203_v54 = vpop.f32.mrb[46].mxu0  ;;  %1990 = vmatprep.mubr.f32.mxu1 %v1791_v12  ;;  %v1662_v57 = vadd.f32 1.0, %v2652_v43  ;;  %v1486_v41 = vadd.f32 %v1422_v17, %v4030_v63  ;;  %v1423_v33 = vmul.f32 0.044715, %v1359_v36  ;;  %v4101_v40 = vadd.f32 %v4036_v22, %v3732_v35 }
 0x309   : > { %v1205_v2 = vpop.f32.mrb[47].mxu0  ;;  %v2654_v28 = vpop.eup %2653  ;;  %2665 = vtanh.f32 %v4051_v45  ;;  %v1360_v25 = vmul.f32 %v1296_v16, %v4072_v5  ;;  %v4109_v8 = vadd.f32 %v4049_v38, %v3730_v13  ;;  %v4111_v62 = vmul.f32 0.7978846, %v1483_v23 }
 0x30a   : > { %v1726_v18 = vmul.f32 0.5, %v1662_v57  ;;  %v1665_v44 = vadd.f32 1.0, %v2654_v28  ;;  %v4113_v29 = vmul.f32 0.7978846, %v1484_v56  ;;  %v4117_v22 = vadd.f32 %v4058_v1, %v3732_v35 }
 0x30b   : > { %v4120_v45 = vadd.f32 %v1197_v24, %v3730_v13  ;;  %v2656_v6 = vpop.eup %2655  ;;  %v4122_v15 = vmul.f32 0.7978846, %v1485_v32  ;;  %v4126_v38 = vadd.f32 %v1199_v4, %v3732_v35  ;;  %v4130_v17 = vmul.f32 0.7978846, %v1486_v41 }
 0x30c   : > { %v4096_v27 = vpop.f32.mrb[48].mxu0  ;;  %v1790_v31 = vmul.f32 %v1726_v18, %v3889_v59  ;;  %v1729_v30 = vmul.f32 0.5, %v1665_v44  ;;  %v4133_v9 = vadd.f32 %v1423_v33, %v4056_v37  ;;  %v1664_v1 = vadd.f32 1.0, %v2656_v6 }
 0x30d   : > { %v4104_v48 = vpop.f32.mrb[49].mxu0  ;;  %v1297_v24 = vmul.f32 %v4101_v40, %v4101_v40  ;;  %v1424_v16 = vmul.f32 0.044715, %v1360_v25  ;;  %v1298_v4 = vmul.f32 %v4109_v8, %v4109_v8  ;;  %2667 = vtanh.f32 %v1542_v0 }
 0x30e   : > { %v2658_v36 = vpop.eup %2657  ;;  %1991 = vmatmul.mubr.f32.gmra.mrb[14].mxu1 %v1790_v31  ;;  %v1793_v59 = vmul.f32 %v1729_v30, %v3905_v47  ;;  %v1728_v23 = vmul.f32 0.5, %v1664_v1  ;;  %v1299_v32 = vmul.f32 %v4117_v22, %v4117_v22  ;;  %v1300_v57 = vmul.f32 %v4120_v45, %v4120_v45 }
 0x30f   : > { %v2660_v43 = vpop.eup %2659  ;;  %v1667_v56 = vadd.f32 1.0, %v2658_v36  ;;  %v1301_v47 = vmul.f32 %v4126_v38, %v4126_v38  ;;  %v4149_v33 = vadd.f32 %v1203_v54, %v3730_v13  ;;  %v4152_v0 = vadd.f32 %v1205_v2, %v3732_v35 }
 0x310   : > { %v4128_v39 = vpop.f32.mrb[50].mxu0  ;;  %v2662_v28 = vpop.eup %2661  ;;  %1995 = vmatprep.mubr.f32.mxu1 %v1793_v59  ;;  %v1666_v41 = vadd.f32 1.0, %v2660_v43  ;;  %v1792_v25 = vmul.f32 %v1728_v23, %v3900_v60  ;;  %v1361_v6 = vmul.f32 %v1297_v24, %v4101_v40  ;;  %v1488_v36 = vadd.f32 %v1424_v16, %v4072_v5 }
 0x311   : > { %v4137_v12 = vpop.f32.mrb[51].mxu0  ;;  %v2664_v44 = vpop.eup %2663  ;;  %v1731_v31 = vmul.f32 0.5, %v1667_v56  ;;  %v1669_v30 = vadd.f32 1.0, %v2662_v28  ;;  %v1362_v59 = vmul.f32 %v1298_v4, %v4109_v8  ;;  %v1363_v10 = vmul.f32 %v1299_v32, %v4117_v22 }
 0x312   : > { %v1730_v54 = vmul.f32 0.5, %v1666_v41  ;;  %v1668_v43 = vadd.f32 1.0, %v2664_v44  ;;  %1996 = vmatmul.mubr.f32.gmra.mrb[16].mxu1 %v1792_v25  ;;  %v1364_v60 = vmul.f32 %v1300_v57, %v4120_v45  ;;  %v1365_v24 = vmul.f32 %v1301_v47, %v4126_v38 }
 0x313   : > { %v2666_v19 = vpop.eup %2665  ;;  %v1795_v2 = vmul.f32 %v1731_v31, %v3932_v14  ;;  %v1733_v3 = vmul.f32 0.5, %v1669_v30  ;;  %v1302_v56 = vmul.f32 %v4149_v33, %v4149_v33  ;;  %v1303_v16 = vmul.f32 %v4152_v0, %v4152_v0 }
 0x314   : > { %v4154_v18 = vpop.f32.mrb[52].mxu0  ;;  %v1671_v23 = vadd.f32 1.0, %v2666_v19  ;;  %v1794_v28 = vmul.f32 %v1730_v54, %v3910_v26  ;;  %v1732_v32 = vmul.f32 0.5, %v1668_v43  ;;  %2669 = vtanh.f32 %v4091_v53 }
 0x315   : > { %v4158_v1 = vpop.f32.mrb[53].mxu0  ;;  %2000 = vmatprep.mubr.f32.mxu1 %v1795_v2  ;;  %v1797_v14 = vmul.f32 %v1733_v3, %v3944_v20  ;;  %v1425_v41 = vmul.f32 0.044715, %v1361_v6  ;;  %v4179_v47 = vadd.f32 %v4096_v27, %v3730_v13  ;;  %2671 = vtanh.f32 %v4086_v58 }
 0x316   : > { %v1735_v19 = vmul.f32 0.5, %v1671_v23  ;;  %v1426_v44 = vmul.f32 0.044715, %v1362_v59  ;;  %2001 = vmatmul.mubr.f32.gmra.mrb[18].mxu1 %v1794_v28  ;;  %v1427_v25 = vmul.f32 0.044715, %v1363_v10  ;;  %2673 = vtanh.f32 %v4111_v62 }
 0x317   : > { %v1428_v31 = vmul.f32 0.044715, %v1364_v60  ;;  %v2668_v3 = vpop.eup %2667  ;;  %2005 = vmatprep.mubr.f32.mxu1 %v1797_v14  ;;  %v1429_v26 = vmul.f32 0.044715, %v1365_v24  ;;  %v1366_v53 = vmul.f32 %v1302_v56, %v4149_v33  ;;  %2675 = vtanh.f32 %v4093_v49 }
 0x318   : > { %v4170_v4 = vpop.f32.mrb[54].mxu0  ;;  %v1799_v20 = vmul.f32 %v1735_v19, %v3961_v34  ;;  %v1796_v27 = vmul.f32 %v1732_v32, %v3937_v61  ;;  %v1670_v58 = vadd.f32 1.0, %v2668_v3  ;;  %v1367_v30 = vmul.f32 %v1303_v16, %v4152_v0 }
 0x319   : > { %v4175_v57 = vpop.f32.mrb[55].mxu0  ;;  %v4192_v10 = vadd.f32 %v4104_v48, %v3732_v35  ;;  %v1551_v59 = vmul.f32 0.7978846, %v4133_v9  ;;  %v1489_v34 = vadd.f32 %v1425_v41, %v4101_v40  ;;  %v1304_v49 = vmul.f32 %v4179_v47, %v4179_v47 }
 0x31a   : > { %2677 = vtanh.f32 %v4122_v15  ;;  %v1490_v61 = vadd.f32 %v1426_v44, %v4109_v8  ;;  %v1491_v54 = vadd.f32 %v1427_v25, %v4117_v22  ;;  %2006 = vmatmul.mubr.f32.gmra.mrb[20].mxu1 %v1796_v27  ;;  %v1734_v43 = vmul.f32 0.5, %v1670_v58 }
 0x31b   : > { %v4205_v48 = vadd.f32 %v4128_v39, %v3730_v13  ;;  %v4207_v2 = vmul.f32 0.7978846, %v1488_v36  ;;  %v1492_v9 = vadd.f32 %v1428_v31, %v4120_v45  ;;  %v1493_v60 = vadd.f32 %v1429_v26, %v4126_v38  ;;  %2010 = vmatprep.mubr.f32.mxu1 %v1799_v20 }
 0x31c   : > { %v4186_v6 = vpop.f32.mrb[56].mxu0  ;;  %2679 = vtanh.f32 %v4113_v29  ;;  %v1430_v24 = vmul.f32 0.044715, %v1366_v53  ;;  %v1798_v23 = vmul.f32 %v1734_v43, %v3958_v42  ;;  %v1431_v56 = vmul.f32 0.044715, %v1367_v30 }
 0x31d   : > { %v4194_v62 = vpop.f32.mrb[57].mxu0  ;;  %v1305_v16 = vmul.f32 %v4192_v10, %v4192_v10  ;;  %v1553_v36 = vmul.f32 0.7978846, %v1489_v34  ;;  %v1368_v28 = vmul.f32 %v1304_v49, %v4179_v47  ;;  %v4222_v14 = vadd.f32 %v4137_v12, %v3732_v35 }
 0x31e   : > { %2681 = vtanh.f32 %v1551_v59  ;;  %v2670_v29 = vpop.eup %2669  ;;  %v4224_v32 = vmul.f32 0.7978846, %v1490_v61  ;;  %v4226_v41 = vmul.f32 0.7978846, %v1491_v54  ;;  %2011 = vmatmul.mubr.f32.gmra.mrb[22].mxu1 %v1798_v23  ;;  %v1306_v42 = vmul.f32 %v4205_v48, %v4205_v48 }
 0x31f   : > { %v4232_v19 = vadd.f32 %v4154_v18, %v3730_v13  ;;  %v2672_v44 = vpop.eup %2671  ;;  %v4234_v25 = vmul.f32 0.7978846, %v1492_v9  ;;  %v4236_v31 = vmul.f32 0.7978846, %v1493_v60  ;;  %v1673_v12 = vadd.f32 1.0, %v2670_v29 }
 0x320   : > { %v4212_v15 = vpop.f32.mrb[58].mxu0  ;;  %v4240_v3 = vadd.f32 %v4158_v1, %v3732_v35  ;;  %v2674_v20 = vpop.eup %2673  ;;  %v4245_v53 = vadd.f32 %v1430_v24, %v4149_v33  ;;  %v1495_v27 = vadd.f32 %v1431_v56, %v4152_v0  ;;  %v1672_v18 = vadd.f32 1.0, %v2672_v44 }
 0x321   : > { %v4217_v39 = vpop.f32.mrb[59].mxu0  ;;  %v1369_v58 = vmul.f32 %v1305_v16, %v4192_v10  ;;  %v2676_v59 = vpop.eup %2675  ;;  %v1737_v34 = vmul.f32 0.5, %v1673_v12  ;;  %v1432_v49 = vmul.f32 0.044715, %v1368_v28  ;;  %v1675_v61 = vadd.f32 1.0, %v2674_v20 }
 0x322   : > { %v1307_v1 = vmul.f32 %v4222_v14, %v4222_v14  ;;  %v1736_v54 = vmul.f32 0.5, %v1672_v18  ;;  %v1370_v43 = vmul.f32 %v1306_v42, %v4205_v48  ;;  %v1674_v9 = vadd.f32 1.0, %v2676_v59 }
 0x323   : > { %v1308_v60 = vmul.f32 %v4232_v19, %v4232_v19  ;;  %v1801_v23 = vmul.f32 %v1737_v34, %v3994_v55  ;;  %v1739_v56 = vmul.f32 0.5, %v1675_v61  ;;  %v1309_v16 = vmul.f32 %v4240_v3, %v4240_v3 }
 0x324   : > { %v4242_v26 = vpop.f32.mrb[60].mxu0  ;;  %v2678_v24 = vpop.eup %2677  ;;  %v4261_v28 = vadd.f32 %v4170_v4, %v3730_v13  ;;  %v1800_v44 = vmul.f32 %v1736_v54, %v3977_v50  ;;  %v1433_v42 = vmul.f32 0.044715, %v1369_v58  ;;  %v1738_v12 = vmul.f32 0.5, %v1674_v9 }
 0x325   : > { %v4249_v30 = vpop.f32.mrb[61].mxu0  ;;  %v1677_v20 = vadd.f32 1.0, %v2678_v24  ;;  %2015 = vmatprep.mubr.f32.mxu1 %v1801_v23  ;;  %v1803_v55 = vmul.f32 %v1739_v56, %v4013_v46  ;;  %v1371_v34 = vmul.f32 %v1307_v1, %v4222_v14  ;;  %2683 = vtanh.f32 %v4130_v17 }
 0x326   : > { %v2680_v59 = vpop.eup %2679  ;;  %v4273_v4 = vadd.f32 %v4175_v57, %v3732_v35  ;;  %2016 = vmatmul.mubr.f32.gmra.mrb[24].mxu1 %v1800_v44  ;;  %v1434_v61 = vmul.f32 0.044715, %v1370_v43  ;;  %v1372_v58 = vmul.f32 %v1308_v60, %v4232_v19  ;;  %v1802_v24 = vmul.f32 %v1738_v12, %v4000_v51 }
 0x327   : > { %v1741_v50 = vmul.f32 0.5, %v1677_v20  ;;  %v1676_v54 = vadd.f32 1.0, %v2680_v59  ;;  %2020 = vmatprep.mubr.f32.mxu1 %v1803_v55  ;;  %v1373_v46 = vmul.f32 %v1309_v16, %v4240_v3  ;;  %v1310_v1 = vmul.f32 %v4261_v28, %v4261_v28 }
 0x328   : > { %v4263_v29 = vpop.f32.mrb[62].mxu0  ;;  %v2682_v9 = vpop.eup %2681  ;;  %2685 = vtanh.f32 %v1553_v36  ;;  %v1559_v43 = vmul.f32 0.7978846, %v1495_v27  ;;  %v1435_v56 = vmul.f32 0.044715, %v1371_v34  ;;  %v1311_v60 = vmul.f32 %v4273_v4, %v4273_v4 }
 0x329   : > { %v4266_v18 = vpop.f32.mrb[63].mxu0  ;;  %v1805_v17 = vmul.f32 %v1741_v50, %v4027_v21  ;;  %v1740_v57 = vmul.f32 0.5, %v1676_v54  ;;  %v1679_v23 = vadd.f32 1.0, %v2682_v9  ;;  %2687 = vtanh.f32 %v4207_v2 }
 0x32a   : > { %v4286_v51 = vadd.f32 %v4186_v6, %v3730_v13  ;;  %v1496_v16 = vadd.f32 %v1432_v49, %v4179_v47  ;;  %v1497_v44 = vadd.f32 %v1433_v42, %v4192_v10  ;;  %2021 = vmatmul.mubr.f32.gmra.mrb[26].mxu1 %v1802_v24  ;;  %2689 = vtanh.f32 %v4226_v41 }
 0x32b   : > { %v1743_v36 = vmul.f32 0.5, %v1679_v23  ;;  %v1498_v21 = vadd.f32 %v1434_v61, %v4205_v48  ;;  %2025 = vmatprep.mubr.f32.mxu1 %v1805_v17  ;;  %v1436_v2 = vmul.f32 0.044715, %v1372_v58  ;;  %v1437_v27 = vmul.f32 0.044715, %v1373_v46 }
 0x32c   : > { %v4294_v12 = vadd.f32 %v4194_v62, %v3732_v35  ;;  %v1804_v6 = vmul.f32 %v1740_v57, %v4020_v52  ;;  %v1374_v49 = vmul.f32 %v1310_v1, %v4261_v28  ;;  %2691 = vtanh.f32 %v4224_v32 }
 0x32d   : > { %v1807_v20 = vmul.f32 %v1743_v36, %v4056_v37  ;;  %v1499_v42 = vadd.f32 %v1435_v56, %v4222_v14  ;;  %v1375_v41 = vmul.f32 %v1311_v60, %v4273_v4  ;;  %v1312_v59 = vmul.f32 %v4286_v51, %v4286_v51 }
 0x32e   : > { %2693 = vtanh.f32 %v4236_v31  ;;  %v1558_v62 = vmul.f32 0.7978846, %v4245_v53  ;;  %v4306_v55 = vmul.f32 0.7978846, %v1496_v16  ;;  %2026 = vmatmul.mubr.f32.gmra.mrb[28].mxu1 %v1804_v6  ;;  %v4310_v52 = vadd.f32 %v4217_v39, %v3732_v35 }
 0x32f   : > { %2695 = vtanh.f32 %v4234_v25  ;;  %v2684_v37 = vpop.eup %2683  ;;  %v4313_v32 = vmul.f32 0.7978846, %v1497_v44  ;;  %v1500_v34 = vadd.f32 %v1436_v2, %v4232_v19  ;;  %v1501_v61 = vadd.f32 %v1437_v27, %v4240_v3  ;;  %2030 = vmatprep.mubr.f32.mxu1 %v1807_v20 }
 0x330   : > { %v1313_v31 = vmul.f32 %v4294_v12, %v4294_v12  ;;  %v4319_v53 = vmul.f32 0.7978846, %v1498_v21  ;;  %v1438_v50 = vmul.f32 0.044715, %v1374_v49  ;;  %v1678_v58 = vadd.f32 1.0, %v2684_v37 }
 0x331   : > { %v4323_v39 = vadd.f32 %v4212_v15, %v3730_v13  ;;  %v4325_v54 = vmul.f32 0.7978846, %v1499_v42  ;;  %v1439_v9 = vmul.f32 0.044715, %v1375_v41  ;;  %v1376_v24 = vmul.f32 %v1312_v59, %v4286_v51 }
 0x332   : > { %v2686_v25 = vpop.eup %2685  ;;  %2697 = vtanh.f32 %v1559_v43  ;;  %v1742_v1 = vmul.f32 0.5, %v1678_v58  ;;  %v1315_v57 = vmul.f32 %v4310_v52, %v4310_v52  ;;  %v4332_v23 = vadd.f32 %v4249_v30, %v3732_v35 }
 0x333   : > { %v2688_v46 = vpop.eup %2687  ;;  %v1681_v17 = vadd.f32 1.0, %v2686_v25  ;;  %v4334_v56 = vmul.f32 0.7978846, %v1500_v34  ;;  %v4336_v15 = vmul.f32 0.7978846, %v1501_v61  ;;  %v1377_v16 = vmul.f32 %v1313_v31, %v4294_v12 }
 0x334   : > { %v1680_v60 = vadd.f32 1.0, %v2688_v46  ;;  %v2690_v44 = vpop.eup %2689  ;;  %v1502_v43 = vadd.f32 %v1438_v50, %v4261_v28  ;;  %v1806_v36 = vmul.f32 %v1742_v1, %v4030_v63  ;;  %v1314_v2 = vmul.f32 %v4323_v39, %v4323_v39 }
 0x335   : > { %v1745_v21 = vmul.f32 0.5, %v1681_v17  ;;  %v1503_v27 = vadd.f32 %v1439_v9, %v4273_v4  ;;  %v1440_v30 = vmul.f32 0.044715, %v1376_v24  ;;  %v1683_v20 = vadd.f32 1.0, %v2690_v44 }
 0x336   : > { %v1744_v6 = vmul.f32 0.5, %v1680_v60  ;;  %v2692_v49 = vpop.eup %2691  ;;  %2031 = vmatmul.mubr.f32.gmra.mrb[30].mxu1 %v1806_v36  ;;  %v1379_v41 = vmul.f32 %v1315_v57, %v4310_v52  ;;  %v1317_v59 = vmul.f32 %v4332_v23, %v4332_v23  ;;  %2699 = vtanh.f32 %v1558_v62 }
 0x337   : > { %v1809_v42 = vmul.f32 %v1745_v21, %v4101_v40  ;;  %v1441_v37 = vmul.f32 0.044715, %v1377_v16  ;;  %v1747_v34 = vmul.f32 0.5, %v1683_v20  ;;  %v1682_v61 = vadd.f32 1.0, %v2692_v49 }
 0x338   : > { %v2694_v63 = vpop.eup %2693  ;;  %v4350_v31 = vadd.f32 %v4242_v26, %v3730_v13  ;;  %v1808_v58 = vmul.f32 %v1744_v6, %v4072_v5  ;;  %v1378_v40 = vmul.f32 %v1314_v2, %v4323_v39  ;;  %v4356_v9 = vadd.f32 %v4266_v18, %v3732_v35 }
 0x339   : > { %v2696_v50 = vpop.eup %2695  ;;  %2035 = vmatprep.mubr.f32.mxu1 %v1809_v42  ;;  %v1685_v25 = vadd.f32 1.0, %v2694_v63  ;;  %v1811_v62 = vmul.f32 %v1747_v34, %v4117_v22  ;;  %v1746_v24 = vmul.f32 0.5, %v1682_v61  ;;  %v4361_v1 = vadd.f32 %v4263_v29, %v3730_v13 }
 0x33a   : > { %v1684_v46 = vadd.f32 1.0, %v2696_v50  ;;  %2036 = vmatmul.mubr.f32.gmra.mrb[32].mxu1 %v1808_v58  ;;  %v1443_v26 = vmul.f32 0.044715, %v1379_v41  ;;  %v1381_v5 = vmul.f32 %v1317_v59, %v4332_v23  ;;  %v1319_v57 = vmul.f32 %v4356_v9, %v4356_v9 }
 0x33b   : > { %v1749_v17 = vmul.f32 0.5, %v1685_v25  ;;  %v1567_v16 = vmul.f32 0.7978846, %v1503_v27  ;;  %v1505_v35 = vadd.f32 %v1441_v37, %v4294_v12  ;;  %2040 = vmatprep.mubr.f32.mxu1 %v1811_v62  ;;  %v1316_v22 = vmul.f32 %v4350_v31, %v4350_v31 }
 0x33c   : > { %v2698_v60 = vpop.eup %2697  ;;  %2701 = vtanh.f32 %v4313_v32  ;;  %v1810_v13 = vmul.f32 %v1746_v24, %v4109_v8  ;;  %v1748_v18 = vmul.f32 0.5, %v1684_v46  ;;  %v1504_v36 = vadd.f32 %v1440_v30, %v4286_v51 }
 0x33d   : > { %v1813_v29 = vmul.f32 %v1749_v17, %v4126_v38  ;;  %v1687_v44 = vadd.f32 1.0, %v2698_v60  ;;  %v1318_v21 = vmul.f32 %v4361_v1, %v4361_v1  ;;  %v1383_v2 = vmul.f32 %v1319_v57, %v4356_v9 }
 0x33e   : > { %2703 = vtanh.f32 %v4306_v55  ;;  %2041 = vmatmul.mubr.f32.gmra.mrb[34].mxu1 %v1810_v13  ;;  %v1507_v27 = vadd.f32 %v1443_v26, %v4310_v52  ;;  %v1445_v6 = vmul.f32 0.044715, %v1381_v5  ;;  %v1566_v8 = vmul.f32 0.7978846, %v1502_v43 }
 0x33f   : > { %v1751_v32 = vmul.f32 0.5, %v1687_v44  ;;  %2705 = vtanh.f32 %v4325_v54  ;;  %v1442_v38 = vmul.f32 0.044715, %v1378_v40  ;;  %2045 = vmatprep.mubr.f32.mxu1 %v1813_v29  ;;  %v1380_v20 = vmul.f32 %v1316_v22, %v4350_v31 }
 0x340   : > { %2707 = vtanh.f32 %v4319_v53  ;;  %v2700_v30 = vpop.eup %2699  ;;  %v1569_v49 = vmul.f32 0.7978846, %v1505_v35  ;;  %v1812_v42 = vmul.f32 %v1748_v18, %v4120_v45  ;;  %v1382_v41 = vmul.f32 %v1318_v21, %v4361_v1 }
 0x341   : > { %v1815_v55 = vmul.f32 %v1751_v32, %v4152_v0  ;;  %2709 = vtanh.f32 %v4336_v15  ;;  %v1686_v59 = vadd.f32 1.0, %v2700_v30  ;;  %v1447_v63 = vmul.f32 0.044715, %v1383_v2 }
 0x342   : > { %2711 = vtanh.f32 %v4334_v56  ;;  %v1568_v54 = vmul.f32 0.7978846, %v1504_v36  ;;  %v1571_v43 = vmul.f32 0.7978846, %v1507_v27  ;;  %2046 = vmatmul.mubr.f32.gmra.mrb[36].mxu1 %v1812_v42  ;;  %v1509_v37 = vadd.f32 %v1445_v6, %v4332_v23 }
 0x343   : > { %2713 = vtanh.f32 %v1567_v16  ;;  %v1506_v53 = vadd.f32 %v1442_v38, %v4323_v39  ;;  %v1444_v34 = vmul.f32 0.044715, %v1380_v20  ;;  %2050 = vmatprep.mubr.f32.mxu1 %v1815_v55  ;;  %v1750_v45 = vmul.f32 0.5, %v1686_v59 }
 0x344   : > { %2715 = vtanh.f32 %v1566_v8  ;;  %v1446_v15 = vmul.f32 0.044715, %v1382_v41  ;;  %v1511_v50 = vadd.f32 %v1447_v63, %v4356_v9  ;;  %v1573_v56 = vmul.f32 0.7978846, %v1509_v37 }
 0x345   : > { %2717 = vtanh.f32 %v1569_v49  ;;  %v1814_v61 = vmul.f32 %v1750_v45, %v4149_v33  ;;  %v1570_v25 = vmul.f32 0.7978846, %v1506_v53  ;;  %v1508_v62 = vadd.f32 %v1444_v34, %v4350_v31 }
 0x346   : > { %v2702_v0 = vpop.eup %2701  ;;  %2719 = vtanh.f32 %v1571_v43  ;;  %v1510_v5 = vadd.f32 %v1446_v15, %v4361_v1  ;;  %v1575_v57 = vmul.f32 0.7978846, %v1511_v50 }
 0x347   : > { %v1689_v58 = vadd.f32 1.0, %v2702_v0  ;;  %2051 = vmatmul.mubr.f32.gmra.mrb[38].mxu1 %v1814_v61  ;;  %2721 = vtanh.f32 %v1568_v54  ;;  %v1572_v29 = vmul.f32 0.7978846, %v1508_v62 }
 0x348   : > { %v2704_v40 = vpop.eup %2703  ;;  %2723 = vtanh.f32 %v1573_v56  ;;  %v1574_v20 = vmul.f32 0.7978846, %v1510_v5 }
 0x349   : > { %v2706_v24 = vpop.eup %2705  ;;  %v1753_v46 = vmul.f32 0.5, %v1689_v58  ;;  %v1688_v26 = vadd.f32 1.0, %v2704_v40  ;;  %2725 = vtanh.f32 %v1570_v25 }
 0x34a   : > { %v2708_v17 = vpop.eup %2707  ;;  %v1691_v60 = vadd.f32 1.0, %v2706_v24  ;;  %2727 = vtanh.f32 %v1575_v57 }
 0x34b   : > { %v2710_v33 = vpop.eup %2709  ;;  %v1817_v16 = vmul.f32 %v1753_v46, %v4192_v10  ;;  %v1752_v35 = vmul.f32 0.5, %v1688_v26  ;;  %v1690_v22 = vadd.f32 1.0, %v2708_v17  ;;  %2729 = vtanh.f32 %v1572_v29 }
 0x34c   : > { %v2712_v13 = vpop.eup %2711  ;;  %v1755_v18 = vmul.f32 0.5, %v1691_v60  ;;  %v1693_v44 = vadd.f32 1.0, %v2710_v33  ;;  %2731 = vtanh.f32 %v1574_v20 }
 0x34d   : > { %v2714_v36 = vpop.eup %2713  ;;  %2055 = vmatprep.mubr.f32.mxu1 %v1817_v16  ;;  %v1816_v21 = vmul.f32 %v1752_v35, %v4179_v47  ;;  %v1754_v2 = vmul.f32 0.5, %v1690_v22  ;;  %v1692_v27 = vadd.f32 1.0, %v2712_v13 }
 0x34e   : > { %v2716_v6 = vpop.eup %2715  ;;  %v1819_v32 = vmul.f32 %v1755_v18, %v4222_v14  ;;  %v1757_v8 = vmul.f32 0.5, %v1693_v44  ;;  %v1695_v38 = vadd.f32 1.0, %v2714_v36 }
 0x34f   : > { %v2718_v10 = vpop.eup %2717  ;;  %2056 = vmatmul.mubr.f32.gmra.mrb[40].mxu1 %v1816_v21  ;;  %v1818_v47 = vmul.f32 %v1754_v2, %v4205_v48  ;;  %v1756_v41 = vmul.f32 0.5, %v1692_v27  ;;  %v1694_v59 = vadd.f32 1.0, %v2716_v6  ;;  %v4666_v6 = vld [vmem:[#allocation20_spill] sm:$0xff] }
 0x350   : > { %2060 = vmatprep.mubr.f32.mxu1 %v1819_v32  ;;  %v1821_v30 = vmul.f32 %v1757_v8, %v4240_v3  ;;  %v1759_v49 = vmul.f32 0.5, %v1695_v38  ;;  %v1697_v42 = vadd.f32 1.0, %v2718_v10  ;;  %v2720_v55 = vpop.eup %2719  ;;  %v4667_v10 = vld [vmem:[#allocation22_spill] sm:$0xff] }
 0x351   : > { %v2722_v63 = vpop.eup %2721  ;;  %v1699_v43 = vadd.f32 1.0, %v2720_v55  ;;  %v1820_v53 = vmul.f32 %v1756_v41, %v4232_v19  ;;  %v1758_v3 = vmul.f32 0.5, %v1694_v59  ;;  %v4668_v55 = vld [vmem:[#allocation21_spill] sm:$0xff] }
 0x352   : > { %v1823_v14 = vmul.f32 %v1759_v49, %v4273_v4  ;;  %v1761_v54 = vmul.f32 0.5, %v1697_v42  ;;  %v2724_v37 = vpop.eup %2723  ;;  %v1696_v34 = vadd.f32 1.0, %v2722_v63 }
 0x353   : > { %2061 = vmatmul.mubr.f32.gmra.mrb[42].mxu1 %v1818_v47  ;;  %v2726_v45 = vpop.eup %2725  ;;  %v1763_v0 = vmul.f32 0.5, %v1699_v43  ;;  %v1701_v15 = vadd.f32 1.0, %v2724_v37  ;;  %v1822_v50 = vmul.f32 %v1758_v3, %v4261_v28  ;;  %v4670_v3 = vld [vmem:[#allocation23_spill] sm:$0xff] }
 0x354   : > { %2065 = vmatprep.mubr.f32.mxu1 %v1821_v30  ;;  %v1825_v48 = vmul.f32 %v1761_v54, %v4294_v12  ;;  %v2728_v61 = vpop.eup %2727  ;;  %v1760_v56 = vmul.f32 0.5, %v1696_v34  ;;  %v1698_v4 = vadd.f32 1.0, %v2726_v45 }
 0x355   : > { %v2730_v58 = vpop.eup %2729  ;;  %v1827_v40 = vmul.f32 %v1763_v0, %v4310_v52  ;;  %v1765_v19 = vmul.f32 0.5, %v1701_v15  ;;  %v1703_v25 = vadd.f32 1.0, %v2728_v61  ;;  %v4671_v15 = vld [vmem:[#allocation26_spill] sm:$0xff] }
 0x356   : > { %v1824_v62 = vmul.f32 %v1760_v56, %v4286_v51  ;;  %v1762_v24 = vmul.f32 0.5, %v1698_v4  ;;  %v1700_v46 = vadd.f32 1.0, %v2730_v58  ;;  %v2732_v26 = vpop.eup %2731  ;;  %v4672_v58 = vld [vmem:[#allocation25_spill] sm:$0xff] }
 0x357   : > { %2066 = vmatmul.mubr.f32.gmra.mrb[44].mxu1 %v1820_v53  ;;  %v1829_v12 = vmul.f32 %v1765_v19, %v4332_v23  ;;  %v1767_v17 = vmul.f32 0.5, %v1703_v25  ;;  %v1702_v57 = vadd.f32 1.0, %v2732_v26  ;;  %v4411_v23 = vld [vmem:[%s4570_s7] ss:$0 sm:$0xff] }
 0x358   : > { %2070 = vmatprep.mubr.f32.mxu1 %v1823_v14  ;;  %v1826_v28 = vmul.f32 %v1762_v24, %v4323_v39  ;;  %v1764_v5 = vmul.f32 0.5, %v1700_v46  ;;  %v4669_v14 = vld [vmem:[#allocation24_spill] sm:$0xff] }
 0x359   : > { %v1831_v52 = vmul.f32 %v1767_v17, %v4356_v9  ;;  %v1766_v51 = vmul.f32 0.5, %v1702_v57  ;;  %v4673_v24 = vld [vmem:[#allocation28_spill] sm:$0xff] }
 0x35a   : > { %v1828_v60 = vmul.f32 %v1764_v5, %v4350_v31 }
 0x35b   : > { %2071 = vmatmul.mubr.f32.gmra.mrb[46].mxu1 %v1822_v50  ;;  %v1830_v33 = vmul.f32 %v1766_v51, %v4361_v1  ;;  %v4675_v51 = vld [vmem:[#allocation30_spill] sm:$0xff] }
 0x35c   : > { %2075 = vmatprep.mubr.f32.mxu1 %v1825_v48 }
 0x35f   : > { %2076 = vmatmul.mubr.f32.gmra.mrb[48].mxu1 %v1824_v62 }
 0x360   : > { %2080 = vmatprep.mubr.f32.mxu1 %v1827_v40 }
 0x363   : > { %2081 = vmatmul.mubr.f32.gmra.mrb[50].mxu1 %v1826_v28  ;;  %v4674_v28 = vld [vmem:[#allocation27_spill] sm:$0xff] }
 0x364   : > { %2085 = vmatprep.mubr.f32.mxu1 %v1829_v12 }
 0x367   : > { %2086 = vmatmul.mubr.f32.gmra.mrb[52].mxu1 %v1828_v60 }
 0x368   : > { %2090 = vmatprep.mubr.f32.mxu1 %v1831_v52 }
 0x36b   : > { %2091 = vmatmul.mubr.f32.gmra.mrb[54].mxu1 %v1830_v33 }
 0x39f   : > { %v1937_v39 = vpop.f32.mrb[64].mxu0 }
 0x3a0   : > { %v1938_v16 = vadd.f32 %v4411_v23, %v1937_v39  ;;  %v1939_v35 = vpop.f32.mrb[65].mxu0 }
 0x3a2   : > { %v2128_v22 = vadd.f32 %v1938_v16, %v3242_v7  ;;  %v4665_v7 = vld [vmem:[#allocation19_spill] sm:$0xff] }
 0x3a3   : > { %v1942_v31 = vpop.f32.mrb[66].mxu0 }
 0x3a4   : > { %2160 = vst [vmem:[%s4416_s17] sm:$0xff] %v2128_v22  ;;  %v1943_v9 = vadd.f32 %v4411_v23, %v1942_v31  ;;  %v1944_v1 = vpop.f32.mrb[67].mxu0  ;;  %v4676_v22 = vld [vmem:[#allocation29_spill] sm:$0xff] }
 0x3a6   : > { %v2129_v13 = vadd.f32 %v1943_v9, %v3250_v11 }
 0x3a7   : > { %v1947_v29 = vpop.f32.mrb[68].mxu0 }
 0x3a8   : > { %2161 = vst [vmem:[%s4416_s17 + $0x8] sm:$0xff] %v2129_v13  ;;  %v1948_v18 = vadd.f32 %v4411_v23, %v1947_v29  ;;  %v1949_v44 = vpop.f32.mrb[69].mxu0  ;;  %v4677_v29 = vld [vmem:[#allocation32_spill] sm:$0xff] }
 0x3aa   : > { %v2130_v36 = vadd.f32 %v1948_v18, %v4665_v7 }
 0x3ac   : > { %2162 = vst [vmem:[%s4416_s17 + $0x10] sm:$0xff] %v2130_v36 }
 0x3b6   : > { %v1952_v21 = vpop.f32.mrb[70].mxu0 }
 0x3b7   : > { %v1953_v2 = vadd.f32 %v4411_v23, %v1952_v21  ;;  %v1954_v27 = vpop.f32.mrb[71].mxu0  ;;  %v4678_v21 = vld [vmem:[#allocation31_spill] sm:$0xff] }
 0x3b9   : > { %v2131_v32 = vadd.f32 %v1953_v2, %v4666_v6 }
 0x3bb   : > { %2163 = vst [vmem:[%s4416_s17 + $0x18] sm:$0xff] %v2131_v32 }
 0x3bd   : > { %v1957_v8 = vpop.f32.mrb[0].mxu1 }
 0x3be   : > { %v1958_v11 = vadd.f32 %v4411_v23, %v1957_v8  ;;  %v1959_v38 = vpop.f32.mrb[1].mxu1  ;;  %v4679_v8 = vld [vmem:[#allocation34_spill] sm:$0xff] }
 0x3c0   : > { %v2132_v20 = vadd.f32 %v1958_v11, %v4667_v10 }
 0x3c1   : > { %v1962_v30 = vpop.f32.mrb[2].mxu1 }
 0x3c2   : > { %2164 = vst [vmem:[%s4416_s17 + $0x20] sm:$0xff] %v2132_v20  ;;  %v1963_v49 = vadd.f32 %v4411_v23, %v1962_v30  ;;  %v1964_v42 = vpop.f32.mrb[3].mxu1  ;;  %v4680_v30 = vld [vmem:[#allocation33_spill] sm:$0xff] }
 0x3c4   : > { %v2133_v47 = vadd.f32 %v1963_v49, %v4668_v55 }
 0x3c5   : > { %v1967_v41 = vpop.f32.mrb[4].mxu1 }
 0x3c6   : > { %2165 = vst [vmem:[%s4416_s17 + $0x28] sm:$0xff] %v2133_v47  ;;  %v1968_v59 = vadd.f32 %v4411_v23, %v1967_v41  ;;  %v1969_v63 = vpop.f32.mrb[5].mxu1  ;;  %v4681_v41 = vld [vmem:[#allocation36_spill] sm:$0xff] }
 0x3c8   : > { %v2134_v54 = vadd.f32 %v1968_v59, %v4669_v14 }
 0x3c9   : > { %v1972_v43 = vpop.f32.mrb[6].mxu1 }
 0x3ca   : > { %2166 = vst [vmem:[%s4416_s17 + $0x30] sm:$0xff] %v2134_v54  ;;  %v1973_v37 = vadd.f32 %v4411_v23, %v1972_v43  ;;  %v1974_v53 = vpop.f32.mrb[7].mxu1  ;;  %v4682_v43 = vld [vmem:[#allocation35_spill] sm:$0xff] }
 0x3cc   : > { %v2135_v34 = vadd.f32 %v1973_v37, %v4670_v3 }
 0x3ce   : > { %2167 = vst [vmem:[%s4416_s17 + $0x38] sm:$0xff] %v2135_v34 }
 0x3d2   : > { %v1977_v45 = vpop.f32.mrb[8].mxu1 }
 0x3d3   : > { %v1978_v48 = vadd.f32 %v4411_v23, %v1977_v45  ;;  %v1979_v0 = vpop.f32.mrb[9].mxu1  ;;  %v4683_v45 = vld [vmem:[#allocation37_spill] sm:$0xff] }
 0x3d5   : > { %v2136_v61 = vadd.f32 %v1978_v48, %v4671_v15 }
 0x3d6   : > { %v1982_v50 = vpop.f32.mrb[10].mxu1 }
 0x3d7   : > { %2168 = vst [vmem:[%s4416_s17 + $0x40] sm:$0xff] %v2136_v61  ;;  %v1983_v56 = vadd.f32 %v4411_v23, %v1982_v50  ;;  %v1984_v4 = vpop.f32.mrb[11].mxu1  ;;  %v4684_v50 = vld [vmem:[#allocation38_spill] sm:$0xff] }
 0x3d9   : > { %v2137_v40 = vadd.f32 %v1983_v56, %v4672_v58 }
 0x3da   : > { %v1987_v19 = vpop.f32.mrb[12].mxu1 }
 0x3db   : > { %2169 = vst [vmem:[%s4416_s17 + $0x48] sm:$0xff] %v2137_v40  ;;  %v1988_v25 = vadd.f32 %v4411_v23, %v1987_v19  ;;  %v1989_v62 = vpop.f32.mrb[13].mxu1  ;;  %v4685_v19 = vld [vmem:[#allocation39_spill] sm:$0xff] }
 0x3dd   : > { %v2138_v46 = vadd.f32 %v1988_v25, %v4673_v24 }
 0x3df   : > { %2170 = vst [vmem:[%s4416_s17 + $0x50] sm:$0xff] %v2138_v46 }
 0x3e1   : > { %v1992_v26 = vpop.f32.mrb[14].mxu1 }
 0x3e2   : > { %v1993_v12 = vadd.f32 %v4411_v23, %v1992_v26  ;;  %v1994_v17 = vpop.f32.mrb[15].mxu1  ;;  %v4686_v26 = vld [vmem:[#allocation40_spill] sm:$0xff] }
 0x3e4   : > { %v2139_v5 = vadd.f32 %v1993_v12, %v4674_v28 }
 0x3e5   : > { %v1997_v57 = vpop.f32.mrb[16].mxu1 }
 0x3e6   : > { %2171 = vst [vmem:[%s4416_s17 + $0x58] sm:$0xff] %v2139_v5  ;;  %v1998_v52 = vadd.f32 %v4411_v23, %v1997_v57  ;;  %v1999_v60 = vpop.f32.mrb[17].mxu1  ;;  %v4687_v57 = vld [vmem:[#allocation41_spill] sm:$0xff] }
 0x3e8   : > { %v2140_v33 = vadd.f32 %v1998_v52, %v4675_v51 }
 0x3e9   : > { %v2002_v39 = vpop.f32.mrb[18].mxu1 }
 0x3ea   : > { %2172 = vst [vmem:[%s4416_s17 + $0x60] sm:$0xff] %v2140_v33  ;;  %v2003_v16 = vadd.f32 %v4411_v23, %v2002_v39  ;;  %v2004_v35 = vpop.f32.mrb[19].mxu1  ;;  %v4688_v39 = vld [vmem:[#allocation42_spill] sm:$0xff] }
 0x3ec   : > { %v2141_v31 = vadd.f32 %v2003_v16, %v4676_v22 }
 0x3ed   : > { %v2007_v9 = vpop.f32.mrb[20].mxu1 }
 0x3ee   : > { %2173 = vst [vmem:[%s4416_s17 + $0x68] sm:$0xff] %v2141_v31  ;;  %v2008_v1 = vadd.f32 %v4411_v23, %v2007_v9  ;;  %v2009_v13 = vpop.f32.mrb[21].mxu1  ;;  %v4689_v9 = vld [vmem:[#allocation43_spill] sm:$0xff] }
 0x3f0   : > { %v2142_v18 = vadd.f32 %v2008_v1, %v4677_v29 }
 0x3f1   : > { %v2012_v44 = vpop.f32.mrb[22].mxu1 }
 0x3f2   : > { %2174 = vst [vmem:[%s4416_s17 + $0x70] sm:$0xff] %v2142_v18  ;;  %v2013_v7 = vadd.f32 %v4411_v23, %v2012_v44  ;;  %v2014_v36 = vpop.f32.mrb[23].mxu1  ;;  %v4690_v44 = vld [vmem:[#allocation44_spill] sm:$0xff] }
 0x3f4   : > { %v2143_v2 = vadd.f32 %v2013_v7, %v4678_v21 }
 0x3f6   : > { %2175 = vst [vmem:[%s4416_s17 + $0x78] sm:$0xff] %v2143_v2 }
 0x3f9   : > { %v2017_v27 = vpop.f32.mrb[24].mxu1 }
 0x3fa   : > { %v2018_v6 = vadd.f32 %v4411_v23, %v2017_v27  ;;  %v2019_v32 = vpop.f32.mrb[25].mxu1  ;;  %v4691_v27 = vld [vmem:[#allocation45_spill] sm:$0xff] }
 0x3fc   : > { %v2144_v11 = vadd.f32 %v2018_v6, %v4679_v8 }
 0x3fd   : > { %v2022_v38 = vpop.f32.mrb[26].mxu1 }
 0x3fe   : > { %2176 = vst [vmem:[%s4416_s17 + $0x80] sm:$0xff] %v2144_v11  ;;  %v2023_v10 = vadd.f32 %v4411_v23, %v2022_v38  ;;  %v2024_v20 = vpop.f32.mrb[27].mxu1  ;;  %v4692_v38 = vld [vmem:[#allocation46_spill] sm:$0xff] }
 0x400   : > { %v2145_v49 = vadd.f32 %v2023_v10, %v4680_v30 }
 0x401   : > { %v2027_v42 = vpop.f32.mrb[28].mxu1 }
 0x402   : > { %2177 = vst [vmem:[%s4416_s17 + $0x88] sm:$0xff] %v2145_v49  ;;  %v2028_v55 = vadd.f32 %v4411_v23, %v2027_v42  ;;  %v2029_v47 = vpop.f32.mrb[29].mxu1  ;;  %v4693_v42 = vld [vmem:[#allocation47_spill] sm:$0xff] }
 0x404   : > { %v2146_v59 = vadd.f32 %v2028_v55, %v4681_v41 }
 0x406   : > { %2178 = vst [vmem:[%s4416_s17 + $0x90] sm:$0xff] %v2146_v59 }
 0x409   : > { %v2032_v63 = vpop.f32.mrb[30].mxu1 }
 0x40a   : > { %v2033_v14 = vadd.f32 %v4411_v23, %v2032_v63  ;;  %v2034_v54 = vpop.f32.mrb[31].mxu1  ;;  %v4694_v63 = vld [vmem:[#allocation48_spill] sm:$0xff] }
 0x40c   : > { %v2147_v37 = vadd.f32 %v2033_v14, %v4682_v43 }
 0x40d   : > { %v2037_v53 = vpop.f32.mrb[32].mxu1 }
 0x40e   : > { %2179 = vst [vmem:[%s4416_s17 + $0x98] sm:$0xff] %v2147_v37  ;;  %v2038_v3 = vadd.f32 %v4411_v23, %v2037_v53  ;;  %v2039_v34 = vpop.f32.mrb[33].mxu1 }
 0x410   : > { %v2148_v48 = vadd.f32 %v2038_v3, %v4683_v45 }
 0x411   : > { %v2042_v0 = vpop.f32.mrb[34].mxu1 }
 0x412   : > { %2180 = vst [vmem:[%s4416_s17 + $0xa0] sm:$0xff] %v2148_v48  ;;  %v2043_v15 = vadd.f32 %v4411_v23, %v2042_v0  ;;  %v2044_v61 = vpop.f32.mrb[35].mxu1 }
 0x414   : > { %v2149_v56 = vadd.f32 %v2043_v15, %v4684_v50 }
 0x415   : > { %v2047_v4 = vpop.f32.mrb[36].mxu1 }
 0x416   : > { %2181 = vst [vmem:[%s4416_s17 + $0xa8] sm:$0xff] %v2149_v56  ;;  %v2048_v58 = vadd.f32 %v4411_v23, %v2047_v4  ;;  %v2049_v40 = vpop.f32.mrb[37].mxu1 }
 0x418   : > { %v2150_v25 = vadd.f32 %v2048_v58, %v4685_v19 }
 0x41a   : > { %2182 = vst [vmem:[%s4416_s17 + $0xb0] sm:$0xff] %v2150_v25  ;;  %v2052_v62 = vpop.f32.mrb[38].mxu1 }
 0x41b   : > { %v2053_v24 = vadd.f32 %v4411_v23, %v2052_v62  ;;  %v2054_v46 = vpop.f32.mrb[39].mxu1 }
 0x41d   : > { %v2151_v12 = vadd.f32 %v2053_v24, %v4686_v26 }
 0x41f   : > { %2183 = vst [vmem:[%s4416_s17 + $0xb8] sm:$0xff] %v2151_v12 }
 0x422   : > { %v2057_v17 = vpop.f32.mrb[40].mxu1 }
 0x423   : > { %v2058_v28 = vadd.f32 %v4411_v23, %v2057_v17  ;;  %v2059_v5 = vpop.f32.mrb[41].mxu1 }
 0x425   : > { %v2152_v52 = vadd.f32 %v2058_v28, %v4687_v57 }
 0x426   : > { %v2062_v60 = vpop.f32.mrb[42].mxu1 }
 0x427   : > { %2184 = vst [vmem:[%s4416_s17 + $0xc0] sm:$0xff] %v2152_v52  ;;  %v2063_v51 = vadd.f32 %v4411_v23, %v2062_v60  ;;  %v2064_v33 = vpop.f32.mrb[43].mxu1 }
 0x429   : > { %v2153_v16 = vadd.f32 %v2063_v51, %v4688_v39 }
 0x42a   : > { %v2067_v35 = vpop.f32.mrb[44].mxu1 }
 0x42b   : > { %2185 = vst [vmem:[%s4416_s17 + $0xc8] sm:$0xff] %v2153_v16  ;;  %v2068_v22 = vadd.f32 %v4411_v23, %v2067_v35  ;;  %v2069_v31 = vpop.f32.mrb[45].mxu1 }
 0x42d   : > { %v2154_v1 = vadd.f32 %v2068_v22, %v4689_v9 }
 0x42e   : > { %v2072_v13 = vpop.f32.mrb[46].mxu1 }
 0x42f   : > { %2186 = vst [vmem:[%s4416_s17 + $0xd0] sm:$0xff] %v2154_v1  ;;  %v2073_v29 = vadd.f32 %v4411_v23, %v2072_v13  ;;  %v2074_v18 = vpop.f32.mrb[47].mxu1 }
 0x431   : > { %v2155_v7 = vadd.f32 %v2073_v29, %v4690_v44 }
 0x432   : > { %v2077_v36 = vpop.f32.mrb[48].mxu1 }
 0x433   : > { %2187 = vst [vmem:[%s4416_s17 + $0xd8] sm:$0xff] %v2155_v7  ;;  %v2078_v21 = vadd.f32 %v4411_v23, %v2077_v36  ;;  %v2079_v2 = vpop.f32.mrb[49].mxu1 }
 0x435   : > { %v2156_v6 = vadd.f32 %v2078_v21, %v4691_v27 }
 0x436   : > { %v2082_v32 = vpop.f32.mrb[50].mxu1 }
 0x437   : > { %2188 = vst [vmem:[%s4416_s17 + $0xe0] sm:$0xff] %v2156_v6  ;;  %v2083_v8 = vadd.f32 %v4411_v23, %v2082_v32  ;;  %v2084_v11 = vpop.f32.mrb[51].mxu1 }
 0x439   : > { %v2157_v10 = vadd.f32 %v2083_v8, %v4692_v38 }
 0x43a   : > { %v2087_v20 = vpop.f32.mrb[52].mxu1 }
 0x43b   : > { %2189 = vst [vmem:[%s4416_s17 + $0xe8] sm:$0xff] %v2157_v10  ;;  %v2088_v30 = vadd.f32 %v4411_v23, %v2087_v20  ;;  %v2089_v49 = vpop.f32.mrb[53].mxu1 }
 0x43d   : > { %v2158_v55 = vadd.f32 %v2088_v30, %v4693_v42 }
 0x43e   : > { %v2092_v47 = vpop.f32.mrb[54].mxu1 }
 0x43f   : > { %2190 = vst [vmem:[%s4416_s17 + $0xf0] sm:$0xff] %v2158_v55  ;;  %v2093_v41 = vadd.f32 %v4411_v23, %v2092_v47  ;;  %v2094_v59 = vpop.f32.mrb[55].mxu1 }
 0x441   : > { %v2159_v14 = vadd.f32 %v2093_v41, %v4694_v63 }
 0x443   : > { %2191 = vst [vmem:[%s4416_s17 + $0xf8] sm:$0xff] %v2159_v14 }
 0x444   : > { %2862 = shalt.err (!%p2859_p5)
}
 0x445   : > { %s2863_s15 = scalar_lea.hbm %s4515_s24, 4096  ;;  %s2867_s29 = scalar_lea.hbm %s4571_s8, 8192 }
 0x446   : > { %p2864_p9 = scmp.ne.s32.totalorder %s4515_s24, %s2863_s15  ;;  %p2868_p11 = scmp.lt.u32.totalorder %s4515_s24, %s4571_s8 }
 0x447   : > { %p2869_p1 = scmp.lt.u32.totalorder %s2867_s29, %s2863_s15  ;;  %p2871_p2 = scmp.lt.u32.totalorder %s2863_s15, %s4515_s24 }
 0x448   : > { %p2865_p0 = pnand %p2864_p9, %p4695_p13 }
 0x449   : > { %p2870_p12 = por %p2869_p1, %p2868_p11 }
 0x44a   : > { %p2866_p8 = pneg %p2865_p0 }
 0x44b   : > { %p2872_p6 = por %p2871_p2, %p2870_p12 }
 0x44d   : > { %p2873_p10 = pnand %p2872_p6, %p2866_p8 }
 0x44f   : > { %2876 = shalt.err (!%p2873_p10)
}
 0x450   : > { %s2940_s6 = smov 128   ;;  %s2941_s17 = smov 8  }
 0x451   : > { %2473 = dma.vmem_to_hbm [thread:$0]  (%p4695_p13), %s4517_s0, 4096, %s4515_s24, %s2193_s9, %s2940_s6, %s2940_s6, %s2941_s17  }
 0x452 PF: > { %s2221_s21 = sand.u32 1, %s2915_s27   ;;  %p4696_p4 = scmp.ne.s32.totalorder %s4617_s12, 0 }
 0x453   : > { %p4697_p7 = scmp.ge.s32.totalorder %s2927_s30, 2  ;;  %s2222_s18 = scalar_lea.sflag [#allocation5], %s2221_s21 }
 0x455   : > { %p2490_p3 = pnand %p4697_p7, %p4696_p4 }
 0x457   : > { %2910 = dma.done.wait (!%p2490_p3), %s2222_s18, 4096  }
 0x458   : > { %2912 = vsyncadd (!%p2490_p3), %s2222_s18, 4294963200  ;;  %s4698_s22 = sld [smem:[#allocation17_spill]]  ;;  %s4699_s29 = sld [smem:[#allocation18_spill]] }
 0x459   : > { %p25_p5 = scmp.ge.s32.totalorder %s3100_s20, 4   ;;  %s4700_s27 = smov %s2919_s28 }
 0x45a   : > { %s4702_s30 = smov %s3100_s20 }
 0x45b   :  { %27 = sbr.rel (!%p25_p5) target bundleno = 12 (0xc), region = 118 }
 0x45e   : > { %s4701_s28 = smov %s4698_s22 }
 0x462   :  { %2227 = vsyncpa [#allocation4], 1 }
 0x463   :  { %2229 = vsyncpa [#allocation4 + $0x1], 1 }
 0x464   :  { %2230 = vsyncpa [#allocation7], 1 }
 0x465   :  { %2232 = vsyncpa [#allocation7 + $0x1], 1 }
 0x466   :  { %2233 = vsyncpa [#allocation10], 1 }
 0x467   :  { %2234 = vsyncpa [#allocation5], 1 }
 0x468   :  { %2236 = vsyncpa [#allocation5 + $0x1], 1 }

</bundles_post_ra>
